<compile_context>
chip_gen: v7x
topology: tpu7x:2x2x1
jax: 0.10.0
libtpu: 0.0.40
codegen_flags: <defaults>
</compile_context>

<pallas_src>
import functools
import math

import jax
import jax.numpy as jnp
from jax.experimental import pallas as pl
from jax.experimental.pallas import tpu as pltpu


# ------------------------- in-kernel math helpers -------------------------

def _layernorm(x, w, b, eps=1e-6):
    # x: (S, D), w/b: (1, D)
    mu = jnp.mean(x, axis=-1, keepdims=True)
    d = x - mu
    var = jnp.mean(d * d, axis=-1, keepdims=True)
    return d * jax.lax.rsqrt(var + eps) * w + b


def _gelu_tanh(x):
    # tanh-approximate GELU (single EUP tanh); |err| vs exact erf-GELU <~ 1e-3.
    c = 0.7978845608028654  # sqrt(2/pi)
    return 0.5 * x * (1.0 + jnp.tanh(c * (x + 0.044715 * x * x * x)))


# ------------------------------ Pallas kernel ------------------------------

def encoder_kernel(x_ref, pos_ref, kbias_ref,
                   ln1w_ref, ln1b_ref,
                   wq_ref, bq_ref, wk_ref, bk_ref, wv_ref, bv_ref,
                   wo_ref, bo_ref,
                   ln2w_ref, ln2b_ref,
                   w1_ref, b1_ref, w2_ref, b2_ref,
                   lnfw_ref, lnfb_ref,
                   o_ref, x_scr, *, num_heads):
    l = pl.program_id(1)
    n_layers = pl.num_programs(1)
    S, D = x_scr.shape
    hd = D // num_heads
    bf16 = jnp.bfloat16

    @pl.when(l == 0)
    def _():
        # input + positional embedding (dropout = identity at inference)
        x_scr[...] = x_ref[0] + pos_ref[...]

    x = x_scr[...]                                              # (S, D) f32

    # ---- LN1 + multi-head self-attention ----
    xn = _layernorm(x, ln1w_ref[0], ln1b_ref[0]).astype(bf16)
    # 1/sqrt(hd) is pre-folded into wq/bq by the wrapper.
    q = jnp.dot(xn, wq_ref[0], preferred_element_type=jnp.float32) + bq_ref[0]
    k = jnp.dot(xn, wk_ref[0], preferred_element_type=jnp.float32) + bk_ref[0]
    v = jnp.dot(xn, wv_ref[0], preferred_element_type=jnp.float32) + bv_ref[0]
    kbias = kbias_ref[...]                                      # (1, S): 0 valid / -1e30 pad

    heads = []
    for h in range(num_heads):                                  # static unroll over heads
        sl = slice(h * hd, (h + 1) * hd)
        qh = q[:, sl].astype(bf16)
        kh = k[:, sl].astype(bf16)
        vh = v[:, sl].astype(bf16)
        # q @ k^T without an explicit transpose: contract the last dims of both.
        s = jax.lax.dot_general(qh, kh, (((1,), (1,)), ((), ())),
                                preferred_element_type=jnp.float32)
        s = s + kbias                                           # mask padded keys
        m = jnp.max(s, axis=-1, keepdims=True)
        e = jnp.exp(s - m)
        inv = pl.reciprocal(jnp.sum(e, axis=-1, keepdims=True), approx=True)
        p = (e * inv).astype(bf16)
        heads.append(jnp.dot(p, vh, preferred_element_type=jnp.float32))
    att = jnp.concatenate(heads, axis=-1).astype(bf16)          # (S, D)
    att = jnp.dot(att, wo_ref[0], preferred_element_type=jnp.float32) + bo_ref[0]
    x = x + att                                                 # residual 1

    # ---- LN2 + MLP (Linear -> GELU -> Linear) ----
    yn = _layernorm(x, ln2w_ref[0], ln2b_ref[0]).astype(bf16)
    h1 = jnp.dot(yn, w1_ref[0], preferred_element_type=jnp.float32) + b1_ref[0]
    h1 = _gelu_tanh(h1).astype(bf16)
    h2 = jnp.dot(h1, w2_ref[0], preferred_element_type=jnp.float32) + b2_ref[0]
    x = x + h2                                                  # residual 2

    x_scr[...] = x                                              # carry to next layer

    @pl.when(l == n_layers - 1)
    def _():
        o_ref[0] = _layernorm(x, lnfw_ref[...], lnfb_ref[...])  # final LayerNorm


# ------------------------------ Python wrapper ------------------------------

def _round_up(x, m):
    return (x + m - 1) // m * m


def vit_encoder(x, params, *, num_heads):
    (pos, ln1w, ln1b, wq_t, bq, wk_t, bk, wv_t, bv, wo_t, bo,
     ln2w, ln2b, w1_t, b1, w2_t, b2, lnfw, lnfb) = params
    B, S, D = x.shape
    L = ln1w.shape[0]
    M = w1_t.shape[-1]

    # Pad the sequence to a lane-dense multiple of 128; padded keys are masked with
    # an additive bias and padded rows are sliced off at the end.
    S_pad = max(_round_up(S, 128), 128)
    xp = jnp.zeros((B, S_pad, D), jnp.float32).at[:, :S, :].set(x.astype(jnp.float32))
    posp = jnp.zeros((S_pad, D), jnp.float32).at[:S, :].set(pos)
    kbias = jnp.full((1, S_pad), -1e30, jnp.float32).at[:, :S].set(0.0)

    def lspec(arr):      # per-layer streamed operand
        nd = arr.ndim
        return pl.BlockSpec((1,) + tuple(arr.shape[1:]),
                            lambda b, l: (l,) + (0,) * (nd - 1))

    def cspec(arr):      # layer-invariant operand (fetched once)
        nd = arr.ndim
        return pl.BlockSpec(tuple(arr.shape), lambda b, l: (0,) * nd)

    grid_spec = pltpu.PrefetchScalarGridSpec(
        num_scalar_prefetch=0,
        grid=(B, L),                         # layer axis trails: carried dependency
        in_specs=[
            pl.BlockSpec((1, S_pad, D), lambda b, l: (b, 0, 0)),   # x
            cspec(posp), cspec(kbias),
            lspec(ln1w), lspec(ln1b),
            lspec(wq_t), lspec(bq), lspec(wk_t), lspec(bk), lspec(wv_t), lspec(bv),
            lspec(wo_t), lspec(bo),
            lspec(ln2w), lspec(ln2b),
            lspec(w1_t), lspec(b1), lspec(w2_t), lspec(b2),
            cspec(lnfw), cspec(lnfb),
        ],
        out_specs=pl.BlockSpec((1, S_pad, D), lambda b, l: (b, 0, 0)),
        scratch_shapes=[pltpu.VMEM((S_pad, D), jnp.float32)],
    )

    # VMEM budget: double-buffered streamed per-layer weights + live activations.
    per_layer_w = sum(math.prod(a.shape[1:]) * a.dtype.itemsize
                      for a in (wq_t, wk_t, wv_t, wo_t, w1_t, w2_t))
    act_bytes = 8 * S_pad * max(D, M) * 4 + 2 * S_pad * S_pad * 4
    vmem_limit = int(min(100 * 2**20,
                         max(32 * 2**20, 2 * per_layer_w + act_bytes + 4 * 2**20)))

    out = pl.pallas_call(
        functools.partial(encoder_kernel, num_heads=num_heads),
        out_shape=jax.ShapeDtypeStruct((B, S_pad, D), jnp.float32),
        grid_spec=grid_spec,
        compiler_params=pltpu.CompilerParams(
            dimension_semantics=("parallel", "arbitrary"),
            vmem_limit_bytes=vmem_limit),
    )(xp, posp, kbias, ln1w, ln1b, wq_t, bq, wk_t, bk, wv_t, bv, wo_t, bo,
      ln2w, ln2b, w1_t, b1, w2_t, b2, lnfw, lnfb)
    return out[:, :S, :]


# ------------------------- deterministic param init -------------------------

def init_params(key, *, num_layers, seq_len, hidden, mlp_dim, num_heads):
    L, S, D, M = num_layers, seq_len, hidden, mlp_dim
    hd = D // num_heads
    ks = jax.random.split(key, 9)

    pos = 0.02 * jax.random.normal(ks[0], (S, D), jnp.float32)

    # LayerNorm affine params (slightly perturbed from ones/zeros so the check
    # exercises them); kept in f32.
    ln1w = 1.0 + 0.1 * jax.random.normal(ks[1], (L, 1, D), jnp.float32)
    ln1b = 0.05 * jax.random.normal(ks[2], (L, 1, D), jnp.float32)
    ln2w = 1.0 + 0.1 * jax.random.normal(ks[3], (L, 1, D), jnp.float32)
    ln2b = 0.05 * jax.random.normal(ks[4], (L, 1, D), jnp.float32)
    lnfw = jnp.ones((1, D), jnp.float32)
    lnfb = jnp.zeros((1, D), jnp.float32)

    def lin(k, fan_in, shape):
        return jax.random.normal(k, shape, jnp.float32) / math.sqrt(fan_in)

    kq, kk, kv, ko, k1, k2, kb = jax.random.split(ks[5], 7)
    scale = 1.0 / math.sqrt(hd)
    # Attention projections stored pre-transposed (x @ W); 1/sqrt(hd) folded into Q.
    wq = lin(kq, D, (L, D, D)) * scale
    wk = lin(kk, D, (L, D, D))
    wv = lin(kv, D, (L, D, D))
    wo = lin(ko, D, (L, D, D))
    bq = (0.02 * jax.random.normal(kb, (L, 1, D), jnp.float32)) * scale
    bk = jnp.zeros((L, 1, D), jnp.float32)
    bv = 0.02 * jax.random.normal(ks[6], (L, 1, D), jnp.float32)
    bo = jnp.zeros((L, 1, D), jnp.float32)

    # MLP: Linear(D->M), GELU, Linear(M->D)
    w1 = lin(k1, D, (L, D, M))
    b1 = 0.02 * jax.random.normal(ks[7], (L, 1, M), jnp.float32)
    w2 = lin(k2, M, (L, M, D))
    b2 = 0.02 * jax.random.normal(ks[8], (L, 1, D), jnp.float32)

    bf = lambda a: a.astype(jnp.bfloat16)   # weights are stored bf16 (MXU-native)
    return (pos, ln1w, ln1b,
            bf(wq), bq, bf(wk), bk, bf(wv), bv, bf(wo), bo,
            ln2w, ln2b, bf(w1), b1, bf(w2), b2, lnfw, lnfb)


# --------------------------- pure-JAX f32 reference ---------------------------

def reference(x, params, *, num_heads):
    (pos, ln1w, ln1b, wq_t, bq, wk_t, bk, wv_t, bv, wo_t, bo,
     ln2w, ln2b, w1_t, b1, w2_t, b2, lnfw, lnfb) = params
    f32 = lambda a: a.astype(jnp.float32)
    B, S, D = x.shape
    L = ln1w.shape[0]
    H = num_heads
    hd = D // H

    def ln(v, w, b, eps=1e-6):
        mu = jnp.mean(v, -1, keepdims=True)
        var = jnp.mean((v - mu) ** 2, -1, keepdims=True)
        return (v - mu) / jnp.sqrt(var + eps) * w + b

    x = x + pos[None]
    for l in range(L):
        xn = ln(x, ln1w[l], ln1b[l])
        q = xn @ f32(wq_t[l]) + bq[l]          # 1/sqrt(hd) already folded into wq/bq
        k = xn @ f32(wk_t[l]) + bk[l]
        v = xn @ f32(wv_t[l]) + bv[l]
        split = lambda t: t.reshape(B, S, H, hd).transpose(0, 2, 1, 3)
        qh, kh, vh = split(q), split(k), split(v)
        s = jnp.einsum('bhqd,bhkd->bhqk', qh, kh)
        p = jax.nn.softmax(s, axis=-1)
        att = jnp.einsum('bhqk,bhkd->bhqd', p, vh).transpose(0, 2, 1, 3).reshape(B, S, D)
        att = att @ f32(wo_t[l]) + bo[l]
        x = x + att
        yn = ln(x, ln2w[l], ln2b[l])
        h1 = jax.nn.gelu(yn @ f32(w1_t[l]) + b1[l], approximate=False)
        x = x + (h1 @ f32(w2_t[l]) + b2[l])
    return ln(x, lnfw, lnfb)


if __name__ == "__main__":
    # Small encoder config: batch=2, seq=8, hidden=32, heads=4, mlp=64, layers=2
    B, S, D, H, M, L = 2, 8, 32, 4, 64, 2

    key = jax.random.PRNGKey(0)
    kx, kp = jax.random.split(key)
    x = jax.random.normal(kx, (B, S, D), jnp.float32)
    params = init_params(kp, num_layers=L, seq_len=S, hidden=D, mlp_dim=M, num_heads=H)

    out = jax.block_until_ready(vit_encoder(x, params, num_heads=H))
    ref = reference(x, params, num_heads=H)

    assert out.shape == (B, S, D)
    err = float(jnp.max(jnp.abs(out - ref)))
    # Tolerance covers bf16 matmul operands, approx EUP reciprocal and tanh-GELU.
    assert jnp.allclose(out, ref, atol=5e-2, rtol=5e-2), err
    print("KERNEL_OK")
</pallas_src>

<mosaic_0001>
module attributes {stable_mosaic.version = 11 : i64} {
  func.func @encoder_kernel(%arg0: i32, %arg1: i32, %arg2: memref<1x128x32xf32, #tpu.memory_space<vmem>>, %arg3: memref<128x32xf32, #tpu.memory_space<vmem>>, %arg4: memref<1x128xf32, #tpu.memory_space<vmem>>, %arg5: memref<1x1x32xf32, #tpu.memory_space<vmem>>, %arg6: memref<1x1x32xf32, #tpu.memory_space<vmem>>, %arg7: memref<1x32x32xbf16, #tpu.memory_space<vmem>>, %arg8: memref<1x1x32xf32, #tpu.memory_space<vmem>>, %arg9: memref<1x32x32xbf16, #tpu.memory_space<vmem>>, %arg10: memref<1x1x32xf32, #tpu.memory_space<vmem>>, %arg11: memref<1x32x32xbf16, #tpu.memory_space<vmem>>, %arg12: memref<1x1x32xf32, #tpu.memory_space<vmem>>, %arg13: memref<1x32x32xbf16, #tpu.memory_space<vmem>>, %arg14: memref<1x1x32xf32, #tpu.memory_space<vmem>>, %arg15: memref<1x1x32xf32, #tpu.memory_space<vmem>>, %arg16: memref<1x1x32xf32, #tpu.memory_space<vmem>>, %arg17: memref<1x32x64xbf16, #tpu.memory_space<vmem>>, %arg18: memref<1x1x64xf32, #tpu.memory_space<vmem>>, %arg19: memref<1x64x32xbf16, #tpu.memory_space<vmem>>, %arg20: memref<1x1x32xf32, #tpu.memory_space<vmem>>, %arg21: memref<1x32xf32, #tpu.memory_space<vmem>>, %arg22: memref<1x32xf32, #tpu.memory_space<vmem>>, %arg23: memref<1x128x32xf32, #tpu.memory_space<vmem>>, %arg24: memref<128x32xf32, #tpu.memory_space<vmem>>) attributes {dimension_semantics = [#tpu.dimension_semantics<parallel>, #tpu.dimension_semantics<arbitrary>], iteration_bounds = array<i64: 2, 2>, scalar_prefetch = 0 : i64, scratch_operands = 1 : i64, tpu.core_type = #tpu.core_type<tc>, window_params = [{transform_indices = @transform_0, window_bounds = array<i64: 1, 128, 32>}, {pipeline_mode = #tpu.pipeline_mode<synchronous>, transform_indices = @transform_1, window_bounds = array<i64: 128, 32>}, {pipeline_mode = #tpu.pipeline_mode<synchronous>, transform_indices = @transform_2, window_bounds = array<i64: 1, 128>}, {transform_indices = @transform_3, window_bounds = array<i64: 1, 1, 32>}, {transform_indices = @transform_4, window_bounds = array<i64: 1, 1, 32>}, {transform_indices = @transform_5, window_bounds = array<i64: 1, 32, 32>}, {transform_indices = @transform_6, window_bounds = array<i64: 1, 1, 32>}, {transform_indices = @transform_7, window_bounds = array<i64: 1, 32, 32>}, {transform_indices = @transform_8, window_bounds = array<i64: 1, 1, 32>}, {transform_indices = @transform_9, window_bounds = array<i64: 1, 32, 32>}, {transform_indices = @transform_10, window_bounds = array<i64: 1, 1, 32>}, {transform_indices = @transform_11, window_bounds = array<i64: 1, 32, 32>}, {transform_indices = @transform_12, window_bounds = array<i64: 1, 1, 32>}, {transform_indices = @transform_13, window_bounds = array<i64: 1, 1, 32>}, {transform_indices = @transform_14, window_bounds = array<i64: 1, 1, 32>}, {transform_indices = @transform_15, window_bounds = array<i64: 1, 32, 64>}, {transform_indices = @transform_16, window_bounds = array<i64: 1, 1, 64>}, {transform_indices = @transform_17, window_bounds = array<i64: 1, 64, 32>}, {transform_indices = @transform_18, window_bounds = array<i64: 1, 1, 32>}, {pipeline_mode = #tpu.pipeline_mode<synchronous>, transform_indices = @transform_19, window_bounds = array<i64: 1, 32>}, {pipeline_mode = #tpu.pipeline_mode<synchronous>, transform_indices = @transform_20, window_bounds = array<i64: 1, 32>}, {transform_indices = @transform_21, window_bounds = array<i64: 1, 128, 32>}]} {
    %c0_i32 = arith.constant 0 : i32
    %0 = arith.cmpi eq, %arg1, %c0_i32 : i32
    %1 = arith.extui %0 : i1 to i32
    %c0_i32_0 = arith.constant 0 : i32
    %2 = arith.cmpi ne, %1, %c0_i32_0 : i32
    scf.if %2 {
      %c0_90 = arith.constant 0 : index
      %c0_91 = arith.constant 0 : index
      %c0_92 = arith.constant 0 : index
      %203 = vector.load %arg2[%c0_90, %c0_91, %c0_92] : memref<1x128x32xf32, #tpu.memory_space<vmem>>, vector<1x128x32xf32>
      %204 = vector.shape_cast %203 : vector<1x128x32xf32> to vector<128x32xf32>
      %c0_93 = arith.constant 0 : index
      %c0_94 = arith.constant 0 : index
      %205 = vector.load %arg3[%c0_93, %c0_94] : memref<128x32xf32, #tpu.memory_space<vmem>>, vector<128x32xf32>
      %206 = arith.addf %204, %205 : vector<128x32xf32>
      %c0_95 = arith.constant 0 : index
      %c0_96 = arith.constant 0 : index
      %207 = vector.load %arg24[%c0_95, %c0_96] : memref<128x32xf32, #tpu.memory_space<vmem>>, vector<128x32xf32>
      tpu.vector_store %arg24[%c0_95, %c0_96], %206 {strides = array<i32>} : memref<128x32xf32, #tpu.memory_space<vmem>>, vector<128x32xf32>,
    } else {
    }
    %c0 = arith.constant 0 : index
    %c0_1 = arith.constant 0 : index
    %3 = vector.load %arg24[%c0, %c0_1] : memref<128x32xf32, #tpu.memory_space<vmem>>, vector<128x32xf32>
    %c0_2 = arith.constant 0 : index
    %c0_3 = arith.constant 0 : index
    %c0_4 = arith.constant 0 : index
    %4 = vector.load %arg5[%c0_2, %c0_3, %c0_4] : memref<1x1x32xf32, #tpu.memory_space<vmem>>, vector<1x1x32xf32>
    %5 = vector.shape_cast %4 : vector<1x1x32xf32> to vector<1x32xf32>
    %c0_5 = arith.constant 0 : index
    %c0_6 = arith.constant 0 : index
    %c0_7 = arith.constant 0 : index
    %6 = vector.load %arg6[%c0_5, %c0_6, %c0_7] : memref<1x1x32xf32, #tpu.memory_space<vmem>>, vector<1x1x32xf32>
    %7 = vector.shape_cast %6 : vector<1x1x32xf32> to vector<1x32xf32>
    %cst = arith.constant dense<0.000000e+00> : vector<128xf32>
    %8 = vector.multi_reduction <add>, %3, %cst [1] : vector<128x32xf32> to vector<128xf32>
    %9 = vector.shape_cast %8 : vector<128xf32> to vector<128x1xf32>
    %cst_8 = arith.constant 3.200000e+01 : f32
    %10 = vector.broadcast %cst_8 : f32 to vector<128x1xf32>
    %11 = arith.divf %9, %10 : vector<128x1xf32>
    %12 = vector.broadcast %11 : vector<128x1xf32> to vector<128x32xf32>
    %13 = arith.subf %3, %12 : vector<128x32xf32>
    %14 = arith.mulf %13, %13 : vector<128x32xf32>
    %cst_9 = arith.constant dense<0.000000e+00> : vector<128xf32>
    %15 = vector.multi_reduction <add>, %14, %cst_9 [1] : vector<128x32xf32> to vector<128xf32>
    %16 = vector.shape_cast %15 : vector<128xf32> to vector<128x1xf32>
    %cst_10 = arith.constant 3.200000e+01 : f32
    %17 = vector.broadcast %cst_10 : f32 to vector<128x1xf32>
    %18 = arith.divf %16, %17 : vector<128x1xf32>
    %cst_11 = arith.constant 9.99999997E-7 : f32
    %19 = vector.broadcast %cst_11 : f32 to vector<128x1xf32>
    %20 = arith.addf %18, %19 : vector<128x1xf32>
    %21 = math.rsqrt %20 : vector<128x1xf32>
    %22 = vector.broadcast %21 : vector<128x1xf32> to vector<128x32xf32>
    %23 = arith.mulf %13, %22 : vector<128x32xf32>
    %24 = vector.broadcast %5 : vector<1x32xf32> to vector<128x32xf32>
    %25 = arith.mulf %23, %24 : vector<128x32xf32>
    %26 = vector.broadcast %7 : vector<1x32xf32> to vector<128x32xf32>
    %27 = arith.addf %25, %26 : vector<128x32xf32>
    %28 = arith.truncf %27 : vector<128x32xf32> to vector<128x32xbf16>
    %c0_12 = arith.constant 0 : index
    %c0_13 = arith.constant 0 : index
    %c0_14 = arith.constant 0 : index
    %29 = vector.load %arg7[%c0_12, %c0_13, %c0_14] : memref<1x32x32xbf16, #tpu.memory_space<vmem>>, vector<1x32x32xbf16>
    %30 = vector.shape_cast %29 : vector<1x32x32xbf16> to vector<32x32xbf16>
    %cst_15 = arith.constant dense<0.000000e+00> : vector<128x32xf32>
    %31 = tpu.matmul %28, %30, %cst_15 {dimension_numbers = #tpu.dot_dimension_numbers<[1], [0], [0], [1], [0, 0, 1, 1], [], []>} : vector<128x32xbf16>, vector<32x32xbf16>, vector<128x32xf32> -> vector<128x32xf32>
    %c0_16 = arith.constant 0 : index
    %c0_17 = arith.constant 0 : index
    %c0_18 = arith.constant 0 : index
    %32 = vector.load %arg8[%c0_16, %c0_17, %c0_18] : memref<1x1x32xf32, #tpu.memory_space<vmem>>, vector<1x1x32xf32>
    %33 = vector.shape_cast %32 : vector<1x1x32xf32> to vector<1x32xf32>
    %34 = vector.broadcast %33 : vector<1x32xf32> to vector<128x32xf32>
    %35 = arith.addf %31, %34 : vector<128x32xf32>
    %c0_19 = arith.constant 0 : index
    %c0_20 = arith.constant 0 : index
    %c0_21 = arith.constant 0 : index
    %36 = vector.load %arg9[%c0_19, %c0_20, %c0_21] : memref<1x32x32xbf16, #tpu.memory_space<vmem>>, vector<1x32x32xbf16>
    %37 = vector.shape_cast %36 : vector<1x32x32xbf16> to vector<32x32xbf16>
    %cst_22 = arith.constant dense<0.000000e+00> : vector<128x32xf32>
    %38 = tpu.matmul %28, %37, %cst_22 {dimension_numbers = #tpu.dot_dimension_numbers<[1], [0], [0], [1], [0, 0, 1, 1], [], []>} : vector<128x32xbf16>, vector<32x32xbf16>, vector<128x32xf32> -> vector<128x32xf32>
    %c0_23 = arith.constant 0 : index
    %c0_24 = arith.constant 0 : index
    %c0_25 = arith.constant 0 : index
    %39 = vector.load %arg10[%c0_23, %c0_24, %c0_25] : memref<1x1x32xf32, #tpu.memory_space<vmem>>, vector<1x1x32xf32>
    %40 = vector.shape_cast %39 : vector<1x1x32xf32> to vector<1x32xf32>
    %41 = vector.broadcast %40 : vector<1x32xf32> to vector<128x32xf32>
    %42 = arith.addf %38, %41 : vector<128x32xf32>
    %c0_26 = arith.constant 0 : index
    %c0_27 = arith.constant 0 : index
    %c0_28 = arith.constant 0 : index
    %43 = vector.load %arg11[%c0_26, %c0_27, %c0_28] : memref<1x32x32xbf16, #tpu.memory_space<vmem>>, vector<1x32x32xbf16>
    %44 = vector.shape_cast %43 : vector<1x32x32xbf16> to vector<32x32xbf16>
    %cst_29 = arith.constant dense<0.000000e+00> : vector<128x32xf32>
    %45 = tpu.matmul %28, %44, %cst_29 {dimension_numbers = #tpu.dot_dimension_numbers<[1], [0], [0], [1], [0, 0, 1, 1], [], []>} : vector<128x32xbf16>, vector<32x32xbf16>, vector<128x32xf32> -> vector<128x32xf32>
    %c0_30 = arith.constant 0 : index
    %c0_31 = arith.constant 0 : index
    %c0_32 = arith.constant 0 : index
    %46 = vector.load %arg12[%c0_30, %c0_31, %c0_32] : memref<1x1x32xf32, #tpu.memory_space<vmem>>, vector<1x1x32xf32>
    %47 = vector.shape_cast %46 : vector<1x1x32xf32> to vector<1x32xf32>
    %48 = vector.broadcast %47 : vector<1x32xf32> to vector<128x32xf32>
    %49 = arith.addf %45, %48 : vector<128x32xf32>
    %c0_33 = arith.constant 0 : index
    %c0_34 = arith.constant 0 : index
    %50 = vector.load %arg4[%c0_33, %c0_34] : memref<1x128xf32, #tpu.memory_space<vmem>>, vector<1x128xf32>
    %51 = vector.extract_strided_slice %35 {offsets = [0, 0], sizes = [128, 8], strides = [1, 1]} : vector<128x32xf32> to vector<128x8xf32>
    %52 = arith.truncf %51 : vector<128x8xf32> to vector<128x8xbf16>
    %53 = vector.extract_strided_slice %42 {offsets = [0, 0], sizes = [128, 8], strides = [1, 1]} : vector<128x32xf32> to vector<128x8xf32>
    %54 = arith.truncf %53 : vector<128x8xf32> to vector<128x8xbf16>
    %55 = vector.extract_strided_slice %49 {offsets = [0, 0], sizes = [128, 8], strides = [1, 1]} : vector<128x32xf32> to vector<128x8xf32>
    %56 = arith.truncf %55 : vector<128x8xf32> to vector<128x8xbf16>
    %cst_35 = arith.constant dense<0.000000e+00> : vector<128x128xf32>
    %57 = tpu.matmul %52, %54, %cst_35 {dimension_numbers = #tpu.dot_dimension_numbers<[1], [1], [0], [0], [0, 0, 1, 0], [], []>} : vector<128x8xbf16>, vector<128x8xbf16>, vector<128x128xf32> -> vector<128x128xf32>
    %58 = vector.broadcast %50 : vector<1x128xf32> to vector<128x128xf32>
    %59 = arith.addf %57, %58 : vector<128x128xf32>
    %cst_36 = arith.constant dense<0xFF800000> : vector<128xf32>
    %60 = vector.multi_reduction <maximumf>, %59, %cst_36 [1] : vector<128x128xf32> to vector<128xf32>
    %61 = vector.shape_cast %60 : vector<128xf32> to vector<128x1xf32>
    %62 = vector.broadcast %61 : vector<128x1xf32> to vector<128x128xf32>
    %63 = arith.subf %59, %62 : vector<128x128xf32>
    %64 = math.exp %63 : vector<128x128xf32>
    %cst_37 = arith.constant dense<0.000000e+00> : vector<128xf32>
    %65 = vector.multi_reduction <add>, %64, %cst_37 [1] : vector<128x128xf32> to vector<128xf32>
    %66 = vector.shape_cast %65 : vector<128xf32> to vector<128x1xf32>
    %67 = tpu.reciprocal %66 {approx = true} : vector<128x1xf32> -> vector<128x1xf32>
    %68 = vector.broadcast %67 : vector<128x1xf32> to vector<128x128xf32>
    %69 = arith.mulf %64, %68 : vector<128x128xf32>
    %70 = arith.truncf %69 : vector<128x128xf32> to vector<128x128xbf16>
    %cst_38 = arith.constant dense<0.000000e+00> : vector<128x8xf32>
    %71 = tpu.matmul %70, %56, %cst_38 {dimension_numbers = #tpu.dot_dimension_numbers<[1], [0], [0], [1], [0, 0, 1, 1], [], []>} : vector<128x128xbf16>, vector<128x8xbf16>, vector<128x8xf32> -> vector<128x8xf32>
    %72 = vector.extract_strided_slice %35 {offsets = [0, 8], sizes = [128, 8], strides = [1, 1]} : vector<128x32xf32> to vector<128x8xf32>
    %73 = arith.truncf %72 : vector<128x8xf32> to vector<128x8xbf16>
    %74 = vector.extract_strided_slice %42 {offsets = [0, 8], sizes = [128, 8], strides = [1, 1]} : vector<128x32xf32> to vector<128x8xf32>
    %75 = arith.truncf %74 : vector<128x8xf32> to vector<128x8xbf16>
    %76 = vector.extract_strided_slice %49 {offsets = [0, 8], sizes = [128, 8], strides = [1, 1]} : vector<128x32xf32> to vector<128x8xf32>
    %77 = arith.truncf %76 : vector<128x8xf32> to vector<128x8xbf16>
    %cst_39 = arith.constant dense<0.000000e+00> : vector<128x128xf32>
    %78 = tpu.matmul %73, %75, %cst_39 {dimension_numbers = #tpu.dot_dimension_numbers<[1], [1], [0], [0], [0, 0, 1, 0], [], []>} : vector<128x8xbf16>, vector<128x8xbf16>, vector<128x128xf32> -> vector<128x128xf32>
    %79 = vector.broadcast %50 : vector<1x128xf32> to vector<128x128xf32>
    %80 = arith.addf %78, %79 : vector<128x128xf32>
    %cst_40 = arith.constant dense<0xFF800000> : vector<128xf32>
    %81 = vector.multi_reduction <maximumf>, %80, %cst_40 [1] : vector<128x128xf32> to vector<128xf32>
    %82 = vector.shape_cast %81 : vector<128xf32> to vector<128x1xf32>
    %83 = vector.broadcast %82 : vector<128x1xf32> to vector<128x128xf32>
    %84 = arith.subf %80, %83 : vector<128x128xf32>
    %85 = math.exp %84 : vector<128x128xf32>
    %cst_41 = arith.constant dense<0.000000e+00> : vector<128xf32>
    %86 = vector.multi_reduction <add>, %85, %cst_41 [1] : vector<128x128xf32> to vector<128xf32>
    %87 = vector.shape_cast %86 : vector<128xf32> to vector<128x1xf32>
    %88 = tpu.reciprocal %87 {approx = true} : vector<128x1xf32> -> vector<128x1xf32>
    %89 = vector.broadcast %88 : vector<128x1xf32> to vector<128x128xf32>
    %90 = arith.mulf %85, %89 : vector<128x128xf32>
    %91 = arith.truncf %90 : vector<128x128xf32> to vector<128x128xbf16>
    %cst_42 = arith.constant dense<0.000000e+00> : vector<128x8xf32>
    %92 = tpu.matmul %91, %77, %cst_42 {dimension_numbers = #tpu.dot_dimension_numbers<[1], [0], [0], [1], [0, 0, 1, 1], [], []>} : vector<128x128xbf16>, vector<128x8xbf16>, vector<128x8xf32> -> vector<128x8xf32>
    %93 = vector.extract_strided_slice %35 {offsets = [0, 16], sizes = [128, 8], strides = [1, 1]} : vector<128x32xf32> to vector<128x8xf32>
    %94 = arith.truncf %93 : vector<128x8xf32> to vector<128x8xbf16>
    %95 = vector.extract_strided_slice %42 {offsets = [0, 16], sizes = [128, 8], strides = [1, 1]} : vector<128x32xf32> to vector<128x8xf32>
    %96 = arith.truncf %95 : vector<128x8xf32> to vector<128x8xbf16>
    %97 = vector.extract_strided_slice %49 {offsets = [0, 16], sizes = [128, 8], strides = [1, 1]} : vector<128x32xf32> to vector<128x8xf32>
    %98 = arith.truncf %97 : vector<128x8xf32> to vector<128x8xbf16>
    %cst_43 = arith.constant dense<0.000000e+00> : vector<128x128xf32>
    %99 = tpu.matmul %94, %96, %cst_43 {dimension_numbers = #tpu.dot_dimension_numbers<[1], [1], [0], [0], [0, 0, 1, 0], [], []>} : vector<128x8xbf16>, vector<128x8xbf16>, vector<128x128xf32> -> vector<128x128xf32>
    %100 = vector.broadcast %50 : vector<1x128xf32> to vector<128x128xf32>
    %101 = arith.addf %99, %100 : vector<128x128xf32>
    %cst_44 = arith.constant dense<0xFF800000> : vector<128xf32>
    %102 = vector.multi_reduction <maximumf>, %101, %cst_44 [1] : vector<128x128xf32> to vector<128xf32>
    %103 = vector.shape_cast %102 : vector<128xf32> to vector<128x1xf32>
    %104 = vector.broadcast %103 : vector<128x1xf32> to vector<128x128xf32>
    %105 = arith.subf %101, %104 : vector<128x128xf32>
    %106 = math.exp %105 : vector<128x128xf32>
    %cst_45 = arith.constant dense<0.000000e+00> : vector<128xf32>
    %107 = vector.multi_reduction <add>, %106, %cst_45 [1] : vector<128x128xf32> to vector<128xf32>
    %108 = vector.shape_cast %107 : vector<128xf32> to vector<128x1xf32>
    %109 = tpu.reciprocal %108 {approx = true} : vector<128x1xf32> -> vector<128x1xf32>
    %110 = vector.broadcast %109 : vector<128x1xf32> to vector<128x128xf32>
    %111 = arith.mulf %106, %110 : vector<128x128xf32>
    %112 = arith.truncf %111 : vector<128x128xf32> to vector<128x128xbf16>
    %cst_46 = arith.constant dense<0.000000e+00> : vector<128x8xf32>
    %113 = tpu.matmul %112, %98, %cst_46 {dimension_numbers = #tpu.dot_dimension_numbers<[1], [0], [0], [1], [0, 0, 1, 1], [], []>} : vector<128x128xbf16>, vector<128x8xbf16>, vector<128x8xf32> -> vector<128x8xf32>
    %114 = vector.extract_strided_slice %35 {offsets = [0, 24], sizes = [128, 8], strides = [1, 1]} : vector<128x32xf32> to vector<128x8xf32>
    %115 = arith.truncf %114 : vector<128x8xf32> to vector<128x8xbf16>
    %116 = vector.extract_strided_slice %42 {offsets = [0, 24], sizes = [128, 8], strides = [1, 1]} : vector<128x32xf32> to vector<128x8xf32>
    %117 = arith.truncf %116 : vector<128x8xf32> to vector<128x8xbf16>
    %118 = vector.extract_strided_slice %49 {offsets = [0, 24], sizes = [128, 8], strides = [1, 1]} : vector<128x32xf32> to vector<128x8xf32>
    %119 = arith.truncf %118 : vector<128x8xf32> to vector<128x8xbf16>
    %cst_47 = arith.constant dense<0.000000e+00> : vector<128x128xf32>
    %120 = tpu.matmul %115, %117, %cst_47 {dimension_numbers = #tpu.dot_dimension_numbers<[1], [1], [0], [0], [0, 0, 1, 0], [], []>} : vector<128x8xbf16>, vector<128x8xbf16>, vector<128x128xf32> -> vector<128x128xf32>
    %121 = vector.broadcast %50 : vector<1x128xf32> to vector<128x128xf32>
    %122 = arith.addf %120, %121 : vector<128x128xf32>
    %cst_48 = arith.constant dense<0xFF800000> : vector<128xf32>
    %123 = vector.multi_reduction <maximumf>, %122, %cst_48 [1] : vector<128x128xf32> to vector<128xf32>
    %124 = vector.shape_cast %123 : vector<128xf32> to vector<128x1xf32>
    %125 = vector.broadcast %124 : vector<128x1xf32> to vector<128x128xf32>
    %126 = arith.subf %122, %125 : vector<128x128xf32>
    %127 = math.exp %126 : vector<128x128xf32>
    %cst_49 = arith.constant dense<0.000000e+00> : vector<128xf32>
    %128 = vector.multi_reduction <add>, %127, %cst_49 [1] : vector<128x128xf32> to vector<128xf32>
    %129 = vector.shape_cast %128 : vector<128xf32> to vector<128x1xf32>
    %130 = tpu.reciprocal %129 {approx = true} : vector<128x1xf32> -> vector<128x1xf32>
    %131 = vector.broadcast %130 : vector<128x1xf32> to vector<128x128xf32>
    %132 = arith.mulf %127, %131 : vector<128x128xf32>
    %133 = arith.truncf %132 : vector<128x128xf32> to vector<128x128xbf16>
    %cst_50 = arith.constant dense<0.000000e+00> : vector<128x8xf32>
    %134 = tpu.matmul %133, %119, %cst_50 {dimension_numbers = #tpu.dot_dimension_numbers<[1], [0], [0], [1], [0, 0, 1, 1], [], []>} : vector<128x128xbf16>, vector<128x8xbf16>, vector<128x8xf32> -> vector<128x8xf32>
    %135 = tpu.concatenate %71, %92, %113, %134 in 1 : vector<128x8xf32>, vector<128x8xf32>, vector<128x8xf32>, vector<128x8xf32> -> vector<128x32xf32>
    %136 = arith.truncf %135 : vector<128x32xf32> to vector<128x32xbf16>
    %c0_51 = arith.constant 0 : index
    %c0_52 = arith.constant 0 : index
    %c0_53 = arith.constant 0 : index
    %137 = vector.load %arg13[%c0_51, %c0_52, %c0_53] : memref<1x32x32xbf16, #tpu.memory_space<vmem>>, vector<1x32x32xbf16>
    %138 = vector.shape_cast %137 : vector<1x32x32xbf16> to vector<32x32xbf16>
    %cst_54 = arith.constant dense<0.000000e+00> : vector<128x32xf32>
    %139 = tpu.matmul %136, %138, %cst_54 {dimension_numbers = #tpu.dot_dimension_numbers<[1], [0], [0], [1], [0, 0, 1, 1], [], []>} : vector<128x32xbf16>, vector<32x32xbf16>, vector<128x32xf32> -> vector<128x32xf32>
    %c0_55 = arith.constant 0 : index
    %c0_56 = arith.constant 0 : index
    %c0_57 = arith.constant 0 : index
    %140 = vector.load %arg14[%c0_55, %c0_56, %c0_57] : memref<1x1x32xf32, #tpu.memory_space<vmem>>, vector<1x1x32xf32>
    %141 = vector.shape_cast %140 : vector<1x1x32xf32> to vector<1x32xf32>
    %142 = vector.broadcast %141 : vector<1x32xf32> to vector<128x32xf32>
    %143 = arith.addf %139, %142 : vector<128x32xf32>
    %144 = arith.addf %3, %143 : vector<128x32xf32>
    %c0_58 = arith.constant 0 : index
    %c0_59 = arith.constant 0 : index
    %c0_60 = arith.constant 0 : index
    %145 = vector.load %arg15[%c0_58, %c0_59, %c0_60] : memref<1x1x32xf32, #tpu.memory_space<vmem>>, vector<1x1x32xf32>
    %146 = vector.shape_cast %145 : vector<1x1x32xf32> to vector<1x32xf32>
    %c0_61 = arith.constant 0 : index
    %c0_62 = arith.constant 0 : index
    %c0_63 = arith.constant 0 : index
    %147 = vector.load %arg16[%c0_61, %c0_62, %c0_63] : memref<1x1x32xf32, #tpu.memory_space<vmem>>, vector<1x1x32xf32>
    %148 = vector.shape_cast %147 : vector<1x1x32xf32> to vector<1x32xf32>
    %cst_64 = arith.constant dense<0.000000e+00> : vector<128xf32>
    %149 = vector.multi_reduction <add>, %144, %cst_64 [1] : vector<128x32xf32> to vector<128xf32>
    %150 = vector.shape_cast %149 : vector<128xf32> to vector<128x1xf32>
    %cst_65 = arith.constant 3.200000e+01 : f32
    %151 = vector.broadcast %cst_65 : f32 to vector<128x1xf32>
    %152 = arith.divf %150, %151 : vector<128x1xf32>
    %153 = vector.broadcast %152 : vector<128x1xf32> to vector<128x32xf32>
    %154 = arith.subf %144, %153 : vector<128x32xf32>
    %155 = arith.mulf %154, %154 : vector<128x32xf32>
    %cst_66 = arith.constant dense<0.000000e+00> : vector<128xf32>
    %156 = vector.multi_reduction <add>, %155, %cst_66 [1] : vector<128x32xf32> to vector<128xf32>
    %157 = vector.shape_cast %156 : vector<128xf32> to vector<128x1xf32>
    %cst_67 = arith.constant 3.200000e+01 : f32
    %158 = vector.broadcast %cst_67 : f32 to vector<128x1xf32>
    %159 = arith.divf %157, %158 : vector<128x1xf32>
    %cst_68 = arith.constant 9.99999997E-7 : f32
    %160 = vector.broadcast %cst_68 : f32 to vector<128x1xf32>
    %161 = arith.addf %159, %160 : vector<128x1xf32>
    %162 = math.rsqrt %161 : vector<128x1xf32>
    %163 = vector.broadcast %162 : vector<128x1xf32> to vector<128x32xf32>
    %164 = arith.mulf %154, %163 : vector<128x32xf32>
    %165 = vector.broadcast %146 : vector<1x32xf32> to vector<128x32xf32>
    %166 = arith.mulf %164, %165 : vector<128x32xf32>
    %167 = vector.broadcast %148 : vector<1x32xf32> to vector<128x32xf32>
    %168 = arith.addf %166, %167 : vector<128x32xf32>
    %169 = arith.truncf %168 : vector<128x32xf32> to vector<128x32xbf16>
    %c0_69 = arith.constant 0 : index
    %c0_70 = arith.constant 0 : index
    %c0_71 = arith.constant 0 : index
    %170 = vector.load %arg17[%c0_69, %c0_70, %c0_71] : memref<1x32x64xbf16, #tpu.memory_space<vmem>>, vector<1x32x64xbf16>
    %171 = vector.shape_cast %170 : vector<1x32x64xbf16> to vector<32x64xbf16>
    %cst_72 = arith.constant dense<0.000000e+00> : vector<128x64xf32>
    %172 = tpu.matmul %169, %171, %cst_72 {dimension_numbers = #tpu.dot_dimension_numbers<[1], [0], [0], [1], [0, 0, 1, 1], [], []>} : vector<128x32xbf16>, vector<32x64xbf16>, vector<128x64xf32> -> vector<128x64xf32>
    %c0_73 = arith.constant 0 : index
    %c0_74 = arith.constant 0 : index
    %c0_75 = arith.constant 0 : index
    %173 = vector.load %arg18[%c0_73, %c0_74, %c0_75] : memref<1x1x64xf32, #tpu.memory_space<vmem>>, vector<1x1x64xf32>
    %174 = vector.shape_cast %173 : vector<1x1x64xf32> to vector<1x64xf32>
    %175 = vector.broadcast %174 : vector<1x64xf32> to vector<128x64xf32>
    %176 = arith.addf %172, %175 : vector<128x64xf32>
    %cst_76 = arith.constant 5.000000e-01 : f32
    %177 = vector.broadcast %cst_76 : f32 to vector<128x64xf32>
    %178 = arith.mulf %177, %176 : vector<128x64xf32>
    %cst_77 = arith.constant 4.471500e-02 : f32
    %179 = vector.broadcast %cst_77 : f32 to vector<128x64xf32>
    %180 = arith.mulf %179, %176 : vector<128x64xf32>
    %181 = arith.mulf %180, %176 : vector<128x64xf32>
    %182 = arith.mulf %181, %176 : vector<128x64xf32>
    %183 = arith.addf %176, %182 : vector<128x64xf32>
    %cst_78 = arith.constant 0.797884583 : f32
    %184 = vector.broadcast %cst_78 : f32 to vector<128x64xf32>
    %185 = arith.mulf %184, %183 : vector<128x64xf32>
    %186 = math.tanh %185 : vector<128x64xf32>
    %cst_79 = arith.constant 1.000000e+00 : f32
    %187 = vector.broadcast %cst_79 : f32 to vector<128x64xf32>
    %188 = arith.addf %187, %186 : vector<128x64xf32>
    %189 = arith.mulf %178, %188 : vector<128x64xf32>
    %190 = arith.truncf %189 : vector<128x64xf32> to vector<128x64xbf16>
    %c0_80 = arith.constant 0 : index
    %c0_81 = arith.constant 0 : index
    %c0_82 = arith.constant 0 : index
    %191 = vector.load %arg19[%c0_80, %c0_81, %c0_82] : memref<1x64x32xbf16, #tpu.memory_space<vmem>>, vector<1x64x32xbf16>
    %192 = vector.shape_cast %191 : vector<1x64x32xbf16> to vector<64x32xbf16>
    %cst_83 = arith.constant dense<0.000000e+00> : vector<128x32xf32>
    %193 = tpu.matmul %190, %192, %cst_83 {dimension_numbers = #tpu.dot_dimension_numbers<[1], [0], [0], [1], [0, 0, 1, 1], [], []>} : vector<128x64xbf16>, vector<64x32xbf16>, vector<128x32xf32> -> vector<128x32xf32>
    %c0_84 = arith.constant 0 : index
    %c0_85 = arith.constant 0 : index
    %c0_86 = arith.constant 0 : index
    %194 = vector.load %arg20[%c0_84, %c0_85, %c0_86] : memref<1x1x32xf32, #tpu.memory_space<vmem>>, vector<1x1x32xf32>
    %195 = vector.shape_cast %194 : vector<1x1x32xf32> to vector<1x32xf32>
    %196 = vector.broadcast %195 : vector<1x32xf32> to vector<128x32xf32>
    %197 = arith.addf %193, %196 : vector<128x32xf32>
    %198 = arith.addf %144, %197 : vector<128x32xf32>
    %c0_87 = arith.constant 0 : index
    %c0_88 = arith.constant 0 : index
    %199 = vector.load %arg24[%c0_87, %c0_88] : memref<128x32xf32, #tpu.memory_space<vmem>>, vector<128x32xf32>
    tpu.vector_store %arg24[%c0_87, %c0_88], %198 {strides = array<i32>} : memref<128x32xf32, #tpu.memory_space<vmem>>, vector<128x32xf32>,
    %c1_i32 = arith.constant 1 : i32
    %200 = arith.cmpi eq, %arg1, %c1_i32 : i32
    %201 = arith.extui %200 : i1 to i32
    %c0_i32_89 = arith.constant 0 : i32
    %202 = arith.cmpi ne, %201, %c0_i32_89 : i32
    scf.if %202 {
      %c0_90 = arith.constant 0 : index
      %c0_91 = arith.constant 0 : index
      %203 = vector.load %arg21[%c0_90, %c0_91] : memref<1x32xf32, #tpu.memory_space<vmem>>, vector<1x32xf32>
      %c0_92 = arith.constant 0 : index
      %c0_93 = arith.constant 0 : index
      %204 = vector.load %arg22[%c0_92, %c0_93] : memref<1x32xf32, #tpu.memory_space<vmem>>, vector<1x32xf32>
      %cst_94 = arith.constant dense<0.000000e+00> : vector<128xf32>
      %205 = vector.multi_reduction <add>, %198, %cst_94 [1] : vector<128x32xf32> to vector<128xf32>
      %206 = vector.shape_cast %205 : vector<128xf32> to vector<128x1xf32>
      %cst_95 = arith.constant 3.200000e+01 : f32
      %207 = vector.broadcast %cst_95 : f32 to vector<128x1xf32>
      %208 = arith.divf %206, %207 : vector<128x1xf32>
      %209 = vector.broadcast %208 : vector<128x1xf32> to vector<128x32xf32>
      %210 = arith.subf %198, %209 : vector<128x32xf32>
      %211 = arith.mulf %210, %210 : vector<128x32xf32>
      %cst_96 = arith.constant dense<0.000000e+00> : vector<128xf32>
      %212 = vector.multi_reduction <add>, %211, %cst_96 [1] : vector<128x32xf32> to vector<128xf32>
      %213 = vector.shape_cast %212 : vector<128xf32> to vector<128x1xf32>
      %cst_97 = arith.constant 3.200000e+01 : f32
      %214 = vector.broadcast %cst_97 : f32 to vector<128x1xf32>
      %215 = arith.divf %213, %214 : vector<128x1xf32>
      %cst_98 = arith.constant 9.99999997E-7 : f32
      %216 = vector.broadcast %cst_98 : f32 to vector<128x1xf32>
      %217 = arith.addf %215, %216 : vector<128x1xf32>
      %218 = math.rsqrt %217 : vector<128x1xf32>
      %219 = vector.broadcast %218 : vector<128x1xf32> to vector<128x32xf32>
      %220 = arith.mulf %210, %219 : vector<128x32xf32>
      %221 = vector.broadcast %203 : vector<1x32xf32> to vector<128x32xf32>
      %222 = arith.mulf %220, %221 : vector<128x32xf32>
      %223 = vector.broadcast %204 : vector<1x32xf32> to vector<128x32xf32>
      %224 = arith.addf %222, %223 : vector<128x32xf32>
      %c0_99 = arith.constant 0 : index
      %c0_100 = arith.constant 0 : index
      %c0_101 = arith.constant 0 : index
      %225 = vector.load %arg23[%c0_99, %c0_100, %c0_101] : memref<1x128x32xf32, #tpu.memory_space<vmem>>, vector<1x128x32xf32>
      %226 = vector.shape_cast %225 : vector<1x128x32xf32> to vector<128x32xf32>
      %227 = vector.shape_cast %224 : vector<128x32xf32> to vector<1x128x32xf32>
      tpu.vector_store %arg23[%c0_99, %c0_100, %c0_101], %227 {strides = array<i32>} : memref<1x128x32xf32, #tpu.memory_space<vmem>>, vector<1x128x32xf32>,
    } else {
    }
    return
  }
  func.func @transform_0(%arg0: i32, %arg1: i32) -> (i32, i32, i32) {
    %c0_i32 = arith.constant 0 : i32
    %c0_i32_0 = arith.constant 0 : i32
    %c0_i32_1 = arith.constant 0 : i32
    return %arg0, %c0_i32, %c0_i32_0 : i32, i32, i32
  }
  func.func @transform_1(%arg0: i32, %arg1: i32) -> (i32, i32) {
    %c0_i32 = arith.constant 0 : i32
    %c0_i32_0 = arith.constant 0 : i32
    %c0_i32_1 = arith.constant 0 : i32
    return %c0_i32, %c0_i32_0 : i32, i32
  }
  func.func @transform_2(%arg0: i32, %arg1: i32) -> (i32, i32) {
    %c0_i32 = arith.constant 0 : i32
    %c0_i32_0 = arith.constant 0 : i32
    %c0_i32_1 = arith.constant 0 : i32
    return %c0_i32, %c0_i32_0 : i32, i32
  }
  func.func @transform_3(%arg0: i32, %arg1: i32) -> (i32, i32, i32) {
    %c0_i32 = arith.constant 0 : i32
    %c0_i32_0 = arith.constant 0 : i32
    %c0_i32_1 = arith.constant 0 : i32
    return %arg1, %c0_i32, %c0_i32_0 : i32, i32, i32
  }
  func.func @transform_4(%arg0: i32, %arg1: i32) -> (i32, i32, i32) {
    %c0_i32 = arith.constant 0 : i32
    %c0_i32_0 = arith.constant 0 : i32
    %c0_i32_1 = arith.constant 0 : i32
    return %arg1, %c0_i32, %c0_i32_0 : i32, i32, i32
  }
  func.func @transform_5(%arg0: i32, %arg1: i32) -> (i32, i32, i32) {
    %c0_i32 = arith.constant 0 : i32
    %c0_i32_0 = arith.constant 0 : i32
    %c0_i32_1 = arith.constant 0 : i32
    return %arg1, %c0_i32, %c0_i32_0 : i32, i32, i32
  }
  func.func @transform_6(%arg0: i32, %arg1: i32) -> (i32, i32, i32) {
    %c0_i32 = arith.constant 0 : i32
    %c0_i32_0 = arith.constant 0 : i32
    %c0_i32_1 = arith.constant 0 : i32
    return %arg1, %c0_i32, %c0_i32_0 : i32, i32, i32
  }
  func.func @transform_7(%arg0: i32, %arg1: i32) -> (i32, i32, i32) {
    %c0_i32 = arith.constant 0 : i32
    %c0_i32_0 = arith.constant 0 : i32
    %c0_i32_1 = arith.constant 0 : i32
    return %arg1, %c0_i32, %c0_i32_0 : i32, i32, i32
  }
  func.func @transform_8(%arg0: i32, %arg1: i32) -> (i32, i32, i32) {
    %c0_i32 = arith.constant 0 : i32
    %c0_i32_0 = arith.constant 0 : i32
    %c0_i32_1 = arith.constant 0 : i32
    return %arg1, %c0_i32, %c0_i32_0 : i32, i32, i32
  }
  func.func @transform_9(%arg0: i32, %arg1: i32) -> (i32, i32, i32) {
    %c0_i32 = arith.constant 0 : i32
    %c0_i32_0 = arith.constant 0 : i32
    %c0_i32_1 = arith.constant 0 : i32
    return %arg1, %c0_i32, %c0_i32_0 : i32, i32, i32
  }
  func.func @transform_10(%arg0: i32, %arg1: i32) -> (i32, i32, i32) {
    %c0_i32 = arith.constant 0 : i32
    %c0_i32_0 = arith.constant 0 : i32
    %c0_i32_1 = arith.constant 0 : i32
    return %arg1, %c0_i32, %c0_i32_0 : i32, i32, i32
  }
  func.func @transform_11(%arg0: i32, %arg1: i32) -> (i32, i32, i32) {
    %c0_i32 = arith.constant 0 : i32
    %c0_i32_0 = arith.constant 0 : i32
    %c0_i32_1 = arith.constant 0 : i32
    return %arg1, %c0_i32, %c0_i32_0 : i32, i32, i32
  }
  func.func @transform_12(%arg0: i32, %arg1: i32) -> (i32, i32, i32) {
    %c0_i32 = arith.constant 0 : i32
    %c0_i32_0 = arith.constant 0 : i32
    %c0_i32_1 = arith.constant 0 : i32
    return %arg1, %c0_i32, %c0_i32_0 : i32, i32, i32
  }
  func.func @transform_13(%arg0: i32, %arg1: i32) -> (i32, i32, i32) {
    %c0_i32 = arith.constant 0 : i32
    %c0_i32_0 = arith.constant 0 : i32
    %c0_i32_1 = arith.constant 0 : i32
    return %arg1, %c0_i32, %c0_i32_0 : i32, i32, i32
  }
  func.func @transform_14(%arg0: i32, %arg1: i32) -> (i32, i32, i32) {
    %c0_i32 = arith.constant 0 : i32
    %c0_i32_0 = arith.constant 0 : i32
    %c0_i32_1 = arith.constant 0 : i32
    return %arg1, %c0_i32, %c0_i32_0 : i32, i32, i32
  }
  func.func @transform_15(%arg0: i32, %arg1: i32) -> (i32, i32, i32) {
    %c0_i32 = arith.constant 0 : i32
    %c0_i32_0 = arith.constant 0 : i32
    %c0_i32_1 = arith.constant 0 : i32
    return %arg1, %c0_i32, %c0_i32_0 : i32, i32, i32
  }
  func.func @transform_16(%arg0: i32, %arg1: i32) -> (i32, i32, i32) {
    %c0_i32 = arith.constant 0 : i32
    %c0_i32_0 = arith.constant 0 : i32
    %c0_i32_1 = arith.constant 0 : i32
    return %arg1, %c0_i32, %c0_i32_0 : i32, i32, i32
  }
  func.func @transform_17(%arg0: i32, %arg1: i32) -> (i32, i32, i32) {
    %c0_i32 = arith.constant 0 : i32
    %c0_i32_0 = arith.constant 0 : i32
    %c0_i32_1 = arith.constant 0 : i32
    return %arg1, %c0_i32, %c0_i32_0 : i32, i32, i32
  }
  func.func @transform_18(%arg0: i32, %arg1: i32) -> (i32, i32, i32) {
    %c0_i32 = arith.constant 0 : i32
    %c0_i32_0 = arith.constant 0 : i32
    %c0_i32_1 = arith.constant 0 : i32
    return %arg1, %c0_i32, %c0_i32_0 : i32, i32, i32
  }
  func.func @transform_19(%arg0: i32, %arg1: i32) -> (i32, i32) {
    %c0_i32 = arith.constant 0 : i32
    %c0_i32_0 = arith.constant 0 : i32
    %c0_i32_1 = arith.constant 0 : i32
    return %c0_i32, %c0_i32_0 : i32, i32
  }
  func.func @transform_20(%arg0: i32, %arg1: i32) -> (i32, i32) {
    %c0_i32 = arith.constant 0 : i32
    %c0_i32_0 = arith.constant 0 : i32
    %c0_i32_1 = arith.constant 0 : i32
    return %c0_i32, %c0_i32_0 : i32, i32
  }
  func.func @transform_21(%arg0: i32, %arg1: i32) -> (i32, i32, i32) {
    %c0_i32 = arith.constant 0 : i32
    %c0_i32_0 = arith.constant 0 : i32
    %c0_i32_1 = arith.constant 0 : i32
    return %arg0, %c0_i32, %c0_i32_0 : i32, i32, i32
  }
}

</mosaic_0001>

<bundles_post_ra>
// kernel: tpu_custom_call.1
= control target key start
LH: loop header
LB: loop body
LE: loop exit
PB: predicated region body
PF: predicated region fallthrough
CT: control target
= control target key end

     0   :  { %s6607_s25 = smov 0   ;;  %s6609_s26 = smov 0   ;;  %s8936_s0 = inlined_call_operand.vmem [shape: f32[2,128,32], index: 0, kind: input, shape index: {}]   ;;  %s8937_s1 = inlined_call_operand.vmem [shape: f32[128,32], index: 1, kind: input, shape index: {}]   ;;  %s8938_s2 = inlined_call_operand.vmem [shape: f32[1,128], index: 2, kind: input, shape index: {}]   ;;  %s8939_s3 = inlined_call_operand.vmem [shape: f32[2,1,32], index: 3, kind: input, shape index: {}]   ;;  %s8940_s4 = inlined_call_operand.vmem [shape: f32[2,1,32], index: 4, kind: input, shape index: {}]   ;;  %s8941_s5 = inlined_call_operand.vmem [shape: bf16[2,32,32], index: 5, kind: input, shape index: {}]   ;;  %s8942_s6 = inlined_call_operand.vmem [shape: f32[2,1,32], index: 6, kind: input, shape index: {}]   ;;  %s8943_s7 = inlined_call_operand.vmem [shape: bf16[2,32,32], index: 7, kind: input, shape index: {}]   ;;  %s8944_s8 = inlined_call_operand.vmem [shape: f32[2,1,32], index: 8, kind: input, shape index: {}]   ;;  %s8945_s9 = inlined_call_operand.vmem [shape: bf16[2,32,32], index: 9, kind: input, shape index: {}]   ;;  %s8946_s10 = inlined_call_operand.vmem [shape: f32[2,1,32], index: 10, kind: input, shape index: {}]   ;;  %s8947_s11 = inlined_call_operand.vmem [shape: bf16[2,32,32], index: 11, kind: input, shape index: {}]   ;;  %s8948_s12 = inlined_call_operand.vmem [shape: f32[2,1,32], index: 12, kind: input, shape index: {}]   ;;  %s8949_s13 = inlined_call_operand.vmem [shape: f32[2,1,32], index: 13, kind: input, shape index: {}]   ;;  %s8950_s14 = inlined_call_operand.vmem [shape: f32[2,1,32], index: 14, kind: input, shape index: {}]   ;;  %s8951_s15 = inlined_call_operand.vmem [shape: bf16[2,32,64], index: 15, kind: input, shape index: {}]   ;;  %s8952_s16 = inlined_call_operand.vmem [shape: f32[2,1,64], index: 16, kind: input, shape index: {}]   ;;  %s8953_s17 = inlined_call_operand.vmem [shape: bf16[2,64,32], index: 17, kind: input, shape index: {}]   ;;  %s8954_s18 = inlined_call_operand.vmem [shape: f32[2,1,32], index: 18, kind: input, shape index: {}]   ;;  %s8955_s19 = inlined_call_operand.vmem [shape: f32[1,32], index: 19, kind: input, shape index: {}]   ;;  %s8956_s20 = inlined_call_operand.vmem [shape: f32[1,32], index: 20, kind: input, shape index: {}]   ;;  %s8957_s21 = inlined_call_operand.vmem [shape: f32[2,128,32], index: 21, kind: output, shape index: {}]  }
   0x1   :  { %8972 = sst [smem:[#allocation33_spill]] %s8936_s0  ;;  %s6611_s27 = smov 0  }
   0x2   :  { %8973 = sst [smem:[#allocation34_spill]] %s8937_s1 }
   0x3   :  { %8974 = sst [smem:[#allocation35_spill]] %s8938_s2  ;;  %s6605_s2 = smov 0  }
   0x4   :  { %8975 = sst [smem:[#allocation36_spill]] %s8939_s3  ;;  %s6613_s3 = smov 0  }
   0x5   :  { %8976 = sst [smem:[#allocation37_spill]] %s8940_s4 }
   0x6   :  { %8977 = sst [smem:[#allocation38_spill]] %s8941_s5 }
   0x7   :  { %8978 = sst [smem:[#allocation39_spill]] %s8943_s7 }
   0x8   :  { %8979 = sst [smem:[#allocation40_spill]] %s8945_s9 }
   0x9   :  { %8980 = sst [smem:[#allocation41_spill]] %s8947_s11 }
   0xa   :  { %8981 = sst [smem:[#allocation42_spill]] %s8948_s12 }
   0xb   :  { %8982 = sst [smem:[#allocation43_spill]] %s8949_s13 }
   0xc   :  { %8983 = sst [smem:[#allocation44_spill]] %s8953_s17 }
   0xd   :  { %8984 = sst [smem:[#allocation45_spill]] %s8954_s18 }
   0xe   :  { %8985 = sst [smem:[#allocation46_spill]] %s8955_s19 }
   0xf   :  { %8986 = sst [smem:[#allocation47_spill]] %s8956_s20 }
  0x10   :  { %8987 = sst [smem:[#allocation48_spill]] %s8957_s21 }
  0x11 LB: > { %8988 = sst [smem:[#allocation3_spill]] %s6471_s2  ;;  %s40_s28 = sadd.s32 1, %s6479_s26  ;;  %s6487_s3 = sphi %s6613_s3, %s31_s3   ;;  %s6483_s27 = sphi %s6611_s27, %s9089_s27   ;;  %s6479_s26 = sphi %s6609_s26, %s9088_s26   ;;  %s6475_s25 = sphi %s6607_s25, %s9087_s25   ;;  %s6471_s2 = sphi %s6605_s2, %s9086_s2  }
  0x12   : > { %8989 = sst [smem:[#allocation4_spill]] %s6479_s26  ;;  %s43_s29 = sadd.s32 1, %s6483_s27 }
  0x13   : > { %8990 = sst [smem:[#allocation5_spill]] %s6483_s27  ;;  %p41_p0 = scmp.ge.s32.totalorder %s40_s28, 2 }
  0x14   : > { %8991 = sst [smem:[#allocation6_spill]] %s6487_s3  ;;  %p5130_p1 = scmp.ge.s32.totalorder %s6487_s3, 1 }
  0x15   : > { %p739_p2 = scmp.lt.s32.totalorder %s6487_s3, 5  ;;  %s9091_s28 = smov (%p41_p0, %s40_s28), 0 }
  0x16   : > { %8992 = sst [smem:[#allocation7_spill]] %s9091_s28  ;;  %s9093_s29 = smov (!%p41_p0, %s43_s29), %s6483_s27 }
  0x17   : > { %p740_p3 = pnand %p5130_p1, %p739_p2  ;;  %p45_p4 = scmp.ge.s32.totalorder %s9093_s29, 2 }
  0x19   : > { %s9095_s29 = smov (%p45_p4, %s9093_s29), 0  ;;  %743 = sbr.rel (%p740_p3) target bundleno = 4847 (0x12ef), region = 104 }
  0x1a   : > { %8993 = sst [smem:[#allocation8_spill]] %s9095_s29 }
  0x20   : > { %p859_p5 = scmp.lt.s32.totalorder %s6475_s25, 1  ;;  %p864_p6 = scmp.lt.s32.totalorder %s6471_s2, 1 }
  0x21   : > { %s8994_s22 = sld [smem:[#allocation33_spill]]  ;;  %s8999_s7 = sld [smem:[#allocation39_spill]] }
  0x22   : > { %s9097_s25 = smov (!%p859_p5, %s6475_s25), 1  ;;  %s9000_s9 = sld [smem:[#allocation40_spill]] }
  0x23   : > { %s6639_s0 = scalar_select %p864_p6, %s6471_s2, 1 }
  0x24   : > { %s5258_s4 = sshll.u32 %s9097_s25, 7  ;;  %s8998_s25 = sld [smem:[#allocation38_spill]] }
  0x25   : > { %s5259_s19 = sshll.u32 %s6639_s0, 4  ;;  %s9001_s11 = sld [smem:[#allocation41_spill]] }
  0x26   : > { %s6702_s2 = scalar_lea.vmem %s8951_s15, %s5259_s19  ;;  %s9004_s28 = sld [smem:[#allocation45_spill]] }
  0x27   : > { %s6644_s23 = scalar_lea.vmem %s8994_s22, %s5258_s4  ;;  %s6667_s1 = scalar_lea.vmem %s8999_s7, %s5259_s19 }
  0x28   : > { %8995 = sst [smem:[#allocation9_spill]] %s6644_s23  ;;  %s6676_s20 = scalar_lea.vmem %s9000_s9, %s5259_s19 }
  0x29   : > { %s9005_s26 = sld [smem:[#allocation44_spill]]  ;;  %s9006_s7 = sld [smem:[#allocation48_spill]] }
  0x2a   : > { %s6658_s17 = scalar_lea.vmem %s8998_s25, %s5259_s19  ;;  %s915_s25 = scalar_lea.vmem %s8952_s16, %s6639_s0 }
  0x2b   : > { %s6685_s22 = scalar_lea.vmem %s9001_s11, %s5259_s19  ;;  %s5264_s11 = sshll.u32 %s6639_s0, 5 }
  0x2c   : > { %s923_s12 = scalar_lea.vmem %s9004_s28, %s6639_s0  ;;  %s9007_s19 = sld [smem:[#allocation3_spill]] }
  0x2f   : > { %s6716_s13 = scalar_lea.vmem %s9005_s26, %s5264_s11  ;;  %s6721_s9 = scalar_lea.vmem %s9006_s7, %s5258_s4 }
  0x32   : > { %p5147_p7 = scmp.ne.s32.totalorder %s9007_s19, 0 }
  0x33   : > { %s9008_s21 = sld [smem:[#allocation9_spill]] (!%p5147_p7)  ;;  %vm982_vm0 = vcmask (!%p5147_p7), 261120  }
  0x34   : > { %933 = sbr.rel (%p5147_p7) target bundleno = 73 (0x49), region = 108  ;;  %s9009_s5 = sld [smem:[#allocation34_spill]] (!%p5147_p7) }
  0x39   : > { %v934_v0 = vld [vmem:[%s9008_s21] sm:$0xff] (!%p5147_p7)  ;;  %v935_v2 = vld [vmem:[%s9008_s21 + $0x8] sm:$0xff] (!%p5147_p7)  ;;  %v936_v5 = vld [vmem:[%s9008_s21 + $0x10] sm:$0xff] (!%p5147_p7) }
  0x3a   : > { %v950_v1 = vld [vmem:[%s9009_s5] sm:$0xff] (!%p5147_p7)  ;;  %v951_v4 = vld [vmem:[%s9009_s5 + $0x8] sm:$0xff] (!%p5147_p7)  ;;  %v952_v6 = vld [vmem:[%s9009_s5 + $0x10] sm:$0xff] (!%p5147_p7) }
  0x3b   : > { %v966_v3 = vadd.f32 %v950_v1, %v934_v0  ;;  %v967_v7 = vadd.f32 %v951_v4, %v935_v2  ;;  %v968_v8 = vadd.f32 %v952_v6, %v936_v5  ;;  %v937_v9 = vld [vmem:[%s9008_s21 + $0x18] sm:$0xff]  ;;  %v938_v11 = vld [vmem:[%s9008_s21 + $0x20] sm:$0xff]  ;;  %v939_v14 = vld [vmem:[%s9008_s21 + $0x28] sm:$0xff] }
  0x3c   : > { %v953_v10 = vld [vmem:[%s9009_s5 + $0x18] sm:$0xff]  ;;  %v954_v13 = vld [vmem:[%s9009_s5 + $0x20] sm:$0xff]  ;;  %v955_v15 = vld [vmem:[%s9009_s5 + $0x28] sm:$0xff] }
  0x3d   : > { %983 = vst.msk [vmem:[#allocation2] sm:$0xff] %vm982_vm0, %v966_v3  ;;  %v969_v12 = vadd.f32 %v953_v10, %v937_v9  ;;  %984 = vst.msk [vmem:[#allocation2 + $0x8] sm:$0xff] %vm982_vm0, %v967_v7  ;;  %v970_v16 = vadd.f32 %v954_v13, %v938_v11  ;;  %v971_v17 = vadd.f32 %v955_v15, %v939_v14  ;;  %v940_v18 = vld [vmem:[%s9008_s21 + $0x30] sm:$0xff]  ;;  %v941_v20 = vld [vmem:[%s9008_s21 + $0x38] sm:$0xff] }
  0x3e   : > { %985 = vst.msk [vmem:[#allocation2 + $0x10] sm:$0xff] %vm982_vm0, %v968_v8  ;;  %v956_v19 = vld [vmem:[%s9009_s5 + $0x30] sm:$0xff]  ;;  %v957_v22 = vld [vmem:[%s9009_s5 + $0x38] sm:$0xff]  ;;  %v942_v23 = vld [vmem:[%s9008_s21 + $0x40] sm:$0xff] }
  0x3f   : > { %986 = vst.msk [vmem:[#allocation2 + $0x18] sm:$0xff] %vm982_vm0, %v969_v12  ;;  %v972_v21 = vadd.f32 %v956_v19, %v940_v18  ;;  %v958_v24 = vld [vmem:[%s9009_s5 + $0x40] sm:$0xff]  ;;  %987 = vst.msk [vmem:[#allocation2 + $0x20] sm:$0xff] %vm982_vm0, %v970_v16  ;;  %v973_v25 = vadd.f32 %v957_v22, %v941_v20  ;;  %v943_v27 = vld [vmem:[%s9008_s21 + $0x48] sm:$0xff] }
  0x40   : > { %988 = vst.msk [vmem:[#allocation2 + $0x28] sm:$0xff] %vm982_vm0, %v971_v17  ;;  %v974_v26 = vadd.f32 %v958_v24, %v942_v23  ;;  %v959_v28 = vld [vmem:[%s9009_s5 + $0x48] sm:$0xff]  ;;  %v944_v29 = vld [vmem:[%s9008_s21 + $0x50] sm:$0xff]  ;;  %v945_v32 = vld [vmem:[%s9008_s21 + $0x58] sm:$0xff] }
  0x41   : > { %989 = vst.msk [vmem:[#allocation2 + $0x30] sm:$0xff] %vm982_vm0, %v972_v21  ;;  %v975_v30 = vadd.f32 %v959_v28, %v943_v27  ;;  %v960_v31 = vld [vmem:[%s9009_s5 + $0x50] sm:$0xff]  ;;  %v961_v33 = vld [vmem:[%s9009_s5 + $0x58] sm:$0xff]  ;;  %990 = vst.msk [vmem:[#allocation2 + $0x38] sm:$0xff] %vm982_vm0, %v973_v25 }
  0x42   : > { %991 = vst.msk [vmem:[#allocation2 + $0x40] sm:$0xff] %vm982_vm0, %v974_v26  ;;  %v976_v34 = vadd.f32 %v960_v31, %v944_v29  ;;  %v977_v35 = vadd.f32 %v961_v33, %v945_v32  ;;  %v946_v36 = vld [vmem:[%s9008_s21 + $0x60] sm:$0xff]  ;;  %v947_v38 = vld [vmem:[%s9008_s21 + $0x68] sm:$0xff]  ;;  %v948_v41 = vld [vmem:[%s9008_s21 + $0x70] sm:$0xff] }
  0x43   : > { %v962_v37 = vld [vmem:[%s9009_s5 + $0x60] sm:$0xff]  ;;  %992 = vst.msk [vmem:[#allocation2 + $0x48] sm:$0xff] %vm982_vm0, %v975_v30  ;;  %v963_v40 = vld [vmem:[%s9009_s5 + $0x68] sm:$0xff]  ;;  %v964_v42 = vld [vmem:[%s9009_s5 + $0x70] sm:$0xff] }
  0x44   : > { %v978_v39 = vadd.f32 %v962_v37, %v946_v36  ;;  %993 = vst.msk [vmem:[#allocation2 + $0x50] sm:$0xff] %vm982_vm0, %v976_v34  ;;  %994 = vst.msk [vmem:[#allocation2 + $0x58] sm:$0xff] %vm982_vm0, %v977_v35  ;;  %v979_v43 = vadd.f32 %v963_v40, %v947_v38  ;;  %v980_v44 = vadd.f32 %v964_v42, %v948_v41  ;;  %v949_v45 = vld [vmem:[%s9008_s21 + $0x78] sm:$0xff] }
  0x45   : > { %v965_v46 = vld [vmem:[%s9009_s5 + $0x78] sm:$0xff] }
  0x46   : > { %995 = vst.msk [vmem:[#allocation2 + $0x60] sm:$0xff] %vm982_vm0, %v978_v39  ;;  %v981_v47 = vadd.f32 %v965_v46, %v949_v45  ;;  %996 = vst.msk [vmem:[#allocation2 + $0x68] sm:$0xff] %vm982_vm0, %v979_v43 }
  0x47   : > { %997 = vst.msk [vmem:[#allocation2 + $0x70] sm:$0xff] %vm982_vm0, %v980_v44 }
  0x48   : > { %998 = vst.msk [vmem:[#allocation2 + $0x78] sm:$0xff] %vm982_vm0, %v981_v47 }
  0x49 PF: > { %v999_v48 = vld [vmem:[#allocation2] sm:$0xff]  ;;  %vm1017_vm1 = vcmask 261120   ;;  %v1001_v49 = vld [vmem:[#allocation2 + $0x10] sm:$0xff]  ;;  %v1000_v50 = vld [vmem:[#allocation2 + $0x8] sm:$0xff]  ;;  %s9010_s21 = sld [smem:[#allocation36_spill]]  ;;  %s9012_s24 = sld [smem:[#allocation37_spill]] }
  0x4a   : > { %v1018_v51 = vsel %vm1017_vm1, %v999_v48, 0.0  ;;  %v1024_v52 = vsel %vm1017_vm1, %v1001_v49, 0.0  ;;  %v1002_v53 = vld [vmem:[#allocation2 + $0x18] sm:$0xff]  ;;  %v6806_v54 = vld [vmem:[#allocation2 + $0x20] sm:$0xff]  ;;  %v6808_v55 = vld [vmem:[#allocation2 + $0x28] sm:$0xff]  ;;  %v1021_v56 = vsel %vm1017_vm1, %v1000_v50, 0.0  ;;  %s9014_s19 = scalar_lea.vmem %s8942_s6, %s6639_s0  ;;  %s9015_s11 = scalar_lea.vmem %s8944_s8, %s6639_s0 }
  0x4b   : > { %1019 = vadd.xlane.f32.xlu0 %v1018_v51  ;;  %1025 = vadd.xlane.f32.xlu1 %v1024_v52  ;;  %v1027_v57 = vsel %vm1017_vm1, %v1002_v53, 0.0  ;;  %v6812_v58 = vld [vmem:[#allocation2 + $0x30] sm:$0xff]  ;;  %v6814_v59 = vld [vmem:[#allocation2 + $0x38] sm:$0xff]  ;;  %v1030_v60 = vsel %vm1017_vm1, %v6806_v54, 0.0  ;;  %v1033_v61 = vsel %vm1017_vm1, %v6808_v55, 0.0  ;;  %v6824_v0 = vld [vmem:[#allocation2 + $0x40] sm:$0xff] }
  0x4c   : > { %v1036_v62 = vsel %vm1017_vm1, %v6812_v58, 0.0  ;;  %v1039_v63 = vsel %vm1017_vm1, %v6814_v59, 0.0  ;;  %v6826_v1 = vld [vmem:[#allocation2 + $0x48] sm:$0xff]  ;;  %v1042_v2 = vsel %vm1017_vm1, %v6824_v0, 0.0  ;;  %v6832_v4 = vld [vmem:[#allocation2 + $0x50] sm:$0xff]  ;;  %v6834_v5 = vld [vmem:[#allocation2 + $0x58] sm:$0xff] }
  0x4d   : > { %v1045_v3 = vsel %vm1017_vm1, %v6826_v1, 0.0  ;;  %v1048_v6 = vsel %vm1017_vm1, %v6832_v4, 0.0  ;;  %v1051_v7 = vsel %vm1017_vm1, %v6834_v5, 0.0  ;;  %v6840_v8 = vld [vmem:[#allocation2 + $0x60] sm:$0xff]  ;;  %v6842_v9 = vld [vmem:[#allocation2 + $0x68] sm:$0xff]  ;;  %vm1694_vm2 = vcmask 64512  }
  0x4e   : > { %v1054_v10 = vsel %vm1017_vm1, %v6840_v8, 0.0  ;;  %v1057_v11 = vsel %vm1017_vm1, %v6842_v9, 0.0  ;;  %v6848_v12 = vld [vmem:[#allocation2 + $0x70] sm:$0xff]  ;;  %s6489_s7 = smov 120   ;;  %s6490_s23 = smov 112   ;;  %vm3671_vm3 = vcmask 130048  }
  0x4f   : > { %1022 = vadd.xlane.f32.xlu0 %v1021_v56  ;;  %1028 = vadd.xlane.f32.xlu1 %v1027_v57  ;;  %v6850_v13 = vld [vmem:[#allocation2 + $0x78] sm:$0xff]  ;;  %v1060_v14 = vsel %vm1017_vm1, %v6848_v12, 0.0  ;;  %s9011_s18 = scalar_lea.vmem %s9010_s21, %s6639_s0  ;;  %s9013_s27 = scalar_lea.vmem %s9012_s24, %s6639_s0  ;;  %vm3688_vm4 = vcmask 195584   ;;  %vm4470_vm5 = vcmask 523264  }
  0x50   : > { %v1063_v15 = vsel %vm1017_vm1, %v6850_v13, 0.0  ;;  %s6491_s29 = smov 104   ;;  %s6493_s3 = smov 16  }
  0x51   : > { %s9076_s30 = sld [smem:[#allocation42_spill]]  ;;  %s9078_s4 = sld [smem:[#allocation43_spill]] }
  0x52   : > { %s9080_s21 = scalar_lea.vmem %s8950_s14, %s6639_s0 }
  0x53   : > { %1031 = vadd.xlane.f32.xlu0 %v1030_v60  ;;  %1034 = vadd.xlane.f32.xlu1 %v1033_v61 }
  0x57   : > { %1037 = vadd.xlane.f32.xlu0 %v1036_v62  ;;  %1040 = vadd.xlane.f32.xlu1 %v1039_v63  ;;  %s9079_s26 = scalar_lea.vmem %s9078_s4, %s6639_s0 }
  0x5b   : > { %1043 = vadd.xlane.f32.xlu0 %v1042_v2  ;;  %1046 = vadd.xlane.f32.xlu1 %v1045_v3 }
  0x5f   : > { %1049 = vadd.xlane.f32.xlu0 %v1048_v6  ;;  %1052 = vadd.xlane.f32.xlu1 %v1051_v7 }
  0x63   : > { %1055 = vadd.xlane.f32.xlu0 %v1054_v10  ;;  %1058 = vadd.xlane.f32.xlu1 %v1057_v11 }
  0x67   : > { %1061 = vadd.xlane.f32.xlu0 %v1060_v14  ;;  %1064 = vadd.xlane.f32.xlu1 %v1063_v15 }
  0xd8   : > { %v1020_v16 = vpop.xlane.xlu0 %1019  ;;  %v1026_v17 = vpop.xlane.xlu1 %1025 }
  0xd9   : > { %v1067_v18 = vmul.f32 0.03125, %v1020_v16  ;;  %v1069_v19 = vmul.f32 0.03125, %v1026_v17 }
  0xdb   : > { %v6856_v20 = vsub.f32 %v999_v48, %v1067_v18  ;;  %v6858_v21 = vsub.f32 %v1001_v49, %v1069_v19 }
  0xdc   : > { %v1023_v22 = vpop.xlane.xlu0 %1022  ;;  %v1029_v23 = vpop.xlane.xlu1 %1028 }
  0xdd   : > { %v1068_v24 = vmul.f32 0.03125, %v1023_v22  ;;  %v1070_v25 = vmul.f32 0.03125, %v1029_v23  ;;  %v1099_v26 = vmul.f32 %v6856_v20, %v6856_v20  ;;  %v1101_v27 = vmul.f32 %v6858_v21, %v6858_v21 }
  0xdf   : > { %v6864_v28 = vsub.f32 %v1000_v50, %v1068_v24  ;;  %v6866_v29 = vsub.f32 %v1002_v53, %v1070_v25  ;;  %v1115_v30 = vsel %vm1017_vm1, %v1099_v26, 0.0  ;;  %v1121_v33 = vsel %vm1017_vm1, %v1101_v27, 0.0 }
  0xe0   : > { %1116 = vadd.xlane.f32.xlu0 %v1115_v30  ;;  %v1032_v31 = vpop.xlane.xlu0 %1031  ;;  %v1035_v32 = vpop.xlane.xlu1 %1034 }
  0xe1   : > { %v1071_v34 = vmul.f32 0.03125, %v1032_v31  ;;  %v1072_v35 = vmul.f32 0.03125, %v1035_v32  ;;  %v1100_v36 = vmul.f32 %v6864_v28, %v6864_v28  ;;  %v1102_v37 = vmul.f32 %v6866_v29, %v6866_v29 }
  0xe3   : > { %v6875_v38 = vsub.f32 %v6806_v54, %v1071_v34  ;;  %v6878_v39 = vsub.f32 %v6808_v55, %v1072_v35  ;;  %v1118_v40 = vsel %vm1017_vm1, %v1100_v36, 0.0  ;;  %v1124_v43 = vsel %vm1017_vm1, %v1102_v37, 0.0  ;;  %v6034_v36 = vld [vmem:[%s6658_s17] sm:$0xff]  }
  0xe4   : > { %1122 = vadd.xlane.f32.xlu0 %v1121_v33  ;;  %1119 = vadd.xlane.f32.xlu1 %v1118_v40  ;;  %v1038_v41 = vpop.xlane.xlu0 %1037  ;;  %v1041_v42 = vpop.xlane.xlu1 %1040  ;;  %v6035_v37 = vld [vmem:[%s6667_s1] sm:$0xff]   ;;  %v6036_v40 = vld [vmem:[%s6658_s17 + $0x8] sm:$0xff]   ;;  %s9016_s17 = scalar_lea.vmem %s8946_s10, %s6639_s0 }
  0xe5   : > { %v1073_v44 = vmul.f32 0.03125, %v1038_v41  ;;  %v1074_v45 = vmul.f32 0.03125, %v1041_v42  ;;  %v1103_v46 = vmul.f32 %v6875_v38, %v6875_v38  ;;  %v1104_v47 = vmul.f32 %v6878_v39, %v6878_v39  ;;  %5456 = vmatprep.subr.bf16.mxu0 %v6034_v36  ;;  %5476 = vmatprep.subr.bf16.mxu1 %v6035_v37  ;;  %v6037_v41 = vld [vmem:[%s6667_s1 + $0x8] sm:$0xff]   ;;  %v6953_v42 = vld [vmem:[%s6676_s20] sm:$0xff]  }
  0xe6   : > { %5457 = vmatpush3.bf16.msra.mxu0 %v6034_v36  ;;  %5477 = vmatpush3.bf16.msra.mxu1 %v6035_v37 }
  0xe7   : > { %v6887_v48 = vsub.f32 %v6812_v58, %v1073_v44  ;;  %v6890_v49 = vsub.f32 %v6814_v59, %v1074_v45  ;;  %v1127_v50 = vsel %vm1017_vm1, %v1103_v46, 0.0  ;;  %v1130_v53 = vsel %vm1017_vm1, %v1104_v47, 0.0  ;;  %5458 = vmatprep.subr.bf16.mxu0 %v6036_v40  ;;  %5478 = vmatprep.subr.bf16.mxu1 %v6037_v41 }
  0xe8   : > { %1125 = vadd.xlane.f32.xlu1 %v1124_v43  ;;  %1128 = vadd.xlane.f32.xlu0 %v1127_v50  ;;  %v1044_v51 = vpop.xlane.xlu0 %1043  ;;  %v1047_v52 = vpop.xlane.xlu1 %1046 }
  0xe9   : > { %v1075_v54 = vmul.f32 0.03125, %v1044_v51  ;;  %v1076_v55 = vmul.f32 0.03125, %v1047_v52  ;;  %v1105_v56 = vmul.f32 %v6887_v48, %v6887_v48  ;;  %v1106_v57 = vmul.f32 %v6890_v49, %v6890_v49 }
  0xea   : > { %5459 = vmatpush3.bf16.msra.mxu0 %v6036_v40  ;;  %5479 = vmatpush3.bf16.msra.mxu1 %v6037_v41 }
  0xeb   : > { %v6899_v58 = vsub.f32 %v6824_v0, %v1075_v54  ;;  %v6902_v59 = vsub.f32 %v6826_v1, %v1076_v55  ;;  %v1133_v60 = vsel %vm1017_vm1, %v1105_v56, 0.0  ;;  %v1136_v63 = vsel %vm1017_vm1, %v1106_v57, 0.0  ;;  %5496 = vmatprep.subr.bf16.mxu0 %v6953_v42 }
  0xec   : > { %1131 = vadd.xlane.f32.xlu1 %v1130_v53  ;;  %1134 = vadd.xlane.f32.xlu0 %v1133_v60  ;;  %v1050_v61 = vpop.xlane.xlu0 %1049  ;;  %v1053_v62 = vpop.xlane.xlu1 %1052 }
  0xed   : > { %v1077_v2 = vmul.f32 0.03125, %v1050_v61  ;;  %v1078_v3 = vmul.f32 0.03125, %v1053_v62  ;;  %v1107_v6 = vmul.f32 %v6899_v58, %v6899_v58  ;;  %v1108_v0 = vmul.f32 %v6902_v59, %v6902_v59 }
  0xef   : > { %v6911_v7 = vsub.f32 %v6832_v4, %v1077_v2  ;;  %v6914_v1 = vsub.f32 %v6834_v5, %v1078_v3  ;;  %v1139_v10 = vsel %vm1017_vm1, %v1107_v6, 0.0  ;;  %v1142_v15 = vsel %vm1017_vm1, %v1108_v0, 0.0 }
  0xf0   : > { %1137 = vadd.xlane.f32.xlu1 %v1136_v63  ;;  %1140 = vadd.xlane.f32.xlu0 %v1139_v10  ;;  %v1056_v11 = vpop.xlane.xlu0 %1055  ;;  %v1059_v14 = vpop.xlane.xlu1 %1058 }
  0xf1   : > { %v1079_v16 = vmul.f32 0.03125, %v1056_v11  ;;  %v1080_v17 = vmul.f32 0.03125, %v1059_v14  ;;  %v1109_v18 = vmul.f32 %v6911_v7, %v6911_v7  ;;  %v1110_v4 = vmul.f32 %v6914_v1, %v6914_v1 }
  0xf3   : > { %v6923_v19 = vsub.f32 %v6840_v8, %v1079_v16  ;;  %v6926_v5 = vsub.f32 %v6842_v9, %v1080_v17  ;;  %v1145_v22 = vsel %vm1017_vm1, %v1109_v18, 0.0  ;;  %v1148_v25 = vsel %vm1017_vm1, %v1110_v4, 0.0  ;;  %v6962_v18 = vld [vmem:[%s9011_s18] ss:$0 sm:$0xff]  ;;  %s9017_s18 = sld [smem:[#allocation35_spill]] }
  0xf4   : > { %1143 = vadd.xlane.f32.xlu1 %v1142_v15  ;;  %1146 = vadd.xlane.f32.xlu0 %v1145_v22  ;;  %v1062_v23 = vpop.xlane.xlu0 %1061  ;;  %v1065_v24 = vpop.xlane.xlu1 %1064 }
  0xf5   : > { %v1081_v26 = vmul.f32 0.03125, %v1062_v23  ;;  %v1082_v27 = vmul.f32 0.03125, %v1065_v24  ;;  %v1111_v30 = vmul.f32 %v6923_v19, %v6923_v19  ;;  %v1112_v8 = vmul.f32 %v6926_v5, %v6926_v5 }
  0xf7   : > { %v6935_v9 = vsub.f32 %v6848_v12, %v1081_v26  ;;  %v6938_v31 = vsub.f32 %v6850_v13, %v1082_v27  ;;  %v1151_v32 = vsel %vm1017_vm1, %v1111_v30, 0.0  ;;  %v1154_v33 = vsel %vm1017_vm1, %v1112_v8, 0.0 }
  0xf8   : > { %1149 = vadd.xlane.f32.xlu1 %v1148_v25  ;;  %1152 = vadd.xlane.f32.xlu0 %v1151_v32  ;;  %v6971_v32 = vld [vmem:[%s9013_s27] ss:$0 sm:$0xff] }
  0xf9   : > { %v1113_v34 = vmul.f32 %v6935_v9, %v6935_v9  ;;  %v1114_v35 = vmul.f32 %v6938_v31, %v6938_v31 }
  0xfb   : > { %v1157_v12 = vsel %vm1017_vm1, %v1113_v34, 0.0  ;;  %v1160_v13 = vsel %vm1017_vm1, %v1114_v35, 0.0 }
  0xfc   : > { %1155 = vadd.xlane.f32.xlu1 %v1154_v33  ;;  %1158 = vadd.xlane.f32.xlu0 %v1157_v12 }
 0x100   : > { %1161 = vadd.xlane.f32.xlu1 %v1160_v13 }
 0x16d   : > { %v1117_v43 = vpop.xlane.xlu0 %1116 }
 0x16e   : > { %v1163_v44 = vmul.f32 0.03125, %v1117_v43 }
 0x170   : > { %v1179_v45 = vadd.f32 1e-06, %v1163_v44 }
 0x171   : > { %v1120_v46 = vpop.xlane.xlu1 %1119  ;;  %v1123_v47 = vpop.xlane.xlu0 %1122 }
 0x172   : > { %6048 = vrsqrt.f32 %v1179_v45  ;;  %v1164_v50 = vmul.f32 0.03125, %v1120_v46  ;;  %v1165_v51 = vmul.f32 0.03125, %v1123_v47 }
 0x174   : > { %v1180_v52 = vadd.f32 1e-06, %v1164_v50  ;;  %v1181_v53 = vadd.f32 1e-06, %v1165_v51 }
 0x175   : > { %v1126_v54 = vpop.xlane.xlu1 %1125  ;;  %v1129_v55 = vpop.xlane.xlu0 %1128 }
 0x176   : > { %6050 = vrsqrt.f32 %v1180_v52  ;;  %v1166_v56 = vmul.f32 0.03125, %v1126_v54  ;;  %v1167_v57 = vmul.f32 0.03125, %v1129_v55 }
 0x177   : > { %6052 = vrsqrt.f32 %v1181_v53 }
 0x178   : > { %v1182_v60 = vadd.f32 1e-06, %v1166_v56  ;;  %v1183_v61 = vadd.f32 1e-06, %v1167_v57 }
 0x179   : > { %v1132_v62 = vpop.xlane.xlu1 %1131  ;;  %v1135_v63 = vpop.xlane.xlu0 %1134 }
 0x17a   : > { %6054 = vrsqrt.f32 %v1182_v60  ;;  %v1168_v2 = vmul.f32 0.03125, %v1132_v62  ;;  %v1169_v3 = vmul.f32 0.03125, %v1135_v63 }
 0x17b   : > { %6056 = vrsqrt.f32 %v1183_v61 }
 0x17c   : > { %v6049_v6 = vpop.eup %6048  ;;  %v1184_v0 = vadd.f32 1e-06, %v1168_v2  ;;  %v1185_v10 = vadd.f32 1e-06, %v1169_v3 }
 0x17d   : > { %v1138_v11 = vpop.xlane.xlu1 %1137  ;;  %v1141_v14 = vpop.xlane.xlu0 %1140  ;;  %v1211_v15 = vmul.f32 %v6049_v6, %v6856_v20  ;;  %v6039_v6 = vld [vmem:[%s6676_s20 + $0x8] sm:$0xff]   ;;  %s6492_s20 = smov 8  }
 0x17e   : > { %6058 = vrsqrt.f32 %v1184_v0  ;;  %v1170_v16 = vmul.f32 0.03125, %v1138_v11  ;;  %v1171_v17 = vmul.f32 0.03125, %v1141_v14 }
 0x17f   : > { %6060 = vrsqrt.f32 %v1185_v10  ;;  %v1233_v20 = vmul.f32 %v6962_v18, %v1211_v15 }
 0x180   : > { %v6051_v4 = vpop.eup %6050  ;;  %v1186_v22 = vadd.f32 1e-06, %v1170_v16  ;;  %v1187_v23 = vadd.f32 1e-06, %v1171_v17 }
 0x181   : > { %v6053_v24 = vpop.eup %6052  ;;  %v1144_v25 = vpop.xlane.xlu1 %1143  ;;  %v1212_v27 = vmul.f32 %v6051_v4, %v6864_v28  ;;  %v1255_v41 = vadd.f32 %v6971_v32, %v1233_v20 }
 0x182   : > { %v1147_v26 = vpop.xlane.xlu0 %1146  ;;  %6062 = vrsqrt.f32 %v1186_v22  ;;  %v1172_v30 = vmul.f32 0.03125, %v1144_v25  ;;  %v1213_v33 = vmul.f32 %v6053_v24, %v6858_v21 }
 0x183   : > { %v1173_v8 = vmul.f32 0.03125, %v1147_v26  ;;  %6064 = vrsqrt.f32 %v1187_v23  ;;  %v1234_v34 = vmul.f32 %v6962_v18, %v1212_v27 }
 0x184   : > { %v6055_v35 = vpop.eup %6054  ;;  %v1188_v12 = vadd.f32 1e-06, %v1172_v30  ;;  %v1235_v28 = vmul.f32 %v6962_v18, %v1213_v33 }
 0x185   : > { %v1189_v13 = vadd.f32 1e-06, %v1173_v8  ;;  %v6057_v36 = vpop.eup %6056  ;;  %v1150_v37 = vpop.xlane.xlu1 %1149  ;;  %v1256_v43 = vadd.f32 %v6971_v32, %v1234_v34  ;;  %v1214_v44 = vmul.f32 %v6055_v35, %v6866_v29 }
 0x186   : > { %v1153_v40 = vpop.xlane.xlu0 %1152  ;;  %6066 = vrsqrt.f32 %v1188_v12  ;;  %v1174_v45 = vmul.f32 0.03125, %v1150_v37  ;;  %v1215_v50 = vmul.f32 %v6057_v36, %v6875_v38  ;;  %v1257_v54 = vadd.f32 %v6971_v32, %v1235_v28 }
 0x187   : > { %v1175_v21 = vmul.f32 0.03125, %v1153_v40  ;;  %6068 = vrsqrt.f32 %v1189_v13  ;;  %v6979_v46 = vpack.c.bf16 %v1256_v43, %v1255_v41  ;;  %v1236_v47 = vmul.f32 %v6962_v18, %v1214_v44 }
 0x188   : > { %v6059_v51 = vpop.eup %6058  ;;  %v1190_v52 = vadd.f32 1e-06, %v1174_v45  ;;  %v1237_v38 = vmul.f32 %v6962_v18, %v1215_v50 }
 0x189   : > { %v1191_v53 = vadd.f32 1e-06, %v1175_v21  ;;  %v6061_v55 = vpop.eup %6060  ;;  %v1156_v56 = vpop.xlane.xlu1 %1155  ;;  %5460 = vmatprep.mubr.msk.bf16.mxu0 %vm1017_vm1, %v6979_v46  ;;  %5480 = vmatprep.mubr.msk.bf16.mxu1 %vm1017_vm1, %v6979_v46  ;;  %v1258_v57 = vadd.f32 %v6971_v32, %v1236_v47  ;;  %v1216_v60 = vmul.f32 %v6059_v51, %v6878_v39 }
 0x18a   : > { %v1159_v29 = vpop.xlane.xlu0 %1158  ;;  %6070 = vrsqrt.f32 %v1190_v52  ;;  %v1176_v61 = vmul.f32 0.03125, %v1156_v56  ;;  %v1217_v63 = vmul.f32 %v6061_v55, %v6887_v48  ;;  %v1259_v14 = vadd.f32 %v6971_v32, %v1237_v38 }
 0x18b   : > { %v1177_v62 = vmul.f32 0.03125, %v1159_v29  ;;  %6072 = vrsqrt.f32 %v1191_v53  ;;  %v6992_v2 = vpack.c.bf16 %v1258_v57, %v1257_v54  ;;  %v1238_v3 = vmul.f32 %v6962_v18, %v1216_v60 }
 0x18c   : > { %v6063_v0 = vpop.eup %6062  ;;  %v1192_v10 = vadd.f32 1e-06, %v1176_v61  ;;  %v1239_v17 = vmul.f32 %v6962_v18, %v1217_v63 }
 0x18d   : > { %v1193_v11 = vadd.f32 1e-06, %v1177_v62  ;;  %v6065_v15 = vpop.eup %6064  ;;  %v1162_v39 = vpop.xlane.xlu1 %1161  ;;  %5461 = vmatmul.mubr.msk.bf16.vlgmr.msra.gmra.mrb[0].mxu0 %vm1017_vm1, %v6992_v2  ;;  %5481 = vmatmul.mubr.msk.bf16.vlgmr.msra.gmra.mrb[0].mxu1 %vm1017_vm1, %v6992_v2  ;;  %v1260_v48 = vadd.f32 %v6971_v32, %v1238_v3  ;;  %v1218_v16 = vmul.f32 %v6063_v0, %v6890_v49 }
 0x18e   : > { %6074 = vrsqrt.f32 %v1192_v10  ;;  %v1178_v4 = vmul.f32 0.03125, %v1162_v39  ;;  %v1219_v22 = vmul.f32 %v6065_v15, %v6899_v58  ;;  %5497 = vmatpush3.bf16.msra.mxu0 %v6953_v42  ;;  %v1261_v49 = vadd.f32 %v6971_v32, %v1239_v17 }
 0x18f   : > { %6076 = vrsqrt.f32 %v1193_v11  ;;  %v1273_v23 = vpack.c.bf16 %v1260_v48, %v1259_v14  ;;  %v1240_v24 = vmul.f32 %v6962_v18, %v1218_v16  ;;  %5498 = vmatprep.subr.bf16.mxu0 %v6039_v6 }
 0x190   : > { %v6067_v25 = vpop.eup %6066  ;;  %v1194_v26 = vadd.f32 1e-06, %v1178_v4  ;;  %v1241_v27 = vmul.f32 %v6962_v18, %v1219_v22 }
 0x191   : > { %v6069_v20 = vpop.eup %6068  ;;  %5464 = vmatprep.mubr.msk.bf16.mxu0 %vm1017_vm1, %v1273_v23  ;;  %5484 = vmatprep.mubr.msk.bf16.mxu1 %vm1017_vm1, %v1273_v23  ;;  %v1262_v58 = vadd.f32 %v6971_v32, %v1240_v24  ;;  %v1220_v42 = vmul.f32 %v6067_v25, %v6902_v59 }
 0x192   : > { %6078 = vrsqrt.f32 %v1194_v26  ;;  %v1221_v30 = vmul.f32 %v6069_v20, %v6911_v7  ;;  %5499 = vmatpush3.bf16.msra.mxu0 %v6039_v6  ;;  %v1263_v35 = vadd.f32 %v6971_v32, %v1241_v27 }
 0x193   : > { %v1274_v8 = vpack.c.bf16 %v1262_v58, %v1261_v49  ;;  %v1242_v33 = vmul.f32 %v6962_v18, %v1220_v42 }
 0x194   : > { %v6071_v34 = vpop.eup %6070  ;;  %v1243_v59 = vmul.f32 %v6962_v18, %v1221_v30 }
 0x195   : > { %v6073_v12 = vpop.eup %6072  ;;  %5465 = vmatmul.mubr.msk.bf16.gmra.mrb[4].mxu0 %vm1017_vm1, %v1274_v8  ;;  %5485 = vmatmul.mubr.msk.bf16.gmra.mrb[4].mxu1 %vm1017_vm1, %v1274_v8  ;;  %v1264_v13 = vadd.f32 %v6971_v32, %v1242_v33  ;;  %v1222_v28 = vmul.f32 %v6071_v34, %v6914_v1 }
 0x196   : > { %v1223_v7 = vmul.f32 %v6073_v12, %v6923_v19  ;;  %v1265_v44 = vadd.f32 %v6971_v32, %v1243_v59 }
 0x197   : > { %v1275_v36 = vpack.c.bf16 %v1264_v13, %v1263_v35  ;;  %v1244_v37 = vmul.f32 %v6962_v18, %v1222_v28 }
 0x198   : > { %v6075_v40 = vpop.eup %6074  ;;  %v1245_v41 = vmul.f32 %v6962_v18, %v1223_v7 }
 0x199   : > { %v6077_v43 = vpop.eup %6076  ;;  %5468 = vmatprep.mubr.msk.bf16.mxu0 %vm1017_vm1, %v1275_v36  ;;  %5488 = vmatprep.mubr.msk.bf16.mxu1 %vm1017_vm1, %v1275_v36  ;;  %v1266_v45 = vadd.f32 %v6971_v32, %v1244_v37  ;;  %v1224_v1 = vmul.f32 %v6075_v40, %v6926_v5 }
 0x19a   : > { %v1225_v21 = vmul.f32 %v6077_v43, %v6935_v9  ;;  %v1267_v51 = vadd.f32 %v6971_v32, %v1245_v41 }
 0x19b   : > { %v1276_v19 = vpack.c.bf16 %v1266_v45, %v1265_v44  ;;  %v1246_v47 = vmul.f32 %v6962_v18, %v1224_v1 }
 0x19c   : > { %v6079_v50 = vpop.eup %6078  ;;  %v1247_v54 = vmul.f32 %v6962_v18, %v1225_v21 }
 0x19d   : > { %5469 = vmatmul.mubr.msk.bf16.gmra.mrb[8].mxu0 %vm1017_vm1, %v1276_v19  ;;  %5489 = vmatmul.mubr.msk.bf16.gmra.mrb[8].mxu1 %vm1017_vm1, %v1276_v19  ;;  %v1268_v52 = vadd.f32 %v6971_v32, %v1246_v47  ;;  %v1226_v53 = vmul.f32 %v6079_v50, %v6938_v31 }
 0x19e   : > { %v1269_v9 = vadd.f32 %v6971_v32, %v1247_v54 }
 0x19f   : > { %v1277_v55 = vpack.c.bf16 %v1268_v52, %v1267_v51  ;;  %v1248_v5 = vmul.f32 %v6962_v18, %v1226_v53  ;;  %v7059_v18 = vld [vmem:[%s9014_s19] ss:$0 sm:$0xff]  ;;  %s6494_s19 = smov 24  }
 0x1a1   : > { %5472 = vmatprep.mubr.msk.bf16.mxu0 %vm1017_vm1, %v1277_v55  ;;  %5492 = vmatprep.mubr.msk.bf16.mxu1 %vm1017_vm1, %v1277_v55  ;;  %v1270_v56 = vadd.f32 %v6971_v32, %v1248_v5 }
 0x1a3   : > { %v1278_v29 = vpack.c.bf16 %v1270_v56, %v1269_v9 }
 0x1a5   : > { %5473 = vmatmul.mubr.msk.bf16.gmra.mrb[12].mxu0 %vm1017_vm1, %v1278_v29  ;;  %5493 = vmatmul.mubr.msk.bf16.gmra.mrb[12].mxu1 %vm1017_vm1, %v1278_v29 }
 0x1a6   : > { %5500 = vmatprep.mubr.msk.bf16.mxu0 %vm1017_vm1, %v6979_v46  ;;  %v7066_v46 = vld [vmem:[%s9015_s11] ss:$0 sm:$0xff]  ;;  %s9077_s11 = scalar_lea.vmem %s9076_s30, %s6639_s0 }
 0x1ad   : > { %5501 = vmatmul.mubr.msk.bf16.vlgmr.msra.gmra.mrb[16].mxu0 %vm1017_vm1, %v6992_v2 }
 0x1ae   : > { %5504 = vmatprep.mubr.msk.bf16.mxu0 %vm1017_vm1, %v1273_v23 }
 0x1b5   : > { %5505 = vmatmul.mubr.msk.bf16.gmra.mrb[20].mxu0 %vm1017_vm1, %v1274_v8 }
 0x1b6   : > { %5508 = vmatprep.mubr.msk.bf16.mxu0 %vm1017_vm1, %v1275_v36 }
 0x1bd   : > { %5509 = vmatmul.mubr.msk.bf16.gmra.mrb[24].mxu0 %vm1017_vm1, %v1276_v19 }
 0x1be   : > { %5512 = vmatprep.mubr.msk.bf16.mxu0 %vm1017_vm1, %v1277_v55 }
 0x1c5   : > { %5513 = vmatmul.mubr.msk.bf16.gmra.mrb[28].mxu0 %vm1017_vm1, %v1278_v29 }
 0x260   : > { %v5462_v31 = vpop.f32.mrb[0].mxu0  ;;  %v5482_v32 = vpop.f32.mrb[0].mxu1 }
 0x261   : > { %v1360_v57 = vpop.f32.mrb[1].mxu0  ;;  %v1480_v60 = vpop.f32.mrb[1].mxu1  ;;  %v1369_v62 = vadd.f32 %v5462_v31, %v7059_v18  ;;  %v1489_v63 = vadd.f32 %v5482_v32, %v7066_v46 }
 0x262   : > { %v5463_v38 = vpop.f32.mrb[2].mxu0  ;;  %v5483_v61 = vpop.f32.mrb[2].mxu1  ;;  %v1361_v10 = vadd.f32 %v7059_v18, %v1360_v57  ;;  %v1481_v11 = vadd.f32 %v7066_v46, %v1480_v60 }
 0x263   : > { %v1372_v2 = vadd.f32 %v5463_v38, %v7059_v18  ;;  %v1492_v3 = vadd.f32 %v5483_v61, %v7066_v46  ;;  %v1363_v6 = vpop.f32.mrb[3].mxu0  ;;  %v1483_v0 = vpop.f32.mrb[3].mxu1 }
 0x264   : > { %v1364_v14 = vadd.f32 %v7059_v18, %v1363_v6  ;;  %v1484_v15 = vadd.f32 %v7066_v46, %v1483_v0 }
 0x265   : > { %v7076_v39 = vpack.c.bf16 %v1372_v2, %v1369_v62  ;;  %v7078_v48 = vpack.c.bf16 %v1492_v3, %v1489_v63 }
 0x266   : > { %v7080_v16 = vpack.c.bf16 %v1364_v14, %v1361_v10  ;;  %v7082_v17 = vpack.c.bf16 %v1484_v15, %v1481_v11 }
 0x267   : > { %2123 = vrot.lane.b32.xlu1 %v7078_v48, %s6489_s7  ;;  %v1723_v40 = vsel %vm1694_vm2, %v7078_v48, 0 }
 0x268   : > { %2121 = vrot.lane.b32.xlu0 %v7082_v17, %s6489_s7  ;;  %v5466_v4 = vpop.f32.mrb[4].mxu0  ;;  %v5486_v22 = vpop.f32.mrb[4].mxu1  ;;  %5836 = vmatprep.subr.msk.bf16.mxu1 %vm1694_vm2, %v7082_v17  ;;  %v1720_v23 = vsel %vm1694_vm2, %v7082_v17, 0 }
 0x269   : > { %v1385_v24 = vadd.f32 %v5466_v4, %v7059_v18  ;;  %5532 = vmatprep.mubr.msk.bf16.mxu1 %vm1694_vm2, %v7080_v16  ;;  %v1376_v25 = vpop.f32.mrb[5].mxu0  ;;  %v1496_v26 = vpop.f32.mrb[5].mxu1  ;;  %5517 = vmatpush3.bf16.xpose.msra.mxu1 %v1720_v23  ;;  %v1505_v58 = vadd.f32 %v5486_v22, %v7066_v46 }
 0x26a   : > { %v1377_v27 = vadd.f32 %v7059_v18, %v1376_v25  ;;  %v5467_v20 = vpop.f32.mrb[6].mxu0  ;;  %v5487_v49 = vpop.f32.mrb[6].mxu1  ;;  %5837 = vmatprep.subr.msk.bf16.mxu1 %vm1694_vm2, %v7078_v48  ;;  %v1497_v34 = vadd.f32 %v7066_v46, %v1496_v26 }
 0x26b   : > { %v1388_v42 = vadd.f32 %v5467_v20, %v7059_v18  ;;  %v1508_v30 = vadd.f32 %v5487_v49, %v7066_v46  ;;  %v1379_v8 = vpop.f32.mrb[7].mxu0  ;;  %v1499_v33 = vpop.f32.mrb[7].mxu1 }
 0x26c   : > { %v1380_v35 = vadd.f32 %v7059_v18, %v1379_v8  ;;  %v1500_v12 = vadd.f32 %v7066_v46, %v1499_v33 }
 0x26d   : > { %v7104_v13 = vpack.c.bf16 %v1388_v42, %v1385_v24  ;;  %v7106_v28 = vpack.c.bf16 %v1508_v30, %v1505_v58 }
 0x26e   : > { %v7108_v59 = vpack.c.bf16 %v1380_v35, %v1377_v27  ;;  %v7110_v7 = vpack.c.bf16 %v1500_v12, %v1497_v34  ;;  %v5172_v27 = vld [vmem:[%s9016_s17] ss:$0 sm:$0xff] }
 0x26f   : > { %v1729_v20 = vsel %vm1694_vm2, %v7106_v28, 0 }
 0x270   : > { %v5470_v36 = vpop.f32.mrb[8].mxu0  ;;  %v5490_v37 = vpop.f32.mrb[8].mxu1  ;;  %v1726_v57 = vsel %vm1694_vm2, %v7110_v7, 0 }
 0x271   : > { %v1401_v41 = vadd.f32 %v5470_v36, %v7059_v18  ;;  %v1392_v43 = vpop.f32.mrb[9].mxu0  ;;  %v1512_v44 = vpop.f32.mrb[9].mxu1  ;;  %5519 = vmatpush3.bf16.xpose.msra.mxu1 %v1723_v40  ;;  %v1521_v19 = vadd.f32 %v5490_v37, %v7066_v46 }
 0x272   : > { %v1393_v45 = vadd.f32 %v7059_v18, %v1392_v43  ;;  %v5471_v1 = vpop.f32.mrb[10].mxu0  ;;  %v5491_v21 = vpop.f32.mrb[10].mxu1  ;;  %5838 = vmatprep.subr.msk.bf16.mxu1 %vm1694_vm2, %v7110_v7  ;;  %v1513_v53 = vadd.f32 %v7066_v46, %v1512_v44 }
 0x273   : > { %v1404_v47 = vadd.f32 %v5471_v1, %v7059_v18  ;;  %v1524_v50 = vadd.f32 %v5491_v21, %v7066_v46  ;;  %v1395_v51 = vpop.f32.mrb[11].mxu0  ;;  %v1515_v52 = vpop.f32.mrb[11].mxu1 }
 0x274   : > { %v1396_v54 = vadd.f32 %v7059_v18, %v1395_v51  ;;  %v1516_v55 = vadd.f32 %v7066_v46, %v1515_v52 }
 0x275   : > { %v7124_v5 = vpack.c.bf16 %v1404_v47, %v1401_v41  ;;  %v7126_v9 = vpack.c.bf16 %v1524_v50, %v1521_v19 }
 0x276   : > { %v7128_v56 = vpack.c.bf16 %v1396_v54, %v1393_v45  ;;  %v7130_v29 = vpack.c.bf16 %v1516_v55, %v1513_v53 }
 0x277   : > { %v1735_v47 = vsel %vm1694_vm2, %v7126_v9, 0 }
 0x278   : > { %v5474_v31 = vpop.f32.mrb[12].mxu0  ;;  %v5494_v32 = vpop.f32.mrb[12].mxu1  ;;  %v1732_v12 = vsel %vm1694_vm2, %v7130_v29, 0 }
 0x279   : > { %v1417_v60 = vadd.f32 %v5474_v31, %v7059_v18  ;;  %v1408_v38 = vpop.f32.mrb[13].mxu0  ;;  %v1528_v61 = vpop.f32.mrb[13].mxu1  ;;  %5521 = vmatpush3.bf16.xpose.msra.mxu1 %v1726_v57  ;;  %v1537_v3 = vadd.f32 %v5494_v32, %v7066_v46 }
 0x27a   : > { %v1409_v62 = vadd.f32 %v7059_v18, %v1408_v38  ;;  %v5475_v63 = vpop.f32.mrb[14].mxu0  ;;  %v5495_v2 = vpop.f32.mrb[14].mxu1  ;;  %5839 = vmatprep.subr.msk.bf16.mxu1 %vm1694_vm2, %v7106_v28  ;;  %v1529_v14 = vadd.f32 %v7066_v46, %v1528_v61 }
 0x27b   : > { %v1420_v6 = vadd.f32 %v5475_v63, %v7059_v18  ;;  %v1540_v0 = vadd.f32 %v5495_v2, %v7066_v46  ;;  %v1411_v10 = vpop.f32.mrb[15].mxu0  ;;  %v1531_v11 = vpop.f32.mrb[15].mxu1 }
 0x27c   : > { %v1412_v15 = vadd.f32 %v7059_v18, %v1411_v10  ;;  %v1532_v4 = vadd.f32 %v7066_v46, %v1531_v11 }
 0x27d   : > { %v7144_v22 = vpack.c.bf16 %v1420_v6, %v1417_v60  ;;  %v7146_v23 = vpack.c.bf16 %v1540_v0, %v1537_v3 }
 0x27e   : > { %v7148_v24 = vpack.c.bf16 %v1412_v15, %v1409_v62  ;;  %v7150_v25 = vpack.c.bf16 %v1532_v4, %v1529_v14  ;;  %v7228_v4 = vld [vmem:[%s9017_s18] ss:$0 sm:$0xff] }
 0x27f   : > { %v1741_v14 = vsel %vm1694_vm2, %v7146_v23, 0 }
 0x280   : > { %v5502_v26 = vpop.f32.mrb[16].mxu0  ;;  %v1738_v38 = vsel %vm1694_vm2, %v7150_v25, 0 }
 0x281   : > { %v1600_v18 = vpop.f32.mrb[17].mxu0  ;;  %5523 = vmatpush3.bf16.xpose.msra.mxu1 %v1729_v20  ;;  %v1609_v49 = vadd.f32 %v5502_v26, %v5172_v27 }
 0x282   : > { %v5503_v46 = vpop.f32.mrb[18].mxu0  ;;  %5840 = vmatprep.subr.msk.bf16.mxu1 %vm1694_vm2, %v7130_v29  ;;  %v1601_v30 = vadd.f32 %v5172_v27, %v1600_v18 }
 0x283   : > { %v1612_v58 = vadd.f32 %v5503_v46, %v5172_v27  ;;  %v1603_v42 = vpop.f32.mrb[19].mxu0 }
 0x284   : > { %v1604_v8 = vadd.f32 %v5172_v27, %v1603_v42 }
 0x285   : > { %v7161_v33 = vpack.c.bf16 %v1612_v58, %v1609_v49 }
 0x286   : > { %v7163_v34 = vpack.c.bf16 %v1604_v8, %v1601_v30 }
 0x288   : > { %v5506_v35 = vpop.f32.mrb[20].mxu0  ;;  %5548 = vmatprep.subr.bf16.mxu0 %v7163_v34 }
 0x289   : > { %v1616_v36 = vpop.f32.mrb[21].mxu0  ;;  %5525 = vmatpush3.bf16.xpose.msra.mxu1 %v1732_v12  ;;  %5549 = vmatpush3.bf16.msra.mxu0 %v7163_v34  ;;  %v1625_v40 = vadd.f32 %v5506_v35, %v5172_v27 }
 0x28a   : > { %v5507_v37 = vpop.f32.mrb[22].mxu0  ;;  %5841 = vmatprep.subr.msk.bf16.mxu1 %vm1694_vm2, %v7126_v9  ;;  %5550 = vmatprep.subr.bf16.mxu0 %v7161_v33  ;;  %v1617_v44 = vadd.f32 %v5172_v27, %v1616_v36 }
 0x28b   : > { %v1628_v41 = vadd.f32 %v5507_v37, %v5172_v27  ;;  %v1619_v43 = vpop.f32.mrb[23].mxu0 }
 0x28c   : > { %v1620_v45 = vadd.f32 %v5172_v27, %v1619_v43 }
 0x28d   : > { %v7172_v1 = vpack.c.bf16 %v1628_v41, %v1625_v40  ;;  %5551 = vmatpush3.bf16.msra.mxu0 %v7161_v33 }
 0x28e   : > { %v7175_v21 = vpack.c.bf16 %v1620_v45, %v1617_v44 }
 0x290   : > { %v5510_v19 = vpop.f32.mrb[24].mxu0  ;;  %5552 = vmatprep.subr.bf16.mxu0 %v7175_v21 }
 0x291   : > { %v1632_v50 = vpop.f32.mrb[25].mxu0  ;;  %5527 = vmatpush3.bf16.xpose.msra.mxu1 %v1735_v47  ;;  %5553 = vmatpush3.bf16.msra.mxu0 %v7175_v21  ;;  %v1641_v52 = vadd.f32 %v5510_v19, %v5172_v27 }
 0x292   : > { %v5511_v51 = vpop.f32.mrb[26].mxu0  ;;  %5842 = vmatprep.subr.msk.bf16.mxu1 %vm1694_vm2, %v7150_v25  ;;  %5554 = vmatprep.subr.bf16.mxu0 %v7172_v1  ;;  %v1633_v55 = vadd.f32 %v5172_v27, %v1632_v50 }
 0x293   : > { %v1644_v53 = vadd.f32 %v5511_v51, %v5172_v27  ;;  %v1635_v54 = vpop.f32.mrb[27].mxu0 }
 0x294   : > { %v1636_v31 = vadd.f32 %v5172_v27, %v1635_v54 }
 0x295   : > { %v7184_v32 = vpack.c.bf16 %v1644_v53, %v1641_v52  ;;  %5555 = vmatpush3.bf16.msra.mxu0 %v7172_v1 }
 0x296   : > { %v7187_v57 = vpack.c.bf16 %v1636_v31, %v1633_v55 }
 0x298   : > { %v5514_v60 = vpop.f32.mrb[28].mxu0  ;;  %5556 = vmatprep.subr.bf16.mxu0 %v7187_v57 }
 0x299   : > { %v1648_v61 = vpop.f32.mrb[29].mxu0  ;;  %5529 = vmatpush3.bf16.xpose.msra.mxu1 %v1738_v38  ;;  %5557 = vmatpush3.bf16.msra.mxu0 %v7187_v57  ;;  %v1657_v63 = vadd.f32 %v5514_v60, %v5172_v27 }
 0x29a   : > { %v5515_v62 = vpop.f32.mrb[30].mxu0  ;;  %5843 = vmatprep.subr.msk.bf16.mxu1 %vm1694_vm2, %v7146_v23  ;;  %5558 = vmatprep.subr.bf16.mxu0 %v7184_v32  ;;  %v1649_v6 = vadd.f32 %v5172_v27, %v1648_v61 }
 0x29b   : > { %v1660_v2 = vadd.f32 %v5515_v62, %v5172_v27  ;;  %v1651_v3 = vpop.f32.mrb[31].mxu0 }
 0x29c   : > { %v1652_v0 = vadd.f32 %v5172_v27, %v1651_v3 }
 0x29d   : > { %v7196_v10 = vpack.c.bf16 %v1660_v2, %v1657_v63  ;;  %5559 = vmatpush3.bf16.msra.mxu0 %v7184_v32 }
 0x29e   : > { %v7199_v11 = vpack.c.bf16 %v1652_v0, %v1649_v6 }
 0x2a0   : > { %5560 = vmatprep.subr.bf16.mxu0 %v7199_v11 }
 0x2a1   : > { %5531 = vmatpush3.bf16.xpose.msra.mxu1 %v1741_v14  ;;  %5561 = vmatpush3.bf16.msra.mxu0 %v7199_v11 }
 0x2a2   : > { %5562 = vmatprep.subr.bf16.mxu0 %v7196_v10 }
 0x2a5   : > { %5563 = vmatpush3.bf16.msra.mxu0 %v7196_v10 }
 0x2a8   : > { %5533 = vmatmul.mubr.msk.bf16.vlgmr.msra.gmra.mrb[16].mxu1 %vm1694_vm2, %v7076_v39 }
 0x2a9   : > { %5536 = vmatprep.mubr.msk.bf16.mxu1 %vm1694_vm2, %v7108_v59 }
 0x2b0   : > { %5537 = vmatmul.mubr.msk.bf16.gmra.mrb[20].mxu1 %vm1694_vm2, %v7104_v13 }
 0x2b1   : > { %5540 = vmatprep.mubr.msk.bf16.mxu1 %vm1694_vm2, %v7128_v56 }
 0x2b8   : > { %5541 = vmatmul.mubr.msk.bf16.gmra.mrb[24].mxu1 %vm1694_vm2, %v7124_v5 }
 0x2b9   : > { %5544 = vmatprep.mubr.msk.bf16.mxu1 %vm1694_vm2, %v7148_v24 }
 0x2c0   : > { %5545 = vmatmul.mubr.msk.bf16.gmra.mrb[28].mxu1 %vm1694_vm2, %v7144_v22 }
 0x2d9   : > { %v7286_v63 = vpop.permute.xlu1 %2123 }
 0x2da   : > { %v7221_v15 = vpop.permute.xlu0 %2121 }
 0x2db   : > { %5844 = vmatprep.subr.msk.bf16.mxu0 %vm1694_vm2, %v7221_v15 }
 0x37b   : > { %v5534_v26 = vpop.f32.mrb[16].mxu1 }
 0x37c   : > { %v1786_v27 = vadd.f32 %v5534_v26, %v7228_v4  ;;  %v1777_v20 = vpop.f32.mrb[17].mxu1 }
 0x37d   : > { %v5535_v18 = vpop.f32.mrb[18].mxu1  ;;  %v1778_v58 = vadd.f32 %v7228_v4, %v1777_v20 }
 0x37e   : > { %v1789_v46 = vadd.f32 %v5535_v18, %v7228_v4  ;;  %1844 = vmax.xlane.f32.xlu0 %v1786_v27  ;;  %v1780_v49 = vpop.f32.mrb[19].mxu1 }
 0x37f   : > { %v1781_v42 = vadd.f32 %v7228_v4, %v1780_v49 }
 0x380   : > { %1846 = vmax.xlane.f32.xlu1 %v1789_v46 }
 0x382   : > { %1840 = vmax.xlane.f32.xlu0 %v1778_v58 }
 0x383   : > { %v5538_v30 = vpop.f32.mrb[20].mxu1 }
 0x384   : > { %v7235_v8 = vadd.f32 %v5538_v30, %v7228_v4  ;;  %v1793_v35 = vpop.f32.mrb[21].mxu1  ;;  %1842 = vmax.xlane.f32.xlu1 %v1781_v42 }
 0x385   : > { %v5539_v12 = vpop.f32.mrb[22].mxu1  ;;  %v7242_v40 = vadd.f32 %v7228_v4, %v1793_v35 }
 0x386   : > { %v7238_v36 = vadd.f32 %v5539_v12, %v7228_v4  ;;  %v1796_v37 = vpop.f32.mrb[23].mxu1  ;;  %1852 = vmax.xlane.f32.xlu0 %v7235_v8 }
 0x387   : > { %v7246_v41 = vadd.f32 %v7228_v4, %v1796_v37 }
 0x388   : > { %1854 = vmax.xlane.f32.xlu1 %v7238_v36 }
 0x38a   : > { %1848 = vmax.xlane.f32.xlu0 %v7242_v40 }
 0x38b   : > { %v5542_v43 = vpop.f32.mrb[24].mxu1 }
 0x38c   : > { %v7250_v44 = vadd.f32 %v5542_v43, %v7228_v4  ;;  %v1809_v45 = vpop.f32.mrb[25].mxu1  ;;  %1850 = vmax.xlane.f32.xlu1 %v7246_v41 }
 0x38d   : > { %v5543_v19 = vpop.f32.mrb[26].mxu1  ;;  %v7258_v51 = vadd.f32 %v7228_v4, %v1809_v45 }
 0x38e   : > { %v7254_v47 = vadd.f32 %v5543_v19, %v7228_v4  ;;  %v1812_v50 = vpop.f32.mrb[27].mxu1  ;;  %1860 = vmax.xlane.f32.xlu0 %v7250_v44 }
 0x38f   : > { %v7262_v52 = vadd.f32 %v7228_v4, %v1812_v50 }
 0x390   : > { %1862 = vmax.xlane.f32.xlu1 %v7254_v47 }
 0x392   : > { %1856 = vmax.xlane.f32.xlu0 %v7258_v51 }
 0x393   : > { %v5546_v53 = vpop.f32.mrb[28].mxu1 }
 0x394   : > { %v7266_v54 = vadd.f32 %v5546_v53, %v7228_v4  ;;  %1858 = vmax.xlane.f32.xlu1 %v7262_v52  ;;  %v1825_v55 = vpop.f32.mrb[29].mxu1 }
 0x395   : > { %v5547_v31 = vpop.f32.mrb[30].mxu1  ;;  %v7271_v38 = vadd.f32 %v7228_v4, %v1825_v55 }
 0x396   : > { %1868 = vmax.xlane.f32.xlu0 %v7266_v54  ;;  %v1828_v60 = vpop.f32.mrb[31].mxu1  ;;  %v7279_v61 = vadd.f32 %v5547_v31, %v7228_v4 }
 0x397   : > { %v7283_v62 = vadd.f32 %v7228_v4, %v1828_v60 }
 0x39a   : > { %1864 = vmax.xlane.f32.xlu0 %v7271_v38 }
 0x3a5   : > { %2127 = vrot.lane.b32.xlu1 %v7106_v28, %s6489_s7 }
 0x3b0   : > { %2125 = vrot.lane.b32.xlu0 %v7110_v7, %s6489_s7 }
 0x3c9   : > { %1870 = vmax.xlane.f32.xlu1 %v7279_v61 }
 0x3cd   : > { %1866 = vmax.xlane.f32.xlu1 %v7283_v62 }
 0x40b   : > { %v1845_v2 = vpop.xlane.xlu0 %1844 }
 0x40c   : > { %v1874_v3 = vsub.f32 %v1786_v27, %v1845_v2 }
 0x40d   : > { %v1847_v6 = vpop.xlane.xlu1 %1846 }
 0x40e   : > { %v1892_v0 = vmul.f32 1.442695, %v1874_v3  ;;  %v1875_v14 = vsub.f32 %v1789_v46, %v1847_v6 }
 0x40f   : > { %v1841_v26 = vpop.xlane.xlu0 %1840 }
 0x410   : > { %6080 = vpow2.f32 %v1892_v0  ;;  %v1894_v20 = vmul.f32 1.442695, %v1875_v14  ;;  %v1872_v18 = vsub.f32 %v1778_v58, %v1841_v26 }
 0x411   : > { %v1843_v49 = vpop.xlane.xlu1 %1842 }
 0x412   : > { %6082 = vpow2.f32 %v1894_v20  ;;  %v1888_v30 = vmul.f32 1.442695, %v1872_v18  ;;  %v1873_v35 = vsub.f32 %v1781_v42, %v1843_v49 }
 0x413   : > { %v1853_v58 = vpop.xlane.xlu0 %1852 }
 0x414   : > { %6084 = vpow2.f32 %v1888_v30  ;;  %v1890_v12 = vmul.f32 1.442695, %v1873_v35  ;;  %v1878_v55 = vsub.f32 %v7235_v8, %v1853_v58 }
 0x415   : > { %v1855_v19 = vpop.xlane.xlu1 %1854 }
 0x416   : > { %6086 = vpow2.f32 %v1890_v12  ;;  %v1900_v2 = vmul.f32 1.442695, %v1878_v55  ;;  %v1879_v0 = vsub.f32 %v7238_v36, %v1855_v19 }
 0x417   : > { %v1849_v42 = vpop.xlane.xlu0 %1848 }
 0x418   : > { %v1876_v31 = vsub.f32 %v7242_v40, %v1849_v42  ;;  %6088 = vpow2.f32 %v1900_v2  ;;  %v1902_v49 = vmul.f32 1.442695, %v1879_v0 }
 0x419   : > { %v1851_v53 = vpop.xlane.xlu1 %1850 }
 0x41a   : > { %v7288_v37 = vpop.eup %6080  ;;  %v1877_v3 = vsub.f32 %v7246_v41, %v1851_v53  ;;  %v1896_v14 = vmul.f32 1.442695, %v1876_v31 }
 0x41b   : > { %1924 = vadd.xlane.f32.xlu0 %v7288_v37  ;;  %v1861_v45 = vpop.xlane.xlu0 %1860 }
 0x41c   : > { %v7291_v43 = vpop.eup %6082  ;;  %v1898_v26 = vmul.f32 1.442695, %v1877_v3  ;;  %6090 = vpow2.f32 %v1896_v14  ;;  %v1882_v30 = vsub.f32 %v7250_v44, %v1861_v45 }
 0x41d   : > { %1926 = vadd.xlane.f32.xlu1 %v7291_v43  ;;  %v1863_v6 = vpop.xlane.xlu1 %1862 }
 0x41e   : > { %v7294_v27 = vpop.eup %6084  ;;  %6092 = vpow2.f32 %v1898_v26  ;;  %v1908_v41 = vmul.f32 1.442695, %v1882_v30  ;;  %v1883_v58 = vsub.f32 %v7254_v47, %v1863_v6 }
 0x41f   : > { %1920 = vadd.xlane.f32.xlu0 %v7294_v27  ;;  %v1857_v50 = vpop.xlane.xlu0 %1856  ;;  %6094 = vpow2.f32 %v1902_v49 }
 0x420   : > { %v7297_v46 = vpop.eup %6086  ;;  %v1880_v12 = vsub.f32 %v7258_v51, %v1857_v50 }
 0x421   : > { %1922 = vadd.xlane.f32.xlu1 %v7297_v46  ;;  %v1859_v8 = vpop.xlane.xlu1 %1858 }
 0x422   : > { %v1904_v19 = vmul.f32 1.442695, %v1880_v12  ;;  %v1881_v47 = vsub.f32 %v7262_v52, %v1859_v8 }
 0x423   : > { %v1869_v60 = vpop.xlane.xlu0 %1868 }
 0x424   : > { %v1886_v20 = vsub.f32 %v7266_v54, %v1869_v60  ;;  %v7315_v54 = vpop.eup %6088  ;;  %v1906_v2 = vmul.f32 1.442695, %v1881_v47 }
 0x425   : > { %v7313_v42 = vpop.permute.xlu1 %2127 }
 0x426   : > { %v1916_v40 = vmul.f32 1.442695, %v1886_v20  ;;  %v7318_v44 = vpop.eup %6090 }
 0x427   : > { %v1865_v18 = vpop.xlane.xlu0 %1864 }
 0x428   : > { %v1884_v35 = vsub.f32 %v7271_v38, %v1865_v18  ;;  %6096 = vpow2.f32 %v1916_v40  ;;  %v1910_v38 = vmul.f32 1.442695, %v1883_v58  ;;  %v7321_v51 = vpop.eup %6092 }
 0x429   : > { %6098 = vpow2.f32 %v1908_v41  ;;  %v7326_v53 = vpop.eup %6094 }
 0x42a   : > { %v1912_v36 = vmul.f32 1.442695, %v1884_v35 }
 0x42b   : > { %v2126_v18 = vpop.permute.xlu0 %2125 }
 0x42c   : > { %6100 = vpow2.f32 %v1912_v36 }
 0x42d   : > { %6102 = vpow2.f32 %v1904_v19 }
 0x42e   : > { %6104 = vpow2.f32 %v1910_v38 }
 0x432   : > { %2131 = vrot.lane.b32.xlu1 %v7126_v9, %s6489_s7  ;;  %v7329_v60 = vpop.eup %6096 }
 0x433   : > { %v7333_v52 = vpop.eup %6098 }
 0x435   : > { %2129 = vrot.lane.b32.xlu0 %v7130_v29, %s6489_s7 }
 0x454   : > { %1932 = vadd.xlane.f32.xlu0 %v7315_v54 }
 0x456   : > { %v1871_v45 = vpop.xlane.xlu1 %1870  ;;  %1928 = vadd.xlane.f32.xlu1 %v7318_v44 }
 0x457   : > { %v1887_v50 = vsub.f32 %v7279_v61, %v1871_v45  ;;  %v7336_v61 = vpop.eup %6100 }
 0x458   : > { %1930 = vadd.xlane.f32.xlu0 %v7321_v51  ;;  %v7339_v0 = vpop.eup %6102 }
 0x459   : > { %v1918_v55 = vmul.f32 1.442695, %v1887_v50  ;;  %v7342_v14 = vpop.eup %6104 }
 0x45a   : > { %v1867_v31 = vpop.xlane.xlu1 %1866  ;;  %1934 = vadd.xlane.f32.xlu1 %v7326_v53 }
 0x45b   : > { %6106 = vpow2.f32 %v1918_v55  ;;  %v1885_v3 = vsub.f32 %v7283_v62, %v1867_v31  ;;  %v2162_v55 = vsel %vm1694_vm2, %v7221_v15, 0 }
 0x45c   : > { %1948 = vadd.xlane.f32.xlu0 %v7329_v60  ;;  %6108 = vpow2.f32 %v1906_v2 }
 0x45d   : > { %v1914_v6 = vmul.f32 1.442695, %v1885_v3 }
 0x45e   : > { %1940 = vadd.xlane.f32.xlu1 %v7333_v52 }
 0x45f   : > { %6110 = vpow2.f32 %v1914_v6 }
 0x460   : > { %1944 = vadd.xlane.f32.xlu0 %v7336_v61 }
 0x462   : > { %1936 = vadd.xlane.f32.xlu1 %v7339_v0 }
 0x465   : > { %v7344_v62 = vpop.eup %6106 }
 0x466   : > { %1942 = vadd.xlane.f32.xlu1 %v7342_v14  ;;  %1950 = vadd.xlane.f32.xlu0 %v7344_v62  ;;  %v7348_v26 = vpop.eup %6108 }
 0x469   : > { %v7351_v20 = vpop.eup %6110 }
 0x46a   : > { %1938 = vadd.xlane.f32.xlu1 %v7348_v26 }
 0x46e   : > { %1946 = vadd.xlane.f32.xlu1 %v7351_v20 }
 0x47c   : > { %2133 = vrot.lane.b32.xlu0 %v7150_v25, %s6489_s7 }
 0x47f   : > { %2135 = vrot.lane.b32.xlu1 %v7146_v23, %s6489_s7 }
 0x480   : > { %2097 = vrot.lane.b32.xlu0 %v7080_v16, %s6489_s7 }
 0x483   : > { %2099 = vrot.lane.b32.xlu1 %v7076_v39, %s6489_s7 }
 0x484   : > { %2101 = vrot.lane.b32.xlu0 %v7108_v59, %s6489_s7 }
 0x487   : > { %2103 = vrot.lane.b32.xlu1 %v7104_v13, %s6489_s7 }
 0x488   : > { %2105 = vrot.lane.b32.xlu0 %v7128_v56, %s6489_s7 }
 0x48b   : > { %2107 = vrot.lane.b32.xlu1 %v7124_v5, %s6489_s7 }
 0x48c   : > { %2109 = vrot.lane.b32.xlu0 %v7148_v24, %s6489_s7 }
 0x48f   : > { %2111 = vrot.lane.b32.xlu1 %v7144_v22, %s6489_s7 }
 0x490   : > { %2442 = vrot.lane.b32.xlu0 %v7163_v34, %s6489_s7 }
 0x493   : > { %2444 = vrot.lane.b32.xlu1 %v7161_v33, %s6489_s7 }
 0x494   : > { %2446 = vrot.lane.b32.xlu0 %v7175_v21, %s6489_s7 }
 0x497   : > { %2448 = vrot.lane.b32.xlu1 %v7172_v1, %s6489_s7 }
 0x498   : > { %2450 = vrot.lane.b32.xlu0 %v7187_v57, %s6489_s7 }
 0x49b   : > { %2452 = vrot.lane.b32.xlu1 %v7184_v32, %s6489_s7 }
 0x49c   : > { %2454 = vrot.lane.b32.xlu0 %v7199_v11, %s6489_s7 }
 0x49f   : > { %2456 = vrot.lane.b32.xlu1 %v7196_v10, %s6489_s7 }
 0x4a0   : > { %2579 = vrot.lane.b32.xlu0 %v7082_v17, %s6490_s23 }
 0x4a3   : > { %2581 = vrot.lane.b32.xlu1 %v7078_v48, %s6490_s23 }
 0x4a8   : > { %v1925_v49 = vpop.xlane.xlu0 %1924 }
 0x4aa   : > { %v1927_v30 = vpop.xlane.xlu1 %1926 }
 0x4ab   : > { %6112 = vrcp.f32 %v1927_v30 }
 0x4ac   : > { %v1921_v8 = vpop.xlane.xlu0 %1920 }
 0x4ad   : > { %6114 = vrcp.f32 %v1921_v8 }
 0x4ae   : > { %6116 = vrcp.f32 %v1925_v49  ;;  %v1923_v40 = vpop.xlane.xlu1 %1922 }
 0x4af   : > { %6118 = vrcp.f32 %v1923_v40 }
 0x4b0   : > { %v2130_v15 = vpop.permute.xlu0 %2129 }
 0x4b1   : > { %v2174_v31 = vsel %vm1694_vm2, %v2130_v15, 0 }
 0x4b5   : > { %v6113_v35 = vpop.eup %6112 }
 0x4b6   : > { %v1971_v58 = vmul.f32 %v6113_v35, %v7291_v43  ;;  %v2165_v43 = vsel %vm1694_vm2, %v7286_v63, 0 }
 0x4b7   : > { %v6115_v41 = vpop.eup %6114 }
 0x4b8   : > { %v6117_v12 = vpop.eup %6116  ;;  %v1968_v19 = vmul.f32 %v6115_v41, %v7294_v27  ;;  %v2168_v27 = vsel %vm1694_vm2, %v2126_v18, 0 }
 0x4b9   : > { %v6119_v36 = vpop.eup %6118  ;;  %v1970_v45 = vmul.f32 %v6117_v12, %v7288_v37  ;;  %v2171_v37 = vsel %vm1694_vm2, %v7313_v42, 0 }
 0x4ba   : > { %v1969_v38 = vmul.f32 %v6119_v36, %v7297_v46  ;;  %v2132_v46 = vpop.permute.xlu1 %2131 }
 0x4bb   : > { %v1985_v50 = vpack.c.bf16 %v1971_v58, %v1970_v45 }
 0x4bc   : > { %v1984_v47 = vpack.c.bf16 %v1969_v38, %v1968_v19 }
 0x4be   : > { %5564 = vmatprep.mubr.bf16.mxu0 %v1984_v47 }
 0x4bf   : > { %5565 = vmatmul.mubr.bf16.vlgmr.msra.gmra.mrb[32].mxu0 %v1985_v50 }
 0x4c0   : > { %5581 = vmatpush3.bf16.xpose.msra.mxu0 %v2162_v55 }
 0x4c1   : > { %5845 = vmatprep.subr.msk.bf16.mxu0 %vm1694_vm2, %v7286_v63 }
 0x4c8   : > { %5583 = vmatpush3.bf16.xpose.msra.mxu0 %v2165_v43 }
 0x4c9   : > { %5846 = vmatprep.subr.msk.bf16.mxu0 %vm1694_vm2, %v2126_v18  ;;  %v2177_v18 = vsel %vm1694_vm2, %v2132_v46, 0 }
 0x4d0   : > { %5585 = vmatpush3.bf16.xpose.msra.mxu0 %v2168_v27 }
 0x4d1   : > { %5847 = vmatprep.subr.msk.bf16.mxu0 %vm1694_vm2, %v7313_v42 }
 0x4d8   : > { %5587 = vmatpush3.bf16.xpose.msra.mxu0 %v2171_v37 }
 0x4d9   : > { %5848 = vmatprep.subr.msk.bf16.mxu0 %vm1694_vm2, %v2130_v15 }
 0x4e0   : > { %5589 = vmatpush3.bf16.xpose.msra.mxu0 %v2174_v31 }
 0x4e1   : > { %5849 = vmatprep.subr.msk.bf16.mxu0 %vm1694_vm2, %v2132_v46  ;;  %v1933_v63 = vpop.xlane.xlu0 %1932 }
 0x4e3   : > { %v1929_v2 = vpop.xlane.xlu1 %1928 }
 0x4e4   : > { %6120 = vrcp.f32 %v1929_v2 }
 0x4e5   : > { %6122 = vrcp.f32 %v1933_v63  ;;  %v1931_v3 = vpop.xlane.xlu0 %1930 }
 0x4e6   : > { %6124 = vrcp.f32 %v1931_v3 }
 0x4e7   : > { %v1935_v6 = vpop.xlane.xlu1 %1934 }
 0x4e8   : > { %6126 = vrcp.f32 %v1935_v6  ;;  %5591 = vmatpush3.bf16.xpose.msra.mxu0 %v2177_v18 }
 0x4e9   : > { %v1949_v42 = vpop.xlane.xlu0 %1948 }
 0x4eb   : > { %v1941_v49 = vpop.xlane.xlu1 %1940 }
 0x4ed   : > { %v1945_v40 = vpop.xlane.xlu0 %1944 }
 0x4ee   : > { %v6121_v30 = vpop.eup %6120 }
 0x4ef   : > { %v6123_v8 = vpop.eup %6122  ;;  %v1937_v35 = vpop.xlane.xlu1 %1936  ;;  %v1972_v12 = vmul.f32 %v6121_v30, %v7318_v44 }
 0x4f0   : > { %v6125_v41 = vpop.eup %6124  ;;  %v1974_v47 = vmul.f32 %v6123_v8, %v7315_v54 }
 0x4f1   : > { %v1973_v36 = vmul.f32 %v6125_v41, %v7321_v51 }
 0x4f2   : > { %v6127_v58 = vpop.eup %6126 }
 0x4f3   : > { %v1943_v19 = vpop.xlane.xlu1 %1942  ;;  %v1951_v38 = vpop.xlane.xlu0 %1950  ;;  %v1986_v45 = vpack.c.bf16 %v1973_v36, %v1972_v12  ;;  %v1975_v50 = vmul.f32 %v6127_v58, %v7326_v53 }
 0x4f4   : > { %6128 = vrcp.f32 %v1943_v19 }
 0x4f5   : > { %5568 = vmatprep.mubr.bf16.mxu0 %v1986_v45  ;;  %v1987_v55 = vpack.c.bf16 %v1975_v50, %v1974_v47  ;;  %6130 = vrcp.f32 %v1937_v35 }
 0x4f6   : > { %6132 = vrcp.f32 %v1941_v49 }
 0x4f7   : > { %v1939_v43 = vpop.xlane.xlu1 %1938  ;;  %5569 = vmatmul.mubr.bf16.gmra.mrb[36].mxu0 %v1987_v55  ;;  %v2134_v27 = vpop.permute.xlu0 %2133 }
 0x4f8   : > { %6134 = vrcp.f32 %v1939_v43  ;;  %5850 = vmatprep.subr.msk.bf16.mxu0 %vm1694_vm2, %v2134_v27  ;;  %v2180_v44 = vsel %vm1694_vm2, %v2134_v27, 0 }
 0x4f9   : > { %5593 = vmatpush3.bf16.xpose.msra.mxu0 %v2180_v44  ;;  %6136 = vrcp.f32 %v1945_v40 }
 0x4fb   : > { %v1947_v51 = vpop.xlane.xlu1 %1946  ;;  %v2098_v37 = vpop.permute.xlu0 %2097 }
 0x4fc   : > { %6138 = vrcp.f32 %v1947_v51 }
 0x4fd   : > { %6140 = vrcp.f32 %v1951_v38 }
 0x4fe   : > { %v6129_v54 = vpop.eup %6128  ;;  %6142 = vrcp.f32 %v1949_v42 }
 0x4ff   : > { %v2136_v53 = vpop.permute.xlu1 %2135  ;;  %v2102_v15 = vpop.permute.xlu0 %2101  ;;  %v1979_v3 = vmul.f32 %v6129_v54, %v7342_v14 }
 0x500   : > { %v6131_v46 = vpop.eup %6130  ;;  %5851 = vmatprep.subr.msk.bf16.mxu0 %vm1694_vm2, %v2136_v53  ;;  %v2183_v31 = vsel %vm1694_vm2, %v2136_v53, 0 }
 0x501   : > { %v6133_v63 = vpop.eup %6132  ;;  %5595 = vmatpush3.bf16.xpose.msra.mxu0 %v2183_v31  ;;  %v1976_v49 = vmul.f32 %v6131_v46, %v7339_v0 }
 0x502   : > { %v6135_v2 = vpop.eup %6134  ;;  %v1978_v42 = vmul.f32 %v6133_v63, %v7333_v52 }
 0x503   : > { %v2100_v6 = vpop.permute.xlu1 %2099  ;;  %v2106_v18 = vpop.permute.xlu0 %2105  ;;  %v1977_v30 = vmul.f32 %v6135_v2, %v7348_v26 }
 0x504   : > { %v6137_v8 = vpop.eup %6136  ;;  %v1989_v41 = vpack.c.bf16 %v1979_v3, %v1978_v42 }
 0x505   : > { %v1988_v40 = vpack.c.bf16 %v1977_v30, %v1976_v49  ;;  %v1980_v19 = vmul.f32 %v6137_v8, %v7336_v61 }
 0x506   : > { %v6139_v35 = vpop.eup %6138 }
 0x507   : > { %v6141_v12 = vpop.eup %6140  ;;  %v2104_v36 = vpop.permute.xlu1 %2103  ;;  %5572 = vmatprep.mubr.bf16.mxu0 %v1988_v40  ;;  %v1981_v14 = vmul.f32 %v6139_v35, %v7351_v20 }
 0x508   : > { %v2110_v58 = vpop.permute.xlu0 %2109  ;;  %5573 = vmatmul.mubr.bf16.gmra.mrb[40].mxu0 %v1989_v41  ;;  %v6143_v38 = vpop.eup %6142  ;;  %v1983_v0 = vmul.f32 %v6141_v12, %v7344_v62 }
 0x509   : > { %v1990_v45 = vpack.c.bf16 %v1981_v14, %v1980_v19  ;;  %v1982_v52 = vmul.f32 %v6143_v38, %v7329_v60 }
 0x50b   : > { %v2108_v26 = vpop.permute.xlu1 %2107  ;;  %5576 = vmatprep.mubr.bf16.mxu0 %v1990_v45  ;;  %v1991_v50 = vpack.c.bf16 %v1983_v0, %v1982_v52 }
 0x50c   : > { %v2443_v47 = vpop.permute.xlu0 %2442 }
 0x50d   : > { %5612 = vmatprep.subr.bf16.mxu1 %v2443_v47 }
 0x50e   : > { %5613 = vmatpush3.bf16.msra.mxu1 %v2443_v47 }
 0x50f   : > { %v2112_v55 = vpop.permute.xlu1 %2111 }
 0x510   : > { %5577 = vmatmul.mubr.bf16.gmra.mrb[44].mxu0 %v1991_v50  ;;  %v2447_v20 = vpop.permute.xlu0 %2446 }
 0x511   : > { %5596 = vmatprep.mubr.msk.bf16.mxu0 %vm1694_vm2, %v2098_v37 }
 0x513   : > { %v2445_v61 = vpop.permute.xlu1 %2444 }
 0x514   : > { %5614 = vmatprep.subr.bf16.mxu1 %v2445_v61  ;;  %v2451_v43 = vpop.permute.xlu0 %2450 }
 0x515   : > { %5615 = vmatpush3.bf16.msra.mxu1 %v2445_v61 }
 0x516   : > { %5616 = vmatprep.subr.bf16.mxu1 %v2447_v20 }
 0x517   : > { %v2449_v62 = vpop.permute.xlu1 %2448 }
 0x518   : > { %5597 = vmatmul.mubr.msk.bf16.vlgmr.msra.gmra.mrb[48].mxu0 %vm1694_vm2, %v2100_v6  ;;  %v2455_v27 = vpop.permute.xlu0 %2454 }
 0x519   : > { %5600 = vmatprep.mubr.msk.bf16.mxu0 %vm1694_vm2, %v2102_v15  ;;  %5617 = vmatpush3.bf16.msra.mxu1 %v2447_v20 }
 0x51a   : > { %5618 = vmatprep.subr.bf16.mxu1 %v2449_v62 }
 0x51b   : > { %v2453_v60 = vpop.permute.xlu1 %2452 }
 0x51c   : > { %v7437_v51 = vpop.permute.xlu0 %2579 }
 0x51d   : > { %5619 = vmatpush3.bf16.msra.mxu1 %v2449_v62 }
 0x51e   : > { %5620 = vmatprep.subr.bf16.mxu1 %v2451_v43 }
 0x51f   : > { %v2457_v44 = vpop.permute.xlu1 %2456 }
 0x520   : > { %5601 = vmatmul.mubr.msk.bf16.gmra.mrb[52].mxu0 %vm1694_vm2, %v2104_v36 }
 0x521   : > { %5604 = vmatprep.mubr.msk.bf16.mxu0 %vm1694_vm2, %v2106_v18  ;;  %5621 = vmatpush3.bf16.msra.mxu1 %v2451_v43 }
 0x522   : > { %5622 = vmatprep.subr.bf16.mxu1 %v2453_v60 }
 0x525   : > { %5623 = vmatpush3.bf16.msra.mxu1 %v2453_v60 }
 0x526   : > { %5624 = vmatprep.subr.bf16.mxu1 %v2455_v27 }
 0x528   : > { %5605 = vmatmul.mubr.msk.bf16.gmra.mrb[56].mxu0 %vm1694_vm2, %v2108_v26 }
 0x529   : > { %5608 = vmatprep.mubr.msk.bf16.mxu0 %vm1694_vm2, %v2110_v58  ;;  %5625 = vmatpush3.bf16.msra.mxu1 %v2455_v27 }
 0x52a   : > { %5626 = vmatprep.subr.bf16.mxu1 %v2457_v44 }
 0x52d   : > { %5627 = vmatpush3.bf16.msra.mxu1 %v2457_v44 }
 0x52e   : > { %5852 = vmatprep.subr.msk.bf16.mxu1 %vm1694_vm2, %v7437_v51 }
 0x530   : > { %5609 = vmatmul.mubr.msk.bf16.gmra.mrb[60].mxu0 %vm1694_vm2, %v2112_v55 }
 0x592   : > { %v7442_v37 = vpop.f32.mrb[32].mxu0 }
 0x593   : > { %9018 = vst [vmem:[#allocation10_spill] sm:$0xff] %v7442_v37  ;;  %v7444_v54 = vpop.f32.mrb[33].mxu0 }
 0x594   : > { %9019 = vst [vmem:[#allocation11_spill] sm:$0xff] %v7444_v54  ;;  %v7446_v53 = vpop.f32.mrb[34].mxu0 }
 0x595   : > { %9020 = vst [vmem:[#allocation12_spill] sm:$0xff] %v7446_v53  ;;  %v7448_v15 = vpop.f32.mrb[35].mxu0 }
 0x596   : > { %9021 = vst [vmem:[#allocation13_spill] sm:$0xff] %v7448_v15 }
 0x5ca   : > { %v7450_v46 = vpop.f32.mrb[36].mxu0 }
 0x5cb   : > { %9022 = vst [vmem:[#allocation14_spill] sm:$0xff] %v7450_v46  ;;  %v7452_v31 = vpop.f32.mrb[37].mxu0 }
 0x5cc   : > { %9023 = vst [vmem:[#allocation15_spill] sm:$0xff] %v7452_v31  ;;  %v7454_v63 = vpop.f32.mrb[38].mxu0 }
 0x5cd   : > { %9024 = vst [vmem:[#allocation16_spill] sm:$0xff] %v7454_v63  ;;  %v7456_v2 = vpop.f32.mrb[39].mxu0 }
 0x5ce   : > { %9025 = vst [vmem:[#allocation17_spill] sm:$0xff] %v7456_v2 }
 0x5db   : > { %v7458_v3 = vpop.f32.mrb[40].mxu0 }
 0x5dc   : > { %9026 = vst [vmem:[#allocation18_spill] sm:$0xff] %v7458_v3  ;;  %v7460_v6 = vpop.f32.mrb[41].mxu0 }
 0x5dd   : > { %9027 = vst [vmem:[#allocation19_spill] sm:$0xff] %v7460_v6  ;;  %v7462_v18 = vpop.f32.mrb[42].mxu0 }
 0x5de   : > { %9028 = vst [vmem:[#allocation20_spill] sm:$0xff] %v7462_v18  ;;  %v7464_v49 = vpop.f32.mrb[43].mxu0 }
 0x5df   : > { %9029 = vst [vmem:[#allocation21_spill] sm:$0xff] %v7464_v49 }
 0x5e3   : > { %v7466_v30 = vpop.f32.mrb[44].mxu0 }
 0x5e4   : > { %9030 = vst [vmem:[#allocation22_spill] sm:$0xff] %v7466_v30  ;;  %v7468_v8 = vpop.f32.mrb[45].mxu0 }
 0x5e5   : > { %9031 = vst [vmem:[#allocation23_spill] sm:$0xff] %v7468_v8  ;;  %v7470_v42 = vpop.f32.mrb[46].mxu0 }
 0x5e6   : > { %9032 = vst [vmem:[#allocation24_spill] sm:$0xff] %v7470_v42  ;;  %v7472_v40 = vpop.f32.mrb[47].mxu0 }
 0x5e7   : > { %9033 = vst [vmem:[#allocation25_spill] sm:$0xff] %v7472_v40 }
 0x5eb   : > { %v5598_v35 = vpop.f32.mrb[48].mxu0 }
 0x5ec   : > { %v2228_v41 = vadd.f32 %v5598_v35, %v7228_v4  ;;  %v2219_v12 = vpop.f32.mrb[49].mxu0 }
 0x5ed   : > { %v5599_v36 = vpop.f32.mrb[50].mxu0  ;;  %v2220_v14 = vadd.f32 %v7228_v4, %v2219_v12 }
 0x5ee   : > { %2286 = vmax.xlane.f32.xlu0 %v2228_v41  ;;  %v2222_v58 = vpop.f32.mrb[51].mxu0  ;;  %v2231_v45 = vadd.f32 %v5599_v36, %v7228_v4 }
 0x5ef   : > { %v2223_v19 = vadd.f32 %v7228_v4, %v2222_v58 }
 0x5f1   : > { %2284 = vmax.xlane.f32.xlu1 %v2223_v19 }
 0x5f2   : > { %2282 = vmax.xlane.f32.xlu0 %v2220_v14 }
 0x5f3   : > { %v5602_v38 = vpop.f32.mrb[52].mxu0 }
 0x5f4   : > { %v2235_v0 = vpop.f32.mrb[53].mxu0  ;;  %v7482_v50 = vadd.f32 %v5602_v38, %v7228_v4 }
 0x5f5   : > { %v5603_v26 = vpop.f32.mrb[54].mxu0  ;;  %v7490_v20 = vadd.f32 %v7228_v4, %v2235_v0 }
 0x5f6   : > { %v7479_v47 = vadd.f32 %v5603_v26, %v7228_v4  ;;  %2288 = vmax.xlane.f32.xlu0 %v2231_v45  ;;  %v2238_v52 = vpop.f32.mrb[55].mxu0 }
 0x5f7   : > { %v7486_v55 = vadd.f32 %v7228_v4, %v2238_v52 }
 0x5f8   : > { %2296 = vmax.xlane.f32.xlu1 %v7479_v47 }
 0x5fa   : > { %2294 = vmax.xlane.f32.xlu0 %v7482_v50 }
 0x5fb   : > { %v5606_v61 = vpop.f32.mrb[56].mxu0 }
 0x5fc   : > { %2292 = vmax.xlane.f32.xlu1 %v7486_v55  ;;  %v2251_v62 = vpop.f32.mrb[57].mxu0  ;;  %v7498_v44 = vadd.f32 %v5606_v61, %v7228_v4 }
 0x5fd   : > { %v5607_v43 = vpop.f32.mrb[58].mxu0  ;;  %v7506_v36 = vadd.f32 %v7228_v4, %v2251_v62 }
 0x5fe   : > { %v7494_v60 = vadd.f32 %v5607_v43, %v7228_v4  ;;  %2290 = vmax.xlane.f32.xlu0 %v7490_v20  ;;  %v2254_v27 = vpop.f32.mrb[59].mxu0  ;;  %v7530_v43 = vpop.permute.xlu1 %2581 }
 0x5ff   : > { %v7502_v35 = vadd.f32 %v7228_v4, %v2254_v27 }
 0x600   : > { %2304 = vmax.xlane.f32.xlu1 %v7494_v60 }
 0x602   : > { %2302 = vmax.xlane.f32.xlu0 %v7498_v44 }
 0x603   : > { %v5610_v12 = vpop.f32.mrb[60].mxu0 }
 0x604   : > { %2300 = vmax.xlane.f32.xlu1 %v7502_v35  ;;  %v2267_v58 = vpop.f32.mrb[61].mxu0  ;;  %v7511_v26 = vadd.f32 %v5610_v12, %v7228_v4 }
 0x605   : > { %v5611_v38 = vpop.f32.mrb[62].mxu0  ;;  %v7515_v52 = vadd.f32 %v7228_v4, %v2267_v58 }
 0x606   : > { %2298 = vmax.xlane.f32.xlu0 %v7506_v36  ;;  %v2270_v0 = vpop.f32.mrb[63].mxu0  ;;  %v7523_v61 = vadd.f32 %v5611_v38, %v7228_v4 }
 0x607   : > { %v7527_v62 = vadd.f32 %v7228_v4, %v2270_v0 }
 0x60a   : > { %2310 = vmax.xlane.f32.xlu0 %v7511_v26 }
 0x60e   : > { %2306 = vmax.xlane.f32.xlu0 %v7515_v52 }
 0x615   : > { %2585 = vrot.lane.b32.xlu1 %v7106_v28, %s6490_s23 }
 0x624   : > { %2583 = vrot.lane.b32.xlu0 %v7110_v7, %s6490_s23 }
 0x639   : > { %2312 = vmax.xlane.f32.xlu1 %v7523_v61 }
 0x63d   : > { %2308 = vmax.xlane.f32.xlu1 %v7527_v62 }
 0x67b   : > { %v2287_v27 = vpop.xlane.xlu0 %2286 }
 0x67c   : > { %v2316_v12 = vsub.f32 %v2228_v41, %v2287_v27 }
 0x67e   : > { %v2334_v58 = vmul.f32 1.442695, %v2316_v12  ;;  %v2285_v8 = vpop.xlane.xlu1 %2284 }
 0x67f   : > { %v2315_v40 = vsub.f32 %v2223_v19, %v2285_v8  ;;  %v2283_v30 = vpop.xlane.xlu0 %2282 }
 0x680   : > { %6144 = vpow2.f32 %v2334_v58  ;;  %v2314_v42 = vsub.f32 %v2220_v14, %v2283_v30 }
 0x681   : > { %v2332_v6 = vmul.f32 1.442695, %v2315_v40 }
 0x682   : > { %v2330_v38 = vmul.f32 1.442695, %v2314_v42 }
 0x683   : > { %6146 = vpow2.f32 %v2332_v6  ;;  %v2289_v49 = vpop.xlane.xlu0 %2288 }
 0x684   : > { %6148 = vpow2.f32 %v2330_v38  ;;  %v2317_v3 = vsub.f32 %v2231_v45, %v2289_v49 }
 0x685   : > { %v2297_v49 = vpop.xlane.xlu1 %2296 }
 0x686   : > { %v2336_v4 = vmul.f32 1.442695, %v2317_v3  ;;  %v2321_v38 = vsub.f32 %v7479_v47, %v2297_v49 }
 0x687   : > { %v2295_v6 = vpop.xlane.xlu0 %2294 }
 0x688   : > { %6150 = vpow2.f32 %v2336_v4  ;;  %v2320_v42 = vsub.f32 %v7482_v50, %v2295_v6  ;;  %v2344_v63 = vmul.f32 1.442695, %v2321_v38 }
 0x689   : > { %v2293_v40 = vpop.xlane.xlu1 %2292 }
 0x68a   : > { %v7532_v0 = vpop.eup %6144  ;;  %v2342_v14 = vmul.f32 1.442695, %v2320_v42  ;;  %v2319_v27 = vsub.f32 %v7486_v55, %v2293_v40 }
 0x68b   : > { %2366 = vadd.xlane.f32.xlu1 %v7532_v0  ;;  %v2291_v3 = vpop.xlane.xlu0 %2290 }
 0x68c   : > { %v2318_v45 = vsub.f32 %v7490_v20, %v2291_v3  ;;  %6152 = vpow2.f32 %v2342_v14  ;;  %v2340_v31 = vmul.f32 1.442695, %v2319_v27 }
 0x68d   : > { %v7535_v18 = vpop.eup %6146  ;;  %v2305_v12 = vpop.xlane.xlu1 %2304 }
 0x68e   : > { %v7537_v41 = vpop.eup %6148  ;;  %2364 = vadd.xlane.f32.xlu0 %v7535_v18  ;;  %v2338_v4 = vmul.f32 1.442695, %v2318_v45  ;;  %v2325_v47 = vsub.f32 %v7494_v60, %v2305_v12 }
 0x68f   : > { %2362 = vadd.xlane.f32.xlu1 %v7537_v41  ;;  %v2303_v8 = vpop.xlane.xlu0 %2302 }
 0x690   : > { %v2324_v2 = vsub.f32 %v7498_v44, %v2303_v8  ;;  %6154 = vpow2.f32 %v2338_v4 }
 0x691   : > { %v2301_v46 = vpop.xlane.xlu1 %2300  ;;  %6156 = vpow2.f32 %v2340_v31 }
 0x692   : > { %v7541_v30 = vpop.eup %6150  ;;  %v2350_v6 = vmul.f32 1.442695, %v2324_v2  ;;  %6158 = vpow2.f32 %v2344_v63  ;;  %v2352_v2 = vmul.f32 1.442695, %v2325_v47 }
 0x693   : > { %2368 = vadd.xlane.f32.xlu1 %v7541_v30  ;;  %v2299_v19 = vpop.xlane.xlu0 %2298 }
 0x694   : > { %v2322_v20 = vsub.f32 %v7506_v36, %v2299_v19  ;;  %6160 = vpow2.f32 %v2350_v6  ;;  %v2323_v36 = vsub.f32 %v7502_v35, %v2301_v46 }
 0x695   : > { %v7559_v44 = vpop.permute.xlu1 %2585 }
 0x696   : > { %v2346_v49 = vmul.f32 1.442695, %v2322_v20  ;;  %v7557_v40 = vpop.eup %6152  ;;  %v2348_v8 = vmul.f32 1.442695, %v2323_v36 }
 0x697   : > { %v2311_v58 = vpop.xlane.xlu0 %2310 }
 0x698   : > { %v2328_v50 = vsub.f32 %v7511_v26, %v2311_v58 }
 0x69a   : > { %v2358_v55 = vmul.f32 1.442695, %v2328_v50  ;;  %v7563_v63 = vpop.eup %6154 }
 0x69b   : > { %v2307_v3 = vpop.xlane.xlu0 %2306 }
 0x69c   : > { %v2326_v42 = vsub.f32 %v7515_v52, %v2307_v3  ;;  %6162 = vpow2.f32 %v2358_v55  ;;  %v7565_v52 = vpop.eup %6156 }
 0x69d   : > { %6164 = vpow2.f32 %v2346_v49  ;;  %v7570_v14 = vpop.eup %6158 }
 0x69e   : > { %v2354_v31 = vmul.f32 1.442695, %v2326_v42  ;;  %v7572_v46 = vpop.eup %6160 }
 0x69f   : > { %v2584_v6 = vpop.permute.xlu0 %2583 }
 0x6a0   : > { %6166 = vpow2.f32 %v2354_v31 }
 0x6a1   : > { %6168 = vpow2.f32 %v2352_v2 }
 0x6a4   : > { %2587 = vrot.lane.b32.xlu0 %v7130_v29, %s6490_s23  ;;  %2589 = vrot.lane.b32.xlu1 %v7126_v9, %s6490_s23 }
 0x6a6   : > { %v7577_v27 = vpop.eup %6162 }
 0x6a7   : > { %v7579_v12 = vpop.eup %6164 }
 0x6aa   : > { %v7583_v58 = vpop.eup %6166 }
 0x6ab   : > { %v7585_v38 = vpop.eup %6168 }
 0x6c3   : > { %2374 = vadd.xlane.f32.xlu0 %v7557_v40 }
 0x6c6   : > { %v2313_v26 = vpop.xlane.xlu1 %2312 }
 0x6c7   : > { %v2329_v60 = vsub.f32 %v7523_v61, %v2313_v26  ;;  %2370 = vadd.xlane.f32.xlu0 %v7563_v63 }
 0x6c8   : > { %2372 = vadd.xlane.f32.xlu1 %v7565_v52 }
 0x6c9   : > { %v2360_v19 = vmul.f32 1.442695, %v2329_v60 }
 0x6ca   : > { %v2309_v45 = vpop.xlane.xlu1 %2308 }
 0x6cb   : > { %6170 = vpow2.f32 %v2360_v19  ;;  %v2327_v35 = vsub.f32 %v7527_v62, %v2309_v45  ;;  %2376 = vadd.xlane.f32.xlu0 %v7570_v14  ;;  %v2620_v19 = vsel %vm1694_vm2, %v7437_v51, 0 }
 0x6cc   : > { %2382 = vadd.xlane.f32.xlu1 %v7572_v46  ;;  %6172 = vpow2.f32 %v2348_v8 }
 0x6cd   : > { %v2356_v61 = vmul.f32 1.442695, %v2327_v35 }
 0x6cf   : > { %2390 = vadd.xlane.f32.xlu0 %v7577_v27  ;;  %6174 = vpow2.f32 %v2356_v61 }
 0x6d0   : > { %2378 = vadd.xlane.f32.xlu1 %v7579_v12 }
 0x6d3   : > { %2386 = vadd.xlane.f32.xlu0 %v7583_v58 }
 0x6d4   : > { %2384 = vadd.xlane.f32.xlu1 %v7585_v38 }
 0x6d5   : > { %v7589_v62 = vpop.eup %6170 }
 0x6d6   : > { %v7591_v4 = vpop.eup %6172 }
 0x6d7   : > { %2392 = vadd.xlane.f32.xlu0 %v7589_v62 }
 0x6d8   : > { %2380 = vadd.xlane.f32.xlu1 %v7591_v4 }
 0x6d9   : > { %v7595_v50 = vpop.eup %6174 }
 0x6dc   : > { %2388 = vadd.xlane.f32.xlu1 %v7595_v50 }
 0x6ed   : > { %2593 = vrot.lane.b32.xlu1 %v7146_v23, %s6490_s23  ;;  %2591 = vrot.lane.b32.xlu0 %v7150_v25, %s6490_s23 }
 0x6f1   : > { %2565 = vrot.lane.b32.xlu1 %v7076_v39, %s6490_s23  ;;  %2563 = vrot.lane.b32.xlu0 %v7080_v16, %s6490_s23 }
 0x6f5   : > { %2569 = vrot.lane.b32.xlu1 %v7104_v13, %s6490_s23  ;;  %2567 = vrot.lane.b32.xlu0 %v7108_v59, %s6490_s23 }
 0x6f9   : > { %2573 = vrot.lane.b32.xlu1 %v7124_v5, %s6490_s23  ;;  %2571 = vrot.lane.b32.xlu0 %v7128_v56, %s6490_s23 }
 0x6fd   : > { %2577 = vrot.lane.b32.xlu1 %v7144_v22, %s6490_s23  ;;  %2575 = vrot.lane.b32.xlu0 %v7148_v24, %s6490_s23 }
 0x701   : > { %2894 = vrot.lane.b32.xlu1 %v7161_v33, %s6490_s23  ;;  %2892 = vrot.lane.b32.xlu0 %v7163_v34, %s6490_s23 }
 0x705   : > { %2898 = vrot.lane.b32.xlu1 %v7172_v1, %s6490_s23  ;;  %2896 = vrot.lane.b32.xlu0 %v7175_v21, %s6490_s23 }
 0x709   : > { %2902 = vrot.lane.b32.xlu1 %v7184_v32, %s6490_s23  ;;  %2900 = vrot.lane.b32.xlu0 %v7187_v57, %s6490_s23 }
 0x70d   : > { %2906 = vrot.lane.b32.xlu1 %v7196_v10, %s6490_s23  ;;  %2904 = vrot.lane.b32.xlu0 %v7199_v11, %s6490_s23 }
 0x711   : > { %3031 = vrot.lane.b32.xlu1 %v7078_v48, %s6491_s29  ;;  %3029 = vrot.lane.b32.xlu0 %v7082_v17, %s6491_s29 }
 0x718   : > { %v2367_v20 = vpop.xlane.xlu1 %2366 }
 0x71b   : > { %v2365_v3 = vpop.xlane.xlu0 %2364 }
 0x71c   : > { %6176 = vrcp.f32 %v2365_v3  ;;  %v2363_v55 = vpop.xlane.xlu1 %2362 }
 0x71d   : > { %6178 = vrcp.f32 %v2363_v55 }
 0x71e   : > { %6180 = vrcp.f32 %v2367_v20 }
 0x71f   : > { %v2588_v51 = vpop.permute.xlu0 %2587 }
 0x720   : > { %v2369_v42 = vpop.xlane.xlu1 %2368 }
 0x721   : > { %6182 = vrcp.f32 %v2369_v42 }
 0x726   : > { %v6177_v47 = vpop.eup %6176 }
 0x727   : > { %v6179_v49 = vpop.eup %6178  ;;  %v2411_v31 = vmul.f32 %v6177_v47, %v7535_v18  ;;  %v2623_v18 = vsel %vm1694_vm2, %v7530_v43, 0 }
 0x728   : > { %v2410_v2 = vmul.f32 %v6179_v49, %v7537_v41  ;;  %v6181_v36 = vpop.eup %6180  ;;  %v2629_v41 = vsel %vm1694_vm2, %v7559_v44, 0 }
 0x729   : > { %v2412_v17 = vmul.f32 %v6181_v36, %v7532_v0  ;;  %v2626_v0 = vsel %vm1694_vm2, %v2584_v6, 0 }
 0x72a   : > { %v2426_v48 = vpack.c.bf16 %v2411_v31, %v2410_v2 }
 0x72b   : > { %v6183_v26 = vpop.eup %6182 }
 0x72c   : > { %v2413_v60 = vmul.f32 %v6183_v26, %v7541_v30  ;;  %5628 = vmatprep.mubr.bf16.mxu1 %v2426_v48  ;;  %v2632_v30 = vsel %vm1694_vm2, %v2588_v51, 0 }
 0x72e   : > { %v2427_v8 = vpack.c.bf16 %v2413_v60, %v2412_v17 }
 0x730   : > { %5629 = vmatmul.mubr.bf16.vlgmr.msra.gmra.mrb[32].mxu1 %v2427_v8 }
 0x731   : > { %5645 = vmatpush3.bf16.xpose.msra.mxu1 %v2620_v19 }
 0x732   : > { %5853 = vmatprep.subr.msk.bf16.mxu1 %vm1694_vm2, %v7530_v43  ;;  %v2590_v43 = vpop.permute.xlu1 %2589 }
 0x739   : > { %5647 = vmatpush3.bf16.xpose.msra.mxu1 %v2623_v18 }
 0x73a   : > { %5854 = vmatprep.subr.msk.bf16.mxu1 %vm1694_vm2, %v2584_v6  ;;  %v2635_v6 = vsel %vm1694_vm2, %v2590_v43, 0 }
 0x741   : > { %5649 = vmatpush3.bf16.xpose.msra.mxu1 %v2626_v0 }
 0x742   : > { %5855 = vmatprep.subr.msk.bf16.mxu1 %vm1694_vm2, %v7559_v44 }
 0x749   : > { %5651 = vmatpush3.bf16.xpose.msra.mxu1 %v2629_v41 }
 0x74a   : > { %5856 = vmatprep.subr.msk.bf16.mxu1 %vm1694_vm2, %v2588_v51 }
 0x750   : > { %v2375_v45 = vpop.xlane.xlu0 %2374 }
 0x751   : > { %5653 = vmatpush3.bf16.xpose.msra.mxu1 %v2632_v30 }
 0x752   : > { %5857 = vmatprep.subr.msk.bf16.mxu1 %vm1694_vm2, %v2590_v43 }
 0x754   : > { %v2371_v35 = vpop.xlane.xlu0 %2370 }
 0x755   : > { %6184 = vrcp.f32 %v2371_v35  ;;  %v2373_v61 = vpop.xlane.xlu1 %2372 }
 0x756   : > { %6186 = vrcp.f32 %v2373_v61 }
 0x757   : > { %6188 = vrcp.f32 %v2375_v45 }
 0x758   : > { %v2377_v20 = vpop.xlane.xlu0 %2376 }
 0x759   : > { %5655 = vmatpush3.bf16.xpose.msra.mxu1 %v2635_v6  ;;  %6190 = vrcp.f32 %v2377_v20  ;;  %v2383_v44 = vpop.xlane.xlu1 %2382 }
 0x75c   : > { %v2391_v3 = vpop.xlane.xlu0 %2390 }
 0x75d   : > { %v2379_v55 = vpop.xlane.xlu1 %2378 }
 0x75f   : > { %v6185_v42 = vpop.eup %6184 }
 0x760   : > { %v6187_v47 = vpop.eup %6186  ;;  %v2387_v49 = vpop.xlane.xlu0 %2386  ;;  %v2414_v31 = vmul.f32 %v6185_v42, %v7563_v63 }
 0x761   : > { %v6189_v2 = vpop.eup %6188  ;;  %v2385_v36 = vpop.xlane.xlu1 %2384  ;;  %v2415_v48 = vmul.f32 %v6187_v47, %v7565_v52 }
 0x762   : > { %6192 = vrcp.f32 %v2385_v36  ;;  %v2416_v8 = vmul.f32 %v6189_v2, %v7557_v40 }
 0x763   : > { %v6191_v26 = vpop.eup %6190  ;;  %v2428_v17 = vpack.c.bf16 %v2415_v48, %v2414_v31  ;;  %6194 = vrcp.f32 %v2379_v55 }
 0x764   : > { %v2393_v60 = vpop.xlane.xlu0 %2392  ;;  %v2417_v19 = vmul.f32 %v6191_v26, %v7570_v14  ;;  %6196 = vrcp.f32 %v2383_v44 }
 0x765   : > { %v2381_v18 = vpop.xlane.xlu1 %2380  ;;  %5632 = vmatprep.mubr.bf16.mxu1 %v2428_v17 }
 0x766   : > { %6198 = vrcp.f32 %v2381_v18  ;;  %v2429_v0 = vpack.c.bf16 %v2417_v19, %v2416_v8 }
 0x767   : > { %6200 = vrcp.f32 %v2387_v49 }
 0x768   : > { %5633 = vmatmul.mubr.bf16.gmra.mrb[36].mxu1 %v2429_v0  ;;  %v2592_v63 = vpop.permute.xlu0 %2591 }
 0x769   : > { %v2389_v41 = vpop.xlane.xlu1 %2388  ;;  %5858 = vmatprep.subr.msk.bf16.mxu1 %vm1694_vm2, %v2592_v63  ;;  %v2638_v52 = vsel %vm1694_vm2, %v2592_v63, 0 }
 0x76a   : > { %6202 = vrcp.f32 %v2389_v41  ;;  %5657 = vmatpush3.bf16.xpose.msra.mxu1 %v2638_v52 }
 0x76b   : > { %6204 = vrcp.f32 %v2393_v60 }
 0x76c   : > { %v2564_v51 = vpop.permute.xlu0 %2563  ;;  %v6193_v40 = vpop.eup %6192  ;;  %6206 = vrcp.f32 %v2391_v3 }
 0x76d   : > { %v2594_v14 = vpop.permute.xlu1 %2593  ;;  %v6195_v30 = vpop.eup %6194  ;;  %v2421_v61 = vmul.f32 %v6193_v40, %v7585_v38 }
 0x76e   : > { %5859 = vmatprep.subr.msk.bf16.mxu1 %vm1694_vm2, %v2594_v14  ;;  %v6197_v45 = vpop.eup %6196  ;;  %v2641_v20 = vsel %vm1694_vm2, %v2594_v14, 0  ;;  %v2418_v44 = vmul.f32 %v6195_v30, %v7579_v12 }
 0x76f   : > { %v2420_v3 = vmul.f32 %v6197_v45, %v7572_v46 }
 0x770   : > { %v6199_v43 = vpop.eup %6198  ;;  %v2568_v35 = vpop.permute.xlu0 %2567 }
 0x771   : > { %v2566_v6 = vpop.permute.xlu1 %2565  ;;  %v2419_v55 = vmul.f32 %v6199_v43, %v7591_v4  ;;  %v6201_v42 = vpop.eup %6200  ;;  %v2431_v2 = vpack.c.bf16 %v2421_v61, %v2420_v3 }
 0x772   : > { %5659 = vmatpush3.bf16.xpose.msra.mxu1 %v2641_v20  ;;  %v2422_v38 = vmul.f32 %v6201_v42, %v7583_v58 }
 0x773   : > { %v2430_v47 = vpack.c.bf16 %v2419_v55, %v2418_v44 }
 0x774   : > { %v6203_v49 = vpop.eup %6202  ;;  %v2572_v31 = vpop.permute.xlu0 %2571 }
 0x775   : > { %v6205_v36 = vpop.eup %6204  ;;  %v2570_v48 = vpop.permute.xlu1 %2569  ;;  %5636 = vmatprep.mubr.bf16.mxu1 %v2430_v47  ;;  %v2423_v26 = vmul.f32 %v6203_v49, %v7595_v50 }
 0x776   : > { %5637 = vmatmul.mubr.bf16.gmra.mrb[40].mxu1 %v2431_v2  ;;  %v6207_v17 = vpop.eup %6206  ;;  %v2425_v4 = vmul.f32 %v6205_v36, %v7589_v62 }
 0x777   : > { %v2432_v12 = vpack.c.bf16 %v2423_v26, %v2422_v38  ;;  %v2424_v46 = vmul.f32 %v6207_v17, %v7577_v27 }
 0x778   : > { %v2576_v60 = vpop.permute.xlu0 %2575 }
 0x779   : > { %v2574_v8 = vpop.permute.xlu1 %2573  ;;  %5640 = vmatprep.mubr.bf16.mxu1 %v2432_v12  ;;  %v2433_v18 = vpack.c.bf16 %v2425_v4, %v2424_v46 }
 0x77c   : > { %v2893_v19 = vpop.permute.xlu0 %2892 }
 0x77d   : > { %v2578_v0 = vpop.permute.xlu1 %2577  ;;  %5676 = vmatprep.subr.bf16.mxu0 %v2893_v19 }
 0x77e   : > { %5641 = vmatmul.mubr.bf16.gmra.mrb[44].mxu1 %v2433_v18  ;;  %5677 = vmatpush3.bf16.msra.mxu0 %v2893_v19 }
 0x77f   : > { %5660 = vmatprep.mubr.msk.bf16.mxu1 %vm1694_vm2, %v2564_v51 }
 0x780   : > { %v2897_v50 = vpop.permute.xlu0 %2896 }
 0x781   : > { %v2895_v58 = vpop.permute.xlu1 %2894 }
 0x782   : > { %5678 = vmatprep.subr.bf16.mxu0 %v2895_v58 }
 0x783   : > { %5679 = vmatpush3.bf16.msra.mxu0 %v2895_v58 }
 0x784   : > { %5680 = vmatprep.subr.bf16.mxu0 %v2897_v50  ;;  %v2901_v27 = vpop.permute.xlu0 %2900 }
 0x785   : > { %v2899_v62 = vpop.permute.xlu1 %2898 }
 0x786   : > { %5661 = vmatmul.mubr.msk.bf16.vlgmr.msra.gmra.mrb[48].mxu1 %vm1694_vm2, %v2566_v6 }
 0x787   : > { %5664 = vmatprep.mubr.msk.bf16.mxu1 %vm1694_vm2, %v2568_v35  ;;  %5681 = vmatpush3.bf16.msra.mxu0 %v2897_v50 }
 0x788   : > { %5682 = vmatprep.subr.bf16.mxu0 %v2899_v62  ;;  %v2905_v41 = vpop.permute.xlu0 %2904 }
 0x789   : > { %v2903_v63 = vpop.permute.xlu1 %2902 }
 0x78b   : > { %5683 = vmatpush3.bf16.msra.mxu0 %v2899_v62 }
 0x78c   : > { %5684 = vmatprep.subr.bf16.mxu0 %v2901_v27  ;;  %v7681_v51 = vpop.permute.xlu0 %3029 }
 0x78d   : > { %v2907_v52 = vpop.permute.xlu1 %2906 }
 0x78e   : > { %5665 = vmatmul.mubr.msk.bf16.gmra.mrb[52].mxu1 %vm1694_vm2, %v2570_v48 }
 0x78f   : > { %5668 = vmatprep.mubr.msk.bf16.mxu1 %vm1694_vm2, %v2572_v31  ;;  %5685 = vmatpush3.bf16.msra.mxu0 %v2901_v27 }
 0x790   : > { %5686 = vmatprep.subr.bf16.mxu0 %v2903_v63 }
 0x793   : > { %5687 = vmatpush3.bf16.msra.mxu0 %v2903_v63 }
 0x794   : > { %5688 = vmatprep.subr.bf16.mxu0 %v2905_v41 }
 0x796   : > { %5669 = vmatmul.mubr.msk.bf16.gmra.mrb[56].mxu1 %vm1694_vm2, %v2574_v8  ;;  %v7737_v8 = vld [vmem:[%s9017_s18] ss:$0 sm:$0xff] }
 0x797   : > { %5672 = vmatprep.mubr.msk.bf16.mxu1 %vm1694_vm2, %v2576_v60  ;;  %5689 = vmatpush3.bf16.msra.mxu0 %v2905_v41 }
 0x798   : > { %5690 = vmatprep.subr.bf16.mxu0 %v2907_v52 }
 0x79b   : > { %5691 = vmatpush3.bf16.msra.mxu0 %v2907_v52 }
 0x79c   : > { %5860 = vmatprep.subr.msk.bf16.mxu0 %vm1694_vm2, %v7681_v51 }
 0x79e   : > { %5673 = vmatmul.mubr.msk.bf16.gmra.mrb[60].mxu1 %vm1694_vm2, %v2578_v0 }
 0x803   : > { %v7686_v40 = vpop.f32.mrb[32].mxu1 }
 0x804   : > { %v7688_v14 = vpop.f32.mrb[33].mxu1 }
 0x805   : > { %v7690_v30 = vpop.f32.mrb[34].mxu1 }
 0x806   : > { %v7694_v43 = vpop.f32.mrb[35].mxu1 }
 0x83b   : > { %v7698_v61 = vpop.f32.mrb[36].mxu1 }
 0x83c   : > { %v7700_v6 = vpop.f32.mrb[37].mxu1 }
 0x83d   : > { %9034 = vst [vmem:[#allocation26_spill] sm:$0xff] %v7700_v6  ;;  %v7702_v20 = vpop.f32.mrb[38].mxu1 }
 0x83e   : > { %v7706_v55 = vpop.f32.mrb[39].mxu1 }
 0x849   : > { %v7710_v3 = vpop.f32.mrb[40].mxu1 }
 0x84a   : > { %v7712_v47 = vpop.f32.mrb[41].mxu1 }
 0x84b   : > { %9035 = vst [vmem:[#allocation27_spill] sm:$0xff] %v7712_v47  ;;  %v7714_v49 = vpop.f32.mrb[42].mxu1 }
 0x84c   : > { %v7718_v2 = vpop.f32.mrb[43].mxu1 }
 0x84d   : > { %9036 = vst [vmem:[#allocation28_spill] sm:$0xff] %v7718_v2 }
 0x851   : > { %v7722_v48 = vpop.f32.mrb[44].mxu1 }
 0x852   : > { %9037 = vst [vmem:[#allocation29_spill] sm:$0xff] %v7722_v48  ;;  %v7724_v38 = vpop.f32.mrb[45].mxu1 }
 0x853   : > { %9038 = vst [vmem:[#allocation30_spill] sm:$0xff] %v7724_v38  ;;  %v7726_v26 = vpop.f32.mrb[46].mxu1 }
 0x854   : > { %9039 = vst [vmem:[#allocation31_spill] sm:$0xff] %v7726_v26  ;;  %v7730_v12 = vpop.f32.mrb[47].mxu1 }
 0x855   : > { %9040 = vst [vmem:[#allocation32_spill] sm:$0xff] %v7730_v12 }
 0x859   : > { %v5662_v4 = vpop.f32.mrb[48].mxu1 }
 0x85a   : > { %v2686_v46 = vadd.f32 %v7737_v8, %v5662_v4  ;;  %v2677_v19 = vpop.f32.mrb[49].mxu1 }
 0x85b   : > { %v5663_v18 = vpop.f32.mrb[50].mxu1  ;;  %v2678_v50 = vadd.f32 %v7737_v8, %v2677_v19 }
 0x85c   : > { %2744 = vmax.xlane.f32.xlu0 %v2686_v46  ;;  %v2680_v0 = vpop.f32.mrb[51].mxu1  ;;  %v2689_v27 = vadd.f32 %v7737_v8, %v5663_v18 }
 0x85d   : > { %v2681_v58 = vadd.f32 %v7737_v8, %v2680_v0 }
 0x85f   : > { %2742 = vmax.xlane.f32.xlu1 %v2681_v58 }
 0x860   : > { %2740 = vmax.xlane.f32.xlu0 %v2678_v50 }
 0x861   : > { %v5666_v62 = vpop.f32.mrb[52].mxu1 }
 0x862   : > { %v2693_v63 = vpop.f32.mrb[53].mxu1  ;;  %v7747_v60 = vadd.f32 %v7737_v8, %v5666_v62 }
 0x863   : > { %v5667_v41 = vpop.f32.mrb[54].mxu1  ;;  %v7755_v18 = vadd.f32 %v7737_v8, %v2693_v63 }
 0x864   : > { %v7744_v52 = vadd.f32 %v7737_v8, %v5667_v41  ;;  %2746 = vmax.xlane.f32.xlu0 %v2689_v27  ;;  %v2696_v4 = vpop.f32.mrb[55].mxu1 }
 0x865   : > { %v7751_v0 = vadd.f32 %v7737_v8, %v2696_v4 }
 0x866   : > { %2754 = vmax.xlane.f32.xlu1 %v7744_v52 }
 0x868   : > { %2752 = vmax.xlane.f32.xlu0 %v7747_v60 }
 0x869   : > { %v5670_v19 = vpop.f32.mrb[56].mxu1 }
 0x86a   : > { %2750 = vmax.xlane.f32.xlu1 %v7751_v0  ;;  %v2709_v41 = vpop.f32.mrb[57].mxu1  ;;  %v7763_v42 = vadd.f32 %v7737_v8, %v5670_v19 }
 0x86b   : > { %v5671_v17 = vpop.f32.mrb[58].mxu1  ;;  %v7771_v35 = vadd.f32 %v7737_v8, %v2709_v41 }
 0x86c   : > { %v7759_v36 = vadd.f32 %v7737_v8, %v5671_v17  ;;  %2748 = vmax.xlane.f32.xlu0 %v7755_v18  ;;  %v2712_v62 = vpop.f32.mrb[59].mxu1 }
 0x86d   : > { %v7767_v4 = vadd.f32 %v7737_v8, %v2712_v62 }
 0x86e   : > { %2762 = vmax.xlane.f32.xlu1 %v7759_v36 }
 0x870   : > { %2760 = vmax.xlane.f32.xlu0 %v7763_v42 }
 0x871   : > { %v5674_v63 = vpop.f32.mrb[60].mxu1 }
 0x872   : > { %2758 = vmax.xlane.f32.xlu1 %v7767_v4  ;;  %v2725_v17 = vpop.f32.mrb[61].mxu1  ;;  %v7776_v19 = vadd.f32 %v7737_v8, %v5674_v63 }
 0x873   : > { %v5675_v31 = vpop.f32.mrb[62].mxu1  ;;  %v7780_v62 = vadd.f32 %v7737_v8, %v2725_v17  ;;  %v7795_v17 = vpop.permute.xlu1 %3031 }
 0x874   : > { %2756 = vmax.xlane.f32.xlu0 %v7771_v35  ;;  %v2728_v44 = vpop.f32.mrb[63].mxu1  ;;  %v7788_v41 = vadd.f32 %v7737_v8, %v5675_v31 }
 0x875   : > { %v7792_v63 = vadd.f32 %v7737_v8, %v2728_v44 }
 0x878   : > { %2768 = vmax.xlane.f32.xlu0 %v7776_v19 }
 0x87c   : > { %2764 = vmax.xlane.f32.xlu0 %v7780_v62 }
 0x883   : > { %3035 = vrot.lane.b32.xlu1 %v7106_v28, %s6491_s29 }
 0x892   : > { %3033 = vrot.lane.b32.xlu0 %v7110_v7, %s6491_s29 }
 0x8a7   : > { %2770 = vmax.xlane.f32.xlu1 %v7788_v41 }
 0x8ab   : > { %2766 = vmax.xlane.f32.xlu1 %v7792_v63 }
 0x8e9   : > { %v2745_v45 = vpop.xlane.xlu0 %2744 }
 0x8ea   : > { %v2774_v54 = vsub.f32 %v2686_v46, %v2745_v45 }
 0x8ec   : > { %v2792_v15 = vmul.f32 1.442695, %v2774_v54  ;;  %v2743_v37 = vpop.xlane.xlu1 %2742 }
 0x8ed   : > { %v2773_v28 = vsub.f32 %v2681_v58, %v2743_v37  ;;  %v2741_v53 = vpop.xlane.xlu0 %2740 }
 0x8ee   : > { %6208 = vpow2.f32 %v2792_v15  ;;  %v2772_v7 = vsub.f32 %v2678_v50, %v2741_v53 }
 0x8ef   : > { %v2790_v38 = vmul.f32 1.442695, %v2773_v28 }
 0x8f0   : > { %v2788_v31 = vmul.f32 1.442695, %v2772_v7 }
 0x8f1   : > { %6210 = vpow2.f32 %v2790_v38  ;;  %v2747_v12 = vpop.xlane.xlu0 %2746 }
 0x8f2   : > { %6212 = vpow2.f32 %v2788_v31  ;;  %v2775_v48 = vsub.f32 %v2689_v27, %v2747_v12 }
 0x8f3   : > { %v2755_v45 = vpop.xlane.xlu1 %2754 }
 0x8f4   : > { %v2794_v44 = vmul.f32 1.442695, %v2775_v48  ;;  %v2779_v31 = vsub.f32 %v7744_v52, %v2755_v45 }
 0x8f5   : > { %v2753_v53 = vpop.xlane.xlu0 %2752 }
 0x8f6   : > { %6214 = vpow2.f32 %v2794_v44  ;;  %v2778_v38 = vsub.f32 %v7747_v60, %v2753_v53  ;;  %v2802_v2 = vmul.f32 1.442695, %v2779_v31 }
 0x8f7   : > { %v2751_v12 = vpop.xlane.xlu1 %2750 }
 0x8f8   : > { %v7797_v26 = vpop.eup %6208  ;;  %v2800_v58 = vmul.f32 1.442695, %v2778_v38  ;;  %v2777_v27 = vsub.f32 %v7751_v0, %v2751_v12 }
 0x8f9   : > { %2824 = vadd.xlane.f32.xlu1 %v7797_v26  ;;  %v2749_v15 = vpop.xlane.xlu0 %2748 }
 0x8fa   : > { %v2776_v50 = vsub.f32 %v7755_v18, %v2749_v15  ;;  %6216 = vpow2.f32 %v2800_v58  ;;  %v2798_v44 = vmul.f32 1.442695, %v2777_v27 }
 0x8fb   : > { %v7800_v47 = vpop.eup %6210  ;;  %v2763_v28 = vpop.xlane.xlu1 %2762 }
 0x8fc   : > { %v7802_v54 = vpop.eup %6212  ;;  %2822 = vadd.xlane.f32.xlu0 %v7800_v47  ;;  %v2783_v52 = vsub.f32 %v7759_v36, %v2763_v28 }
 0x8fd   : > { %2820 = vadd.xlane.f32.xlu1 %v7802_v54  ;;  %v2761_v48 = vpop.xlane.xlu0 %2760 }
 0x8ff   : > { %v2759_v6 = vpop.xlane.xlu1 %2758 }
 0x900   : > { %v7806_v37 = vpop.eup %6214 }
 0x901   : > { %2826 = vadd.xlane.f32.xlu1 %v7806_v37  ;;  %v2757_v46 = vpop.xlane.xlu0 %2756 }
 0x902   : > { %v2780_v18 = vsub.f32 %v7771_v35, %v2757_v46  ;;  %v2781_v35 = vsub.f32 %v7767_v4, %v2759_v6 }
 0x904   : > { %v2804_v45 = vmul.f32 1.442695, %v2780_v18  ;;  %v7822_v12 = vpop.eup %6216  ;;  %v2806_v58 = vmul.f32 1.442695, %v2781_v35 }
 0x905   : > { %v2769_v7 = vpop.xlane.xlu0 %2768 }
 0x906   : > { %v2786_v60 = vsub.f32 %v7776_v19, %v2769_v7 }
 0x908   : > { %v2816_v0 = vmul.f32 1.442695, %v2786_v60 }
 0x909   : > { %v2765_v15 = vpop.xlane.xlu0 %2764 }
 0x90a   : > { %v2784_v38 = vsub.f32 %v7780_v62, %v2765_v15  ;;  %v3070_v15 = vsel %vm1694_vm2, %v7681_v51, 0 }
 0x90c   : > { %v2812_v19 = vmul.f32 1.442695, %v2784_v38 }
 0x912   : > { %3037 = vrot.lane.b32.xlu0 %v7130_v29, %s6491_s29  ;;  %3039 = vrot.lane.b32.xlu1 %v7126_v9, %s6491_s29  ;;  %v2796_v29 = vmul.f32 1.442695, %v2776_v50  ;;  %v2782_v9 = vsub.f32 %v7763_v42, %v2761_v48  ;;  %v7824_v42 = vpop.permute.xlu1 %3035  ;;  %v2810_v48 = vmul.f32 1.442695, %v2783_v52 }
 0x914   : > { %6218 = vpow2.f32 %v2796_v29  ;;  %v2808_v53 = vmul.f32 1.442695, %v2782_v9 }
 0x915   : > { %6220 = vpow2.f32 %v2798_v44 }
 0x916   : > { %6222 = vpow2.f32 %v2802_v2 }
 0x917   : > { %6224 = vpow2.f32 %v2808_v53 }
 0x918   : > { %6226 = vpow2.f32 %v2816_v0 }
 0x919   : > { %6228 = vpow2.f32 %v2804_v45 }
 0x91a   : > { %6230 = vpow2.f32 %v2812_v19 }
 0x91b   : > { %6232 = vpow2.f32 %v2810_v48 }
 0x91e   : > { %v7828_v2 = vpop.eup %6218 }
 0x91f   : > { %v7830_v62 = vpop.eup %6220 }
 0x920   : > { %v7835_v27 = vpop.eup %6222 }
 0x921   : > { %v7837_v6 = vpop.eup %6224 }
 0x922   : > { %v7842_v7 = vpop.eup %6226 }
 0x923   : > { %v7844_v31 = vpop.eup %6228 }
 0x924   : > { %v7848_v29 = vpop.eup %6230 }
 0x925   : > { %v7850_v44 = vpop.eup %6232 }
 0x931   : > { %2832 = vadd.xlane.f32.xlu0 %v7822_v12 }
 0x934   : > { %v2771_v46 = vpop.xlane.xlu1 %2770 }
 0x935   : > { %v2787_v36 = vsub.f32 %v7788_v41, %v2771_v46  ;;  %2828 = vadd.xlane.f32.xlu0 %v7828_v2 }
 0x936   : > { %2830 = vadd.xlane.f32.xlu1 %v7830_v62 }
 0x937   : > { %v2818_v50 = vmul.f32 1.442695, %v2787_v36 }
 0x938   : > { %v2767_v28 = vpop.xlane.xlu1 %2766 }
 0x939   : > { %6234 = vpow2.f32 %v2818_v50  ;;  %v2785_v4 = vsub.f32 %v7792_v63, %v2767_v28  ;;  %2834 = vadd.xlane.f32.xlu0 %v7835_v27 }
 0x93a   : > { %2840 = vadd.xlane.f32.xlu1 %v7837_v6  ;;  %6236 = vpow2.f32 %v2806_v58 }
 0x93b   : > { %v2814_v41 = vmul.f32 1.442695, %v2785_v4 }
 0x93d   : > { %2848 = vadd.xlane.f32.xlu0 %v7842_v7  ;;  %6238 = vpow2.f32 %v2814_v41 }
 0x93e   : > { %2836 = vadd.xlane.f32.xlu1 %v7844_v31 }
 0x941   : > { %2844 = vadd.xlane.f32.xlu0 %v7848_v29 }
 0x942   : > { %2842 = vadd.xlane.f32.xlu1 %v7850_v44 }
 0x943   : > { %v7854_v63 = vpop.eup %6234 }
 0x944   : > { %v7856_v9 = vpop.eup %6236 }
 0x945   : > { %2850 = vadd.xlane.f32.xlu0 %v7854_v63 }
 0x946   : > { %2838 = vadd.xlane.f32.xlu1 %v7856_v9 }
 0x947   : > { %v7860_v60 = vpop.eup %6238 }
 0x94a   : > { %2846 = vadd.xlane.f32.xlu1 %v7860_v60 }
 0x95b   : > { %3043 = vrot.lane.b32.xlu1 %v7146_v23, %s6491_s29  ;;  %3041 = vrot.lane.b32.xlu0 %v7150_v25, %s6491_s29 }
 0x95f   : > { %3015 = vrot.lane.b32.xlu1 %v7076_v39, %s6491_s29  ;;  %3013 = vrot.lane.b32.xlu0 %v7080_v16, %s6491_s29  ;;  %v3034_v39 = vpop.permute.xlu0 %3033 }
 0x963   : > { %3019 = vrot.lane.b32.xlu1 %v7104_v13, %s6491_s29  ;;  %3017 = vrot.lane.b32.xlu0 %v7108_v59, %s6491_s29 }
 0x967   : > { %3023 = vrot.lane.b32.xlu1 %v7124_v5, %s6491_s29  ;;  %3021 = vrot.lane.b32.xlu0 %v7128_v56, %s6491_s29 }
 0x96b   : > { %3027 = vrot.lane.b32.xlu1 %v7144_v22, %s6491_s29  ;;  %3025 = vrot.lane.b32.xlu0 %v7148_v24, %s6491_s29 }
 0x96f   : > { %3344 = vrot.lane.b32.xlu1 %v7161_v33, %s6491_s29  ;;  %3342 = vrot.lane.b32.xlu0 %v7163_v34, %s6491_s29 }
 0x973   : > { %3346 = vrot.lane.b32.xlu0 %v7175_v21, %s6491_s29 }
 0x986   : > { %v2825_v16 = vpop.xlane.xlu1 %2824 }
 0x989   : > { %v2823_v13 = vpop.xlane.xlu0 %2822 }
 0x98a   : > { %6240 = vrcp.f32 %v2823_v13  ;;  %v2821_v59 = vpop.xlane.xlu1 %2820 }
 0x98b   : > { %6242 = vrcp.f32 %v2821_v59 }
 0x98c   : > { %6244 = vrcp.f32 %v2825_v16 }
 0x98d   : > { %v3038_v51 = vpop.permute.xlu0 %3037 }
 0x98e   : > { %v2827_v5 = vpop.xlane.xlu1 %2826 }
 0x98f   : > { %6246 = vrcp.f32 %v2827_v5 }
 0x994   : > { %v6241_v56 = vpop.eup %6240 }
 0x995   : > { %v6243_v22 = vpop.eup %6242  ;;  %v2869_v23 = vmul.f32 %v6241_v56, %v7800_v47  ;;  %v3073_v47 = vsel %vm1694_vm2, %v7795_v17, 0 }
 0x996   : > { %v2868_v24 = vmul.f32 %v6243_v22, %v7802_v54  ;;  %v6245_v25 = vpop.eup %6244  ;;  %v3079_v54 = vsel %vm1694_vm2, %v7824_v42, 0 }
 0x997   : > { %v2870_v21 = vmul.f32 %v6245_v25, %v7797_v26  ;;  %v3076_v26 = vsel %vm1694_vm2, %v3034_v39, 0 }
 0x998   : > { %v2884_v33 = vpack.c.bf16 %v2869_v23, %v2868_v24 }
 0x999   : > { %v6247_v34 = vpop.eup %6246 }
 0x99a   : > { %v2871_v53 = vmul.f32 %v6247_v34, %v7806_v37  ;;  %5692 = vmatprep.mubr.bf16.mxu0 %v2884_v33  ;;  %v3082_v37 = vsel %vm1694_vm2, %v3038_v51, 0 }
 0x99c   : > { %v2885_v18 = vpack.c.bf16 %v2871_v53, %v2870_v21 }
 0x99e   : > { %5693 = vmatmul.mubr.bf16.vlgmr.msra.gmra.mrb[64].mxu0 %v2885_v18 }
 0x99f   : > { %5709 = vmatpush3.bf16.xpose.msra.mxu0 %v3070_v15 }
 0x9a0   : > { %5861 = vmatprep.subr.msk.bf16.mxu0 %vm1694_vm2, %v7795_v17  ;;  %v3040_v17 = vpop.permute.xlu1 %3039 }
 0x9a1   : > { %v3085_v45 = vsel %vm1694_vm2, %v3040_v17, 0 }
 0x9a7   : > { %5711 = vmatpush3.bf16.xpose.msra.mxu0 %v3073_v47 }
 0x9a8   : > { %5862 = vmatprep.subr.msk.bf16.mxu0 %vm1694_vm2, %v3034_v39 }
 0x9af   : > { %5713 = vmatpush3.bf16.xpose.msra.mxu0 %v3076_v26 }
 0x9b0   : > { %5863 = vmatprep.subr.msk.bf16.mxu0 %vm1694_vm2, %v7824_v42 }
 0x9b7   : > { %5715 = vmatpush3.bf16.xpose.msra.mxu0 %v3079_v54 }
 0x9b8   : > { %5864 = vmatprep.subr.msk.bf16.mxu0 %vm1694_vm2, %v3038_v51 }
 0x9be   : > { %v2833_v0 = vpop.xlane.xlu0 %2832 }
 0x9bf   : > { %5717 = vmatpush3.bf16.xpose.msra.mxu0 %v3082_v37 }
 0x9c0   : > { %5865 = vmatprep.subr.msk.bf16.mxu0 %vm1694_vm2, %v3040_v17 }
 0x9c2   : > { %v2829_v38 = vpop.xlane.xlu0 %2828 }
 0x9c3   : > { %6248 = vrcp.f32 %v2829_v38  ;;  %v2831_v52 = vpop.xlane.xlu1 %2830 }
 0x9c4   : > { %6250 = vrcp.f32 %v2831_v52 }
 0x9c5   : > { %6252 = vrcp.f32 %v2833_v0 }
 0x9c6   : > { %v2835_v19 = vpop.xlane.xlu0 %2834 }
 0x9c7   : > { %5719 = vmatpush3.bf16.xpose.msra.mxu0 %v3085_v45  ;;  %6254 = vrcp.f32 %v2835_v19  ;;  %v2841_v42 = vpop.xlane.xlu1 %2840 }
 0x9ca   : > { %v2849_v48 = vpop.xlane.xlu0 %2848 }
 0x9cb   : > { %v2837_v35 = vpop.xlane.xlu1 %2836 }
 0x9cd   : > { %v6249_v46 = vpop.eup %6248 }
 0x9ce   : > { %v6251_v36 = vpop.eup %6250  ;;  %v2845_v58 = vpop.xlane.xlu0 %2844  ;;  %v2872_v50 = vmul.f32 %v6249_v46, %v7828_v2 }
 0x9cf   : > { %v6253_v28 = vpop.eup %6252  ;;  %v2843_v4 = vpop.xlane.xlu1 %2842  ;;  %v2873_v41 = vmul.f32 %v6251_v36, %v7830_v62 }
 0x9d0   : > { %6256 = vrcp.f32 %v2843_v4  ;;  %v2874_v59 = vmul.f32 %v6253_v28, %v7822_v12 }
 0x9d1   : > { %v6255_v39 = vpop.eup %6254  ;;  %v2886_v16 = vpack.c.bf16 %v2873_v41, %v2872_v50  ;;  %6258 = vrcp.f32 %v2837_v35 }
 0x9d2   : > { %v2851_v13 = vpop.xlane.xlu0 %2850  ;;  %v2875_v5 = vmul.f32 %v6255_v39, %v7835_v27  ;;  %6260 = vrcp.f32 %v2841_v42 }
 0x9d3   : > { %v2839_v56 = vpop.xlane.xlu1 %2838  ;;  %5696 = vmatprep.mubr.bf16.mxu0 %v2886_v16 }
 0x9d4   : > { %6262 = vrcp.f32 %v2839_v56  ;;  %v2887_v22 = vpack.c.bf16 %v2875_v5, %v2874_v59 }
 0x9d5   : > { %6264 = vrcp.f32 %v2845_v58 }
 0x9d6   : > { %5697 = vmatmul.mubr.bf16.gmra.mrb[68].mxu0 %v2887_v22  ;;  %v3042_v2 = vpop.permute.xlu0 %3041 }
 0x9d7   : > { %v2847_v23 = vpop.xlane.xlu1 %2846  ;;  %5866 = vmatprep.subr.msk.bf16.mxu0 %vm1694_vm2, %v3042_v2  ;;  %v3088_v62 = vsel %vm1694_vm2, %v3042_v2, 0 }
 0x9d8   : > { %6266 = vrcp.f32 %v2847_v23  ;;  %5721 = vmatpush3.bf16.xpose.msra.mxu0 %v3088_v62 }
 0x9d9   : > { %6268 = vrcp.f32 %v2851_v13 }
 0x9da   : > { %v3014_v24 = vpop.permute.xlu0 %3013  ;;  %v6257_v12 = vpop.eup %6256  ;;  %6270 = vrcp.f32 %v2849_v48 }
 0x9db   : > { %v3044_v27 = vpop.permute.xlu1 %3043  ;;  %v6259_v25 = vpop.eup %6258  ;;  %v2879_v53 = vmul.f32 %v6257_v12, %v7850_v44 }
 0x9dc   : > { %5867 = vmatprep.subr.msk.bf16.mxu0 %vm1694_vm2, %v3044_v27  ;;  %v6261_v33 = vpop.eup %6260  ;;  %v3091_v15 = vsel %vm1694_vm2, %v3044_v27, 0  ;;  %v2876_v47 = vmul.f32 %v6259_v25, %v7844_v31 }
 0x9dd   : > { %v2878_v51 = vmul.f32 %v6261_v33, %v7837_v6 }
 0x9de   : > { %v6263_v34 = vpop.eup %6262  ;;  %v3018_v21 = vpop.permute.xlu0 %3017 }
 0x9df   : > { %v3016_v18 = vpop.permute.xlu1 %3015  ;;  %v2877_v26 = vmul.f32 %v6263_v34, %v7856_v9  ;;  %v6265_v54 = vpop.eup %6264  ;;  %v2889_v38 = vpack.c.bf16 %v2879_v53, %v2878_v51 }
 0x9e0   : > { %5723 = vmatpush3.bf16.xpose.msra.mxu0 %v3091_v15  ;;  %v2880_v44 = vmul.f32 %v6265_v54, %v7848_v29 }
 0x9e1   : > { %v2888_v37 = vpack.c.bf16 %v2877_v26, %v2876_v47 }
 0x9e2   : > { %v6267_v0 = vpop.eup %6266  ;;  %v3022_v17 = vpop.permute.xlu0 %3021 }
 0x9e3   : > { %v6269_v52 = vpop.eup %6268  ;;  %v3020_v45 = vpop.permute.xlu1 %3019  ;;  %5700 = vmatprep.mubr.bf16.mxu0 %v2888_v37  ;;  %v2881_v19 = vmul.f32 %v6267_v0, %v7860_v60 }
 0x9e4   : > { %5701 = vmatmul.mubr.bf16.gmra.mrb[72].mxu0 %v2889_v38  ;;  %v6271_v42 = vpop.eup %6270  ;;  %v2883_v9 = vmul.f32 %v6269_v52, %v7854_v63 }
 0x9e5   : > { %v2890_v31 = vpack.c.bf16 %v2881_v19, %v2880_v44  ;;  %v2882_v6 = vmul.f32 %v6271_v42, %v7842_v7 }
 0x9e6   : > { %v3026_v48 = vpop.permute.xlu0 %3025 }
 0x9e7   : > { %v3024_v35 = vpop.permute.xlu1 %3023  ;;  %5704 = vmatprep.mubr.bf16.mxu0 %v2890_v31  ;;  %v2891_v36 = vpack.c.bf16 %v2883_v9, %v2882_v6 }
 0x9ea   : > { %v3343_v46 = vpop.permute.xlu0 %3342 }
 0x9eb   : > { %v3028_v58 = vpop.permute.xlu1 %3027  ;;  %5740 = vmatprep.subr.bf16.mxu1 %v3343_v46 }
 0x9ec   : > { %5705 = vmatmul.mubr.bf16.gmra.mrb[76].mxu0 %v2891_v36  ;;  %5741 = vmatpush3.bf16.msra.mxu1 %v3343_v46 }
 0x9ed   : > { %5724 = vmatprep.mubr.msk.bf16.mxu0 %vm1694_vm2, %v3014_v24 }
 0x9ee   : > { %v3347_v60 = vpop.permute.xlu0 %3346 }
 0x9ef   : > { %v3345_v29 = vpop.permute.xlu1 %3344 }
 0x9f0   : > { %5742 = vmatprep.subr.bf16.mxu1 %v3345_v29 }
 0x9f1   : > { %5743 = vmatpush3.bf16.msra.mxu1 %v3345_v29 }
 0x9f2   : > { %5744 = vmatprep.subr.bf16.mxu1 %v3347_v60 }
 0x9f4   : > { %5725 = vmatmul.mubr.msk.bf16.vlgmr.msra.gmra.mrb[80].mxu0 %vm1694_vm2, %v3016_v18 }
 0x9f5   : > { %5728 = vmatprep.mubr.msk.bf16.mxu0 %vm1694_vm2, %v3018_v21  ;;  %5745 = vmatpush3.bf16.msra.mxu1 %v3347_v60 }
 0x9fc   : > { %5729 = vmatmul.mubr.msk.bf16.gmra.mrb[84].mxu0 %vm1694_vm2, %v3020_v45 }
 0x9fd   : > { %5732 = vmatprep.mubr.msk.bf16.mxu0 %vm1694_vm2, %v3022_v17 }
 0xa04   : > { %5733 = vmatmul.mubr.msk.bf16.gmra.mrb[88].mxu0 %vm1694_vm2, %v3024_v35 }
 0xa05   : > { %5736 = vmatprep.mubr.msk.bf16.mxu0 %vm1694_vm2, %v3026_v48 }
 0xa0c   : > { %5737 = vmatmul.mubr.msk.bf16.gmra.mrb[92].mxu0 %vm1694_vm2, %v3028_v58 }
 0xa71   : > { %v7933_v7 = vpop.f32.mrb[64].mxu0 }
 0xa72   : > { %v7935_v63 = vpop.f32.mrb[65].mxu0 }
 0xa73   : > { %v7937_v50 = vpop.f32.mrb[66].mxu0 }
 0xa74   : > { %v5929_v28 = vpack.i.bf16 %v7937_v50, %v7933_v7  ;;  %v7941_v4 = vpop.f32.mrb[67].mxu0  ;;  %v9043_v50 = vpack.i.bf16 %v7714_v49, %v7710_v3  ;;  %v9045_v3 = vld [vmem:[#allocation26_spill] sm:$0xff] }
 0xa75   : > { %v5924_v41 = vpack.i.bf16 %v7941_v4, %v7935_v63  ;;  %v9044_v4 = vpack.i.bf16 %v7694_v43, %v7688_v14  ;;  %v9046_v49 = vpack.i.bf16 %v7706_v55, %v9045_v3 }
 0xaa9   : > { %v7945_v39 = vpop.f32.mrb[68].mxu0 }
 0xaaa   : > { %v7947_v16 = vpop.f32.mrb[69].mxu0 }
 0xaab   : > { %v7949_v13 = vpop.f32.mrb[70].mxu0 }
 0xaac   : > { %v5949_v59 = vpack.i.bf16 %v7949_v13, %v7945_v39  ;;  %v7953_v5 = vpop.f32.mrb[71].mxu0  ;;  %v9048_v39 = vld [vmem:[#allocation27_spill] sm:$0xff] }
 0xaad   : > { %v5944_v56 = vpack.i.bf16 %v7953_v5, %v7947_v16 }
 0xab7   : > { %v7957_v22 = vpop.f32.mrb[72].mxu0 }
 0xab8   : > { %v7959_v2 = vpop.f32.mrb[73].mxu0 }
 0xab9   : > { %v7961_v23 = vpop.f32.mrb[74].mxu0 }
 0xaba   : > { %v7965_v24 = vpop.f32.mrb[75].mxu0 }
 0xabf   : > { %v7969_v27 = vpop.f32.mrb[76].mxu0 }
 0xac0   : > { %v7971_v25 = vpop.f32.mrb[77].mxu0 }
 0xac1   : > { %v7973_v33 = vpop.f32.mrb[78].mxu0 }
 0xac2   : > { %v7977_v21 = vpop.f32.mrb[79].mxu0 }
 0xac7   : > { %v5726_v18 = vpop.f32.mrb[80].mxu0 }
 0xac8   : > { %v3136_v15 = vadd.f32 %v7737_v8, %v5726_v18  ;;  %v3127_v47 = vpop.f32.mrb[81].mxu0 }
 0xac9   : > { %v5727_v26 = vpop.f32.mrb[82].mxu0  ;;  %v3128_v37 = vadd.f32 %v7737_v8, %v3127_v47 }
 0xaca   : > { %3194 = vmax.xlane.f32.xlu0 %v3136_v15  ;;  %v3130_v54 = vpop.f32.mrb[83].mxu0  ;;  %v3139_v17 = vadd.f32 %v7737_v8, %v5727_v26 }
 0xacb   : > { %v3131_v51 = vadd.f32 %v7737_v8, %v3130_v54 }
 0xacd   : > { %3192 = vmax.xlane.f32.xlu1 %v3131_v51 }
 0xace   : > { %3190 = vmax.xlane.f32.xlu0 %v3128_v37 }
 0xacf   : > { %v5730_v0 = vpop.f32.mrb[84].mxu0 }
 0xad0   : > { %v3143_v38 = vpop.f32.mrb[85].mxu0  ;;  %v3152_v19 = vadd.f32 %v7737_v8, %v5730_v0 }
 0xad1   : > { %v5731_v52 = vpop.f32.mrb[86].mxu0  ;;  %v3144_v48 = vadd.f32 %v7737_v8, %v3143_v38 }
 0xad2   : > { %v7986_v45 = vadd.f32 %v7737_v8, %v5731_v52  ;;  %3196 = vmax.xlane.f32.xlu0 %v3139_v17  ;;  %v3146_v44 = vpop.f32.mrb[87].mxu0 }
 0xad3   : > { %v3147_v42 = vadd.f32 %v7737_v8, %v3146_v44 }
 0xad4   : > { %3204 = vmax.xlane.f32.xlu1 %v7986_v45 }
 0xad6   : > { %3202 = vmax.xlane.f32.xlu0 %v3152_v19 }
 0xad7   : > { %v5734_v31 = vpop.f32.mrb[88].mxu0 }
 0xad8   : > { %3200 = vmax.xlane.f32.xlu1 %v3147_v42  ;;  %v3159_v9 = vpop.f32.mrb[89].mxu0  ;;  %v3168_v36 = vadd.f32 %v7737_v8, %v5734_v31 }
 0xad9   : > { %v5735_v35 = vpop.f32.mrb[90].mxu0  ;;  %v8001_v60 = vadd.f32 %v7737_v8, %v3159_v9 }
 0xada   : > { %v7993_v6 = vadd.f32 %v7737_v8, %v5735_v35  ;;  %3198 = vmax.xlane.f32.xlu0 %v3144_v48  ;;  %v3162_v46 = vpop.f32.mrb[91].mxu0 }
 0xadb   : > { %v7998_v58 = vadd.f32 %v7737_v8, %v3162_v46 }
 0xadc   : > { %3212 = vmax.xlane.f32.xlu1 %v7993_v6 }
 0xade   : > { %3210 = vmax.xlane.f32.xlu0 %v3168_v36 }
 0xadf   : > { %v5738_v29 = vpop.f32.mrb[92].mxu0 }
 0xae0   : > { %3208 = vmax.xlane.f32.xlu1 %v7998_v58  ;;  %v3175_v18 = vpop.f32.mrb[93].mxu0  ;;  %v8006_v54 = vadd.f32 %v7737_v8, %v5738_v29 }
 0xae1   : > { %v5739_v47 = vpop.f32.mrb[94].mxu0  ;;  %v8010_v0 = vadd.f32 %v7737_v8, %v3175_v18 }
 0xae2   : > { %3206 = vmax.xlane.f32.xlu0 %v8001_v60  ;;  %v3178_v26 = vpop.f32.mrb[95].mxu0  ;;  %v8018_v38 = vadd.f32 %v7737_v8, %v5739_v47 }
 0xae3   : > { %v8022_v52 = vadd.f32 %v7737_v8, %v3178_v26 }
 0xae6   : > { %3218 = vmax.xlane.f32.xlu0 %v8006_v54 }
 0xaea   : > { %3214 = vmax.xlane.f32.xlu0 %v8010_v0 }
 0xaf1   : > { %3350 = vrot.lane.b32.xlu1 %v7187_v57, %s6491_s29 }
 0xb00   : > { %3348 = vrot.lane.b32.xlu0 %v7172_v1, %s6491_s29 }
 0xb15   : > { %3220 = vmax.xlane.f32.xlu1 %v8018_v38 }
 0xb19   : > { %3216 = vmax.xlane.f32.xlu1 %v8022_v52 }
 0xb2a   : > { %3352 = vrot.lane.b32.xlu1 %v7184_v32, %s6491_s29 }
 0xb57   : > { %v3195_v44 = vpop.xlane.xlu0 %3194 }
 0xb58   : > { %v3224_v31 = vsub.f32 %v3136_v15, %v3195_v44 }
 0xb5a   : > { %v3242_v9 = vmul.f32 1.442695, %v3224_v31  ;;  %v3193_v35 = vpop.xlane.xlu1 %3192 }
 0xb5b   : > { %v3191_v57 = vpop.xlane.xlu0 %3190  ;;  %v3223_v29 = vsub.f32 %v3131_v51, %v3193_v35 }
 0xb5c   : > { %6272 = vpow2.f32 %v3242_v9  ;;  %v3222_v1 = vsub.f32 %v3128_v37, %v3191_v57 }
 0xb5d   : > { %v3240_v26 = vmul.f32 1.442695, %v3223_v29 }
 0xb5e   : > { %v3238_v46 = vmul.f32 1.442695, %v3222_v1 }
 0xb5f   : > { %v3197_v18 = vpop.xlane.xlu0 %3196 }
 0xb60   : > { %6274 = vpow2.f32 %v3238_v46  ;;  %v3225_v47 = vsub.f32 %v3139_v17, %v3197_v18 }
 0xb61   : > { %v3205_v53 = vpop.xlane.xlu1 %3204 }
 0xb62   : > { %v3244_v8 = vmul.f32 1.442695, %v3225_v47  ;;  %v3229_v51 = vsub.f32 %v7986_v45, %v3205_v53 }
 0xb63   : > { %v3203_v34 = vpop.xlane.xlu0 %3202 }
 0xb64   : > { %6276 = vpow2.f32 %v3244_v8  ;;  %v3228_v12 = vsub.f32 %v3152_v19, %v3203_v34  ;;  %v3252_v19 = vmul.f32 1.442695, %v3229_v51 }
 0xb65   : > { %v3201_v62 = vpop.xlane.xlu1 %3200  ;;  %6278 = vpow2.f32 %v3240_v26 }
 0xb66   : > { %v8027_v32 = vpop.eup %6272  ;;  %v3250_v15 = vmul.f32 1.442695, %v3228_v12  ;;  %v3227_v44 = vsub.f32 %v3147_v42, %v3201_v62 }
 0xb67   : > { %3274 = vadd.xlane.f32.xlu1 %v8027_v32  ;;  %v3199_v37 = vpop.xlane.xlu0 %3198 }
 0xb68   : > { %6280 = vpow2.f32 %v3250_v15  ;;  %v3248_v31 = vmul.f32 1.442695, %v3227_v44  ;;  %v3226_v17 = vsub.f32 %v3144_v48, %v3199_v37 }
 0xb69   : > { %v3213_v35 = vpop.xlane.xlu1 %3212 }
 0xb6a   : > { %v8031_v9 = vpop.eup %6274  ;;  %v3246_v57 = vmul.f32 1.442695, %v3226_v17  ;;  %6282 = vpow2.f32 %v3248_v31  ;;  %v3233_v42 = vsub.f32 %v7993_v6, %v3213_v35 }
 0xb6b   : > { %3270 = vadd.xlane.f32.xlu1 %v8031_v9  ;;  %v3211_v34 = vpop.xlane.xlu0 %3210 }
 0xb6c   : > { %6284 = vpow2.f32 %v3246_v57  ;;  %v3232_v62 = vsub.f32 %v3168_v36, %v3211_v34  ;;  %v3260_v47 = vmul.f32 1.442695, %v3233_v42  ;;  %v9041_v42 = vpack.i.bf16 %v7690_v30, %v7686_v40 }
 0xb6d   : > { %6286 = vpow2.f32 %v3252_v19  ;;  %v3209_v45 = vpop.xlane.xlu1 %3208  ;;  %v9042_v40 = vpack.i.bf16 %v7702_v20, %v7698_v61 }
 0xb6e   : > { %v8034_v12 = vpop.eup %6276  ;;  %v3258_v1 = vmul.f32 1.442695, %v3232_v62  ;;  %v3231_v36 = vsub.f32 %v7998_v58, %v3209_v45 }
 0xb6f   : > { %3276 = vadd.xlane.f32.xlu1 %v8034_v12  ;;  %v3207_v53 = vpop.xlane.xlu0 %3206  ;;  %v8039_v46 = vpop.eup %6278 }
 0xb70   : > { %v3230_v48 = vsub.f32 %v8001_v60, %v3207_v53  ;;  %6288 = vpow2.f32 %v3258_v1  ;;  %v3256_v44 = vmul.f32 1.442695, %v3231_v36 }
 0xb71   : > { %v3351_v57 = vpop.permute.xlu1 %3350 }
 0xb72   : > { %v8041_v29 = vpop.eup %6280  ;;  %v3254_v18 = vmul.f32 1.442695, %v3230_v48 }
 0xb73   : > { %3272 = vadd.xlane.f32.xlu1 %v8039_v46  ;;  %3282 = vadd.xlane.f32.xlu0 %v8041_v29  ;;  %v3219_v6 = vpop.xlane.xlu0 %3218 }
 0xb74   : > { %6290 = vpow2.f32 %v3254_v18  ;;  %v3236_v8 = vsub.f32 %v8006_v54, %v3219_v6  ;;  %v8047_v26 = vpop.eup %6282 }
 0xb75   : > { %6292 = vpow2.f32 %v3260_v47 }
 0xb76   : > { %v8049_v60 = vpop.eup %6284  ;;  %v3266_v15 = vmul.f32 1.442695, %v3236_v8 }
 0xb77   : > { %3280 = vadd.xlane.f32.xlu1 %v8047_v26  ;;  %3278 = vadd.xlane.f32.xlu0 %v8049_v60  ;;  %v3215_v58 = vpop.xlane.xlu0 %3214  ;;  %v8054_v51 = vpop.eup %6286 }
 0xb78   : > { %6294 = vpow2.f32 %v3266_v15  ;;  %v3234_v37 = vsub.f32 %v8010_v0, %v3215_v58 }
 0xb79   : > { %6296 = vpow2.f32 %v3256_v44 }
 0xb7a   : > { %v3262_v31 = vmul.f32 1.442695, %v3234_v37  ;;  %v8057_v17 = vpop.eup %6288 }
 0xb7b   : > { %3284 = vadd.xlane.f32.xlu0 %v8054_v51  ;;  %v3349_v54 = vpop.permute.xlu0 %3348 }
 0xb7c   : > { %6298 = vpow2.f32 %v3262_v31  ;;  %5746 = vmatprep.subr.bf16.mxu1 %v3349_v54 }
 0xb7d   : > { %5747 = vmatpush3.bf16.msra.mxu1 %v3349_v54 }
 0xb7e   : > { %v8059_v35 = vpop.eup %6290  ;;  %5748 = vmatprep.subr.bf16.mxu1 %v3351_v57 }
 0xb7f   : > { %3290 = vadd.xlane.f32.xlu0 %v8057_v17  ;;  %3286 = vadd.xlane.f32.xlu1 %v8059_v35  ;;  %v8063_v0 = vpop.eup %6292 }
 0xb81   : > { %5749 = vmatpush3.bf16.msra.mxu1 %v3351_v57 }
 0xb82   : > { %v8065_v34 = vpop.eup %6294 }
 0xb83   : > { %3292 = vadd.xlane.f32.xlu0 %v8063_v0  ;;  %3298 = vadd.xlane.f32.xlu1 %v8065_v34  ;;  %v8069_v19 = vpop.eup %6296 }
 0xb86   : > { %v8071_v62 = vpop.eup %6298 }
 0xb87   : > { %3288 = vadd.xlane.f32.xlu0 %v8069_v19  ;;  %3294 = vadd.xlane.f32.xlu1 %v8071_v62 }
 0xb98   : > { %3356 = vrot.lane.b32.xlu1 %v7196_v10, %s6491_s29 }
 0xb9c   : > { %5920 = vrot.lane.b32.xlu1 %v9041_v42, %s6492_s20 }
 0xb9d   : > { %3354 = vrot.lane.b32.xlu0 %v7199_v11, %s6491_s29 }
 0xba0   : > { %5925 = vrot.lane.b32.xlu1 %v5924_v41, %s6493_s3  ;;  %v9047_v41 = vld [vmem:[#allocation28_spill] sm:$0xff] }
 0xba1   : > { %v9049_v13 = vpack.i.bf16 %v9047_v41, %v9048_v39 }
 0xba2   : > { %v3221_v1 = vpop.xlane.xlu1 %3220 }
 0xba3   : > { %v3237_v63 = vsub.f32 %v8018_v38, %v3221_v1 }
 0xba4   : > { %5930 = vrot.lane.b32.xlu1 %v5929_v28, %s6493_s3 }
 0xba5   : > { %v3268_v61 = vmul.f32 1.442695, %v3237_v63 }
 0xba6   : > { %v3217_v10 = vpop.xlane.xlu1 %3216 }
 0xba7   : > { %v3235_v11 = vsub.f32 %v8022_v52, %v3217_v10 }
 0xba8   : > { %5940 = vrot.lane.b32.xlu1 %v9042_v40, %s6492_s20 }
 0xba9   : > { %v3264_v7 = vmul.f32 1.442695, %v3235_v11 }
 0xbaa   : > { %v3353_v30 = vpop.permute.xlu1 %3352 }
 0xbab   : > { %5750 = vmatprep.subr.bf16.mxu1 %v3353_v30  ;;  %6300 = vpow2.f32 %v3264_v7 }
 0xbac   : > { %5950 = vrot.lane.b32.xlu1 %v5949_v59, %s6493_s3  ;;  %5751 = vmatpush3.bf16.msra.mxu1 %v3353_v30  ;;  %6302 = vpow2.f32 %v3268_v61 }
 0xbb0   : > { %5960 = vrot.lane.b32.xlu1 %v9043_v50, %s6492_s20 }
 0xbb5   : > { %v8105_v20 = vpop.eup %6300 }
 0xbb6   : > { %v8108_v28 = vpop.eup %6302 }
 0xbbc   : > { %3296 = vadd.xlane.f32.xlu0 %v8105_v20 }
 0xbc0   : > { %3300 = vadd.xlane.f32.xlu0 %v8108_v28 }
 0xbd6   : > { %5915 = vrot.lane.b32.xlu0 %v9044_v4, %s6492_s20 }
 0xbda   : > { %5935 = vrot.lane.b32.xlu0 %v9046_v49, %s6492_s20 }
 0xbde   : > { %5945 = vrot.lane.b32.xlu0 %v5944_v56, %s6493_s3 }
 0xbe2   : > { %5955 = vrot.lane.b32.xlu0 %v9049_v13, %s6492_s20 }
 0xbf4   : > { %v3275_v59 = vpop.xlane.xlu1 %3274 }
 0xbf8   : > { %v3271_v38 = vpop.xlane.xlu1 %3270 }
 0xbf9   : > { %6304 = vrcp.f32 %v3271_v38 }
 0xbfc   : > { %v3277_v52 = vpop.xlane.xlu1 %3276 }
 0xc00   : > { %v3273_v14 = vpop.xlane.xlu1 %3272  ;;  %v3283_v43 = vpop.xlane.xlu0 %3282 }
 0xc01   : > { %6306 = vrcp.f32 %v3273_v14 }
 0xc02   : > { %6308 = vrcp.f32 %v3277_v52 }
 0xc03   : > { %v6305_v48 = vpop.eup %6304 }
 0xc04   : > { %v3279_v53 = vpop.xlane.xlu0 %3278  ;;  %v3281_v55 = vpop.xlane.xlu1 %3280  ;;  %v3318_v5 = vmul.f32 %v6305_v48, %v8031_v9 }
 0xc05   : > { %6310 = vrcp.f32 %v3281_v55  ;;  %v6040_v55 = vld [vmem:[%s6685_s22] sm:$0xff]  }
 0xc06   : > { %6312 = vrcp.f32 %v3279_v53 }
 0xc07   : > { %6314 = vrcp.f32 %v3275_v59 }
 0xc08   : > { %v3285_v45 = vpop.xlane.xlu0 %3284 }
 0xc09   : > { %6316 = vrcp.f32 %v3285_v45  ;;  %v6041_v45 = vld [vmem:[%s6685_s22 + $0x8] sm:$0xff]  }
 0xc0b   : > { %v6307_v18 = vpop.eup %6306 }
 0xc0c   : > { %v3287_v47 = vpop.xlane.xlu1 %3286  ;;  %v3291_v16 = vpop.xlane.xlu0 %3290  ;;  %v3319_v56 = vmul.f32 %v6307_v18, %v8039_v46 }
 0xc0d   : > { %v6309_v58 = vpop.eup %6308 }
 0xc0e   : > { %v3334_v36 = vpack.c.bf16 %v3319_v56, %v3318_v5  ;;  %v3321_v57 = vmul.f32 %v6309_v58, %v8034_v12  ;;  %v9051_v56 = vpack.i.bf16 %v7965_v24, %v7959_v2  ;;  %v9052_v58 = vld [vmem:[#allocation31_spill] sm:$0xff] }
 0xc0f   : > { %v6311_v37 = vpop.eup %6310 }
 0xc10   : > { %5756 = vmatprep.mubr.bf16.mxu1 %v3334_v36  ;;  %v3299_v6 = vpop.xlane.xlu1 %3298  ;;  %v3293_v8 = vpop.xlane.xlu0 %3292  ;;  %v3323_v1 = vmul.f32 %v6311_v37, %v8047_v26  ;;  %v9053_v37 = vld [vmem:[#allocation29_spill] sm:$0xff] }
 0xc11   : > { %v6313_v54 = vpop.eup %6312 }
 0xc12   : > { %v6315_v9 = vpop.eup %6314  ;;  %v3322_v42 = vmul.f32 %v6313_v54, %v8049_v60  ;;  %v9056_v54 = vld [vmem:[#allocation30_spill] sm:$0xff] }
 0xc13   : > { %v3320_v10 = vmul.f32 %v6315_v9, %v8027_v32  ;;  %v6317_v11 = vpop.eup %6316 }
 0xc14   : > { %v3295_v15 = vpop.xlane.xlu1 %3294  ;;  %v3289_v44 = vpop.xlane.xlu0 %3288  ;;  %v3336_v30 = vpack.c.bf16 %v3323_v1, %v3322_v42  ;;  %v3325_v12 = vmul.f32 %v6317_v11, %v8054_v51  ;;  %v9058_v42 = vpack.i.bf16 %v7973_v33, %v7969_v27  ;;  %v9059_v1 = vpack.i.bf16 %v7977_v21, %v7971_v25 }
 0xc15   : > { %6318 = vrcp.f32 %v3289_v44  ;;  %v3335_v40 = vpack.c.bf16 %v3321_v57, %v3320_v10 }
 0xc16   : > { %6320 = vrcp.f32 %v3283_v43 }
 0xc17   : > { %6322 = vrcp.f32 %v3287_v47 }
 0xc18   : > { %v3355_v31 = vpop.permute.xlu0 %3354  ;;  %v3357_v46 = vpop.permute.xlu1 %3356  ;;  %6324 = vrcp.f32 %v3293_v8 }
 0xc19   : > { %5752 = vmatprep.subr.bf16.mxu1 %v3355_v31  ;;  %6326 = vrcp.f32 %v3291_v16 }
 0xc1a   : > { %5753 = vmatpush3.bf16.msra.mxu1 %v3355_v31  ;;  %6328 = vrcp.f32 %v3295_v15  ;;  %v9055_v31 = vld [vmem:[#allocation32_spill] sm:$0xff] }
 0xc1b   : > { %5754 = vmatprep.subr.bf16.mxu1 %v3357_v46  ;;  %v9057_v2 = vpack.i.bf16 %v9055_v31, %v9056_v54  ;;  %v9064_v54 = vld [vmem:[#allocation14_spill] sm:$0xff] }
 0xc1e   : > { %5755 = vmatpush3.bf16.msra.mxu1 %v3357_v46 }
 0xc1f   : > { %v6319_v63 = vpop.eup %6318  ;;  %5772 = vmatprep.subr.bf16.mxu1 %v6040_v55 }
 0xc20   : > { %v6321_v7 = vpop.eup %6320  ;;  %v3327_v61 = vmul.f32 %v6319_v63, %v8069_v19 }
 0xc21   : > { %5757 = vmatmul.mubr.bf16.vlgmr.msra.gmra.mrb[64].mxu1 %v3335_v40  ;;  %v6323_v50 = vpop.eup %6322  ;;  %v3324_v60 = vmul.f32 %v6321_v7, %v8041_v29 }
 0xc22   : > { %5760 = vmatprep.mubr.bf16.mxu1 %v3336_v30  ;;  %v3326_v26 = vmul.f32 %v6323_v50, %v8059_v35  ;;  %v6325_v4 = vpop.eup %6324  ;;  %5773 = vmatpush3.bf16.msra.mxu1 %v6040_v55  ;;  %v5921_v50 = vpop.permute.xlu1 %5920 }
 0xc23   : > { %v3337_v32 = vpack.c.bf16 %v3325_v12, %v3324_v60  ;;  %v6327_v49 = vpop.eup %6326  ;;  %v3329_v41 = vmul.f32 %v6325_v4, %v8063_v0  ;;  %5774 = vmatprep.subr.bf16.mxu1 %v6041_v45  ;;  %v5923_v25 = vunpack.i.h.bf16 %v5921_v50  ;;  %v5922_v21 = vunpack.i.l.bf16 %v5921_v50 }
 0xc24   : > { %v3338_v3 = vpack.c.bf16 %v3327_v61, %v3326_v26  ;;  %v3328_v39 = vmul.f32 %v6327_v49, %v8057_v17  ;;  %v6329_v35 = vpop.eup %6328 }
 0xc25   : > { %v3330_v59 = vmul.f32 %v6329_v35, %v8071_v62  ;;  %v9061_v35 = vld [vmem:[#allocation10_spill] sm:$0xff] }
 0xc26   : > { %v3339_v13 = vpack.c.bf16 %v3329_v41, %v3328_v39  ;;  %5775 = vmatpush3.bf16.msra.mxu1 %v6041_v45  ;;  %v5926_v12 = vpop.permute.xlu1 %5925 }
 0xc29   : > { %5761 = vmatmul.mubr.bf16.gmra.mrb[68].mxu1 %v3337_v32 }
 0xc2a   : > { %5764 = vmatprep.mubr.bf16.mxu1 %v3338_v3  ;;  %v5931_v61 = vpop.permute.xlu1 %5930 }
 0xc2b   : > { %v5933_v41 = vunpack.i.h.bf16 %v5931_v61  ;;  %v5932_v39 = vunpack.i.l.bf16 %v5931_v61 }
 0xc2e   : > { %v5941_v33 = vpop.permute.xlu1 %5940 }
 0xc31   : > { %5765 = vmatmul.mubr.bf16.gmra.mrb[72].mxu1 %v3339_v13 }
 0xc32   : > { %v5951_v26 = vpop.permute.xlu1 %5950 }
 0xc36   : > { %v8177_v4 = vpop.permute.xlu1 %5960 }
 0xc49   : > { %v3297_v51 = vpop.xlane.xlu0 %3296 }
 0xc4a   : > { %6330 = vrcp.f32 %v3297_v51  ;;  %v9060_v51 = vld [vmem:[#allocation12_spill] sm:$0xff] }
 0xc4b   : > { %6332 = vrcp.f32 %v3299_v6 }
 0xc4d   : > { %v3301_v29 = vpop.xlane.xlu0 %3300 }
 0xc4e   : > { %6334 = vrcp.f32 %v3301_v29  ;;  %v3658_v29 = vsel %vm1694_vm2, %v9060_v51, %v5923_v25 }
 0xc4f   : > { %v3675_v55 = vsel %vm3671_vm3, %v3658_v29, %v5933_v41 }
 0xc51   : > { %v5916_v27 = vpop.permute.xlu0 %5915 }
 0xc52   : > { %v5918_v3 = vunpack.i.h.bf16 %v5916_v27  ;;  %v5917_v49 = vunpack.i.l.bf16 %v5916_v27 }
 0xc54   : > { %v6331_v19 = vpop.eup %6330 }
 0xc55   : > { %v3331_v38 = vmul.f32 %v6331_v19, %v8105_v20  ;;  %v6333_v52 = vpop.eup %6332  ;;  %v5936_v60 = vpop.permute.xlu0 %5935  ;;  %v3657_v19 = vsel %vm1694_vm2, %v9061_v35, %v5922_v21  ;;  %v5962_v21 = vunpack.i.l.bf16 %v8177_v4 }
 0xc56   : > { %v3332_v17 = vmul.f32 %v6333_v52, %v8065_v34  ;;  %v9062_v52 = vld [vmem:[#allocation13_spill] sm:$0xff]  ;;  %v5937_v31 = vunpack.i.l.bf16 %v5936_v60 }
 0xc57   : > { %v3340_v0 = vpack.c.bf16 %v3331_v38, %v3330_v59  ;;  %v5928_v59 = vunpack.i.h.bf16 %v5926_v12  ;;  %v5927_v38 = vunpack.i.l.bf16 %v5926_v12  ;;  %v9067_v12 = vld [vmem:[#allocation15_spill] sm:$0xff] }
 0xc58   : > { %v6335_v14 = vpop.eup %6334  ;;  %v3659_v61 = vsel %vm1694_vm2, %v9067_v12, %v5937_v31 }
 0xc59   : > { %5768 = vmatprep.mubr.bf16.mxu1 %v3340_v0  ;;  %v3333_v43 = vmul.f32 %v6335_v14, %v8108_v28  ;;  %v9050_v28 = vpack.i.bf16 %v7961_v23, %v7957_v22  ;;  %v9054_v22 = vpack.i.bf16 %v9052_v58, %v9053_v37  ;;  %v5946_v32 = vpop.permute.xlu0 %5945  ;;  %v3656_v0 = vsel %vm1694_vm2, %v9062_v52, %v5918_v3  ;;  %v9063_v14 = vld [vmem:[#allocation11_spill] sm:$0xff] }
 0xc5a   : > { %v5953_v58 = vunpack.i.h.bf16 %v5951_v26 }
 0xc5b   : > { %v3341_v53 = vpack.c.bf16 %v3333_v43, %v3332_v17  ;;  %v3655_v17 = vsel %vm1694_vm2, %v9063_v14, %v5917_v49  ;;  %v9068_v14 = vld [vmem:[#allocation20_spill] sm:$0xff] }
 0xc5d   : > { %5769 = vmatmul.mubr.bf16.gmra.mrb[76].mxu1 %v3341_v53  ;;  %v8179_v13 = vpop.permute.xlu0 %5955  ;;  %v3674_v53 = vsel %vm3671_vm3, %v3657_v19, %v5932_v39 }
 0xc5e   : > { %v5958_v51 = vunpack.i.h.bf16 %v8179_v13  ;;  %v5957_v29 = vunpack.i.l.bf16 %v8179_v13 }
 0xcf4   : > { %v5758_v48 = vpop.f32.mrb[64].mxu1 }
 0xcf5   : > { %v3400_v62 = vpop.f32.mrb[65].mxu1 }
 0xcf6   : > { %v5759_v18 = vpop.f32.mrb[66].mxu1 }
 0xcf7   : > { %v5964_v20 = vpack.i.bf16 %v5759_v18, %v5758_v48  ;;  %v3403_v47 = vpop.f32.mrb[67].mxu1  ;;  %v5943_v18 = vunpack.i.h.bf16 %v5941_v33 }
 0xcf8   : > { %v5969_v16 = vpack.i.bf16 %v3403_v47, %v3400_v62 }
 0xcf9   : > { %5965 = vrot.lane.b32.xlu1 %v5964_v20, %s6494_s19  ;;  %v5942_v20 = vunpack.i.l.bf16 %v5941_v33 }
 0xcfa   : > { %5970 = vrot.lane.b32.xlu0 %v5969_v16, %s6494_s19 }
 0xcfc   : > { %v5762_v34 = vpop.f32.mrb[68].mxu1 }
 0xcfd   : > { %5980 = vrot.lane.b32.xlu1 %v9050_v28, %s6493_s3  ;;  %v3416_v5 = vpop.f32.mrb[69].mxu1 }
 0xcfe   : > { %5975 = vrot.lane.b32.xlu0 %v9051_v56, %s6493_s3  ;;  %v5763_v36 = vpop.f32.mrb[70].mxu1  ;;  %v3673_v56 = vsel %vm3671_vm3, %v3656_v0, %v5928_v59 }
 0xcff   : > { %v5984_v6 = vpack.i.bf16 %v5763_v36, %v5762_v34  ;;  %v3419_v8 = vpop.f32.mrb[71].mxu1  ;;  %v5952_v36 = vunpack.i.l.bf16 %v5951_v26 }
 0xd00   : > { %v5989_v15 = vpack.i.bf16 %v3419_v8, %v3416_v5  ;;  %v3672_v5 = vsel %vm3671_vm3, %v3655_v17, %v5927_v38  ;;  %v9069_v17 = vld [vmem:[#allocation18_spill] sm:$0xff] }
 0xd01   : > { %5985 = vrot.lane.b32.xlu1 %v5984_v6, %s6494_s19 }
 0xd02   : > { %5990 = vrot.lane.b32.xlu0 %v5989_v15, %s6494_s19 }
 0xd04   : > { %v5766_v44 = vpop.f32.mrb[72].mxu1 }
 0xd05   : > { %6000 = vrot.lane.b32.xlu1 %v9054_v22, %s6492_s20  ;;  %v3432_v23 = vpop.f32.mrb[73].mxu1 }
 0xd06   : > { %5995 = vrot.lane.b32.xlu0 %v9057_v2, %s6492_s20  ;;  %v5767_v24 = vpop.f32.mrb[74].mxu1  ;;  %v3661_v2 = vsel %vm1694_vm2, %v9064_v54, %v5942_v20 }
 0xd07   : > { %v6004_v9 = vpack.i.bf16 %v5767_v24, %v5766_v44  ;;  %v3435_v46 = vpop.f32.mrb[75].mxu1  ;;  %v5948_v24 = vunpack.i.h.bf16 %v5946_v32 }
 0xd08   : > { %v6009_v57 = vpack.i.bf16 %v3435_v46, %v3432_v23  ;;  %v5938_v23 = vunpack.i.h.bf16 %v5936_v60  ;;  %v9065_v46 = vld [vmem:[#allocation16_spill] sm:$0xff] }
 0xd09   : > { %6005 = vrot.lane.b32.xlu1 %v6004_v9, %s6494_s19  ;;  %v5947_v9 = vunpack.i.l.bf16 %v5946_v32 }
 0xd0a   : > { %6010 = vrot.lane.b32.xlu0 %v6009_v57, %s6494_s19  ;;  %v3662_v57 = vsel %vm1694_vm2, %v9065_v46, %v5943_v18 }
 0xd0b   : > { %v3676_v60 = vsel %vm3671_vm3, %v3659_v61, %v5947_v9 }
 0xd0d   : > { %6020 = vrot.lane.b32.xlu1 %v9058_v42, %s6493_s3  ;;  %v3678_v42 = vsel %vm3671_vm3, %v3661_v2, %v5952_v36 }
 0xd0e   : > { %6015 = vrot.lane.b32.xlu0 %v9059_v1, %s6493_s3 }
 0xd30   : > { %v5770_v10 = vpop.f32.mrb[76].mxu1 }
 0xd31   : > { %v3448_v40 = vpop.f32.mrb[77].mxu1 }
 0xd32   : > { %v5771_v11 = vpop.f32.mrb[78].mxu1 }
 0xd33   : > { %v6029_v30 = vpack.i.bf16 %v5771_v11, %v5770_v10  ;;  %v3451_v63 = vpop.f32.mrb[79].mxu1  ;;  %v3679_v10 = vsel %vm3671_vm3, %v3662_v57, %v5953_v58 }
 0xd34   : > { %v6024_v7 = vpack.i.bf16 %v3451_v63, %v3448_v40  ;;  %v5963_v40 = vunpack.i.h.bf16 %v8177_v4 }
 0xd35   : > { %6030 = vrot.lane.b32.xlu1 %v6029_v30, %s6494_s19 }
 0xd36   : > { %6025 = vrot.lane.b32.xlu0 %v6024_v7, %s6494_s19  ;;  %v9066_v7 = vld [vmem:[#allocation17_spill] sm:$0xff]  ;;  %v3666_v4 = vsel %vm1694_vm2, %v9068_v14, %v5963_v40 }
 0xd37   : > { %v3660_v50 = vsel %vm1694_vm2, %v9066_v7, %v5938_v23  ;;  %v9075_v7 = vld [vmem:[#allocation23_spill] sm:$0xff] }
 0xd38   : > { %v3677_v26 = vsel %vm3671_vm3, %v3660_v50, %v5948_v24 }
 0xd6b   : > { %v5966_v43 = vpop.permute.xlu1 %5965 }
 0xd6c   : > { %v5968_v45 = vunpack.i.h.bf16 %v5966_v43  ;;  %v5967_v48 = vunpack.i.l.bf16 %v5966_v43  ;;  %v5971_v62 = vpop.permute.xlu0 %5970  ;;  %v3665_v43 = vsel %vm1694_vm2, %v9069_v17, %v5962_v21 }
 0xd6d   : > { %v5973_v47 = vunpack.i.h.bf16 %v5971_v62  ;;  %v5972_v16 = vunpack.i.l.bf16 %v5971_v62 }
 0xd6e   : > { %v3692_v34 = vsel %vm3688_vm4, %v3675_v55, %v5968_v45  ;;  %v3691_v28 = vsel %vm3688_vm4, %v3674_v53, %v5967_v48  ;;  %v9070_v55 = vld [vmem:[#allocation21_spill] sm:$0xff]  ;;  %v9071_v45 = vld [vmem:[#allocation19_spill] sm:$0xff] }
 0xd6f   : > { %v3706_v6 = vpack.c.bf16 %v3692_v34, %v3691_v28  ;;  %v3689_v8 = vsel %vm3688_vm4, %v3672_v5, %v5972_v16  ;;  %v3690_v15 = vsel %vm3688_vm4, %v3673_v56, %v5973_v47  ;;  %v5981_v44 = vpop.permute.xlu1 %5980  ;;  %v3664_v13 = vsel %vm1694_vm2, %v9070_v55, %v5958_v51 }
 0xd70   : > { %v3705_v37 = vpack.c.bf16 %v3690_v15, %v3689_v8  ;;  %v5976_v22 = vpop.permute.xlu0 %5975  ;;  %v5983_v59 = vunpack.i.h.bf16 %v5981_v44  ;;  %v5982_v38 = vunpack.i.l.bf16 %v5981_v44  ;;  %v3663_v48 = vsel %vm1694_vm2, %v9071_v45, %v5957_v29  ;;  %v6403_v45 = vld [vmem:[#allocation2 + $0x8] sm:$0xff] }
 0xd71   : > { %v5978_v52 = vunpack.i.h.bf16 %v5976_v22  ;;  %v5977_v0 = vunpack.i.l.bf16 %v5976_v22 }
 0xd72   : > { %5776 = vmatprep.mubr.msk.bf16.mxu1 %vm1017_vm1, %v3705_v37  ;;  %v3683_v47 = vsel %vm3671_vm3, %v3666_v4, %v5983_v59  ;;  %v3682_v16 = vsel %vm3671_vm3, %v3665_v43, %v5982_v38  ;;  %v6401_v4 = vld [vmem:[#allocation2] sm:$0xff] }
 0xd73   : > { %v5986_v1 = vpop.permute.xlu1 %5985  ;;  %5777 = vmatmul.mubr.msk.bf16.vlgmr.msra.gmra.mrb[80].mxu1 %vm1017_vm1, %v3706_v6  ;;  %v3680_v5 = vsel %vm3671_vm3, %v3663_v48, %v5977_v0  ;;  %v3681_v56 = vsel %vm3671_vm3, %v3664_v13, %v5978_v52 }
 0xd74   : > { %v5988_v11 = vunpack.i.h.bf16 %v5986_v1  ;;  %v5987_v30 = vunpack.i.l.bf16 %v5986_v1  ;;  %v5991_v63 = vpop.permute.xlu0 %5990 }
 0xd75   : > { %v5993_v27 = vunpack.i.h.bf16 %v5991_v63  ;;  %v5992_v33 = vunpack.i.l.bf16 %v5991_v63 }
 0xd76   : > { %v3696_v32 = vsel %vm3688_vm4, %v3679_v10, %v5988_v11  ;;  %v3695_v25 = vsel %vm3688_vm4, %v3678_v42, %v5987_v30  ;;  %v9072_v42 = vld [vmem:[#allocation24_spill] sm:$0xff]  ;;  %v9073_v10 = vld [vmem:[#allocation22_spill] sm:$0xff]  ;;  %v9074_v30 = vld [vmem:[#allocation25_spill] sm:$0xff] }
 0xd77   : > { %v3708_v3 = vpack.c.bf16 %v3696_v32, %v3695_v25  ;;  %v3693_v49 = vsel %vm3688_vm4, %v3676_v60, %v5992_v33  ;;  %v3694_v41 = vsel %vm3688_vm4, %v3677_v26, %v5993_v27  ;;  %v6001_v39 = vpop.permute.xlu1 %6000 }
 0xd78   : > { %v3707_v35 = vpack.c.bf16 %v3694_v41, %v3693_v49  ;;  %v5996_v19 = vpop.permute.xlu0 %5995  ;;  %v6003_v22 = vunpack.i.h.bf16 %v6001_v39  ;;  %v6002_v23 = vunpack.i.l.bf16 %v6001_v39 }
 0xd79   : > { %v5998_v54 = vunpack.i.h.bf16 %v5996_v19  ;;  %v5997_v2 = vunpack.i.l.bf16 %v5996_v19 }
 0xd7a   : > { %5780 = vmatprep.mubr.msk.bf16.mxu1 %vm1017_vm1, %v3707_v35  ;;  %v3670_v1 = vsel %vm1694_vm2, %v9072_v42, %v6003_v22  ;;  %v3669_v40 = vsel %vm1694_vm2, %v9073_v10, %v6002_v23  ;;  %v8262_v35 = vld [vmem:[%s9077_s11] ss:$0 sm:$0xff] }
 0xd7b   : > { %v6006_v53 = vpop.permute.xlu1 %6005  ;;  %5781 = vmatmul.mubr.msk.bf16.gmra.mrb[84].mxu1 %vm1017_vm1, %v3708_v3  ;;  %v3668_v63 = vsel %vm1694_vm2, %v9074_v30, %v5998_v54  ;;  %v3667_v50 = vsel %vm1694_vm2, %v9075_v7, %v5997_v2 }
 0xd7c   : > { %v6008_v62 = vunpack.i.h.bf16 %v6006_v53  ;;  %v6007_v18 = vunpack.i.l.bf16 %v6006_v53  ;;  %v6011_v20 = vpop.permute.xlu0 %6010  ;;  %v6402_v53 = vld [vmem:[#allocation2 + $0x10] sm:$0xff] }
 0xd7d   : > { %v6013_v34 = vunpack.i.h.bf16 %v6011_v20  ;;  %v6012_v28 = vunpack.i.l.bf16 %v6011_v20 }
 0xd7e   : > { %v3700_v36 = vsel %vm3688_vm4, %v3683_v47, %v6008_v62  ;;  %v3699_v6 = vsel %vm3688_vm4, %v3682_v16, %v6007_v18  ;;  %v6404_v16 = vld [vmem:[#allocation2 + $0x18] sm:$0xff] }
 0xd7f   : > { %v3710_v8 = vpack.c.bf16 %v3700_v36, %v3699_v6  ;;  %v3697_v15 = vsel %vm3688_vm4, %v3680_v5, %v6012_v28  ;;  %v3698_v44 = vsel %vm3688_vm4, %v3681_v56, %v6013_v34  ;;  %v6021_v37 = vpop.permute.xlu1 %6020 }
 0xd80   : > { %v3709_v58 = vpack.c.bf16 %v3698_v44, %v3697_v15  ;;  %v6016_v31 = vpop.permute.xlu0 %6015  ;;  %v6023_v24 = vunpack.i.h.bf16 %v6021_v37  ;;  %v6022_v9 = vunpack.i.l.bf16 %v6021_v37  ;;  %v6405_v44 = vld [vmem:[#allocation2 + $0x20] sm:$0xff]  ;;  %v6406_v37 = vld [vmem:[#allocation2 + $0x28] sm:$0xff] }
 0xd81   : > { %v6018_v46 = vunpack.i.h.bf16 %v6016_v31  ;;  %v6017_v57 = vunpack.i.l.bf16 %v6016_v31  ;;  %v6407_v31 = vld [vmem:[#allocation2 + $0x38] sm:$0xff] }
 0xd82   : > { %5784 = vmatprep.mubr.msk.bf16.mxu1 %vm1017_vm1, %v3709_v58  ;;  %v3687_v33 = vsel %vm3671_vm3, %v3670_v1, %v6023_v24  ;;  %v3686_v60 = vsel %vm3671_vm3, %v3669_v40, %v6022_v9 }
 0xd83   : > { %5785 = vmatmul.mubr.msk.bf16.gmra.mrb[88].mxu1 %vm1017_vm1, %v3710_v8  ;;  %v3684_v25 = vsel %vm3671_vm3, %v3667_v50, %v6017_v57  ;;  %v3685_v21 = vsel %vm3671_vm3, %v3668_v63, %v6018_v46  ;;  %v6408_v46 = vld [vmem:[#allocation2 + $0x30] sm:$0xff]  ;;  %v6409_v50 = vld [vmem:[#allocation2 + $0x40] sm:$0xff] }
 0xda7   : > { %v6031_v11 = vpop.permute.xlu1 %6030 }
 0xda8   : > { %v6033_v12 = vunpack.i.h.bf16 %v6031_v11  ;;  %v6032_v61 = vunpack.i.l.bf16 %v6031_v11  ;;  %v6026_v27 = vpop.permute.xlu0 %6025 }
 0xda9   : > { %v6028_v26 = vunpack.i.h.bf16 %v6026_v27  ;;  %v6027_v32 = vunpack.i.l.bf16 %v6026_v27 }
 0xdaa   : > { %v3704_v3 = vsel %vm3688_vm4, %v3687_v33, %v6033_v12  ;;  %v3703_v49 = vsel %vm3688_vm4, %v3686_v60, %v6032_v61  ;;  %v6410_v61 = vld [vmem:[#allocation2 + $0x48] sm:$0xff]  ;;  %v6411_v60 = vld [vmem:[#allocation2 + $0x58] sm:$0xff] }
 0xdab   : > { %v3712_v41 = vpack.c.bf16 %v3704_v3, %v3703_v49  ;;  %v3701_v39 = vsel %vm3688_vm4, %v3684_v25, %v6027_v32  ;;  %v3702_v51 = vsel %vm3688_vm4, %v3685_v21, %v6028_v26  ;;  %v6412_v25 = vld [vmem:[#allocation2 + $0x50] sm:$0xff] }
 0xdac   : > { %v3711_v29 = vpack.c.bf16 %v3702_v51, %v3701_v39 }
 0xdae   : > { %5788 = vmatprep.mubr.msk.bf16.mxu1 %vm1017_vm1, %v3711_v29 }
 0xdaf   : > { %5789 = vmatmul.mubr.msk.bf16.gmra.mrb[92].mxu1 %vm1017_vm1, %v3712_v41 }
 0xe46   : > { %v5778_v19 = vpop.f32.mrb[80].mxu1 }
 0xe47   : > { %v3794_v59 = vpop.f32.mrb[81].mxu1  ;;  %v3803_v38 = vadd.f32 %v5778_v19, %v8262_v35 }
 0xe48   : > { %v3795_v52 = vadd.f32 %v8262_v35, %v3794_v59  ;;  %v5779_v0 = vpop.f32.mrb[82].mxu1 }
 0xe49   : > { %v3797_v14 = vpop.f32.mrb[83].mxu1  ;;  %v8269_v55 = vadd.f32 %v6402_v53, %v3803_v38  ;;  %v3806_v13 = vadd.f32 %v5779_v0, %v8262_v35  ;;  %v6413_v0 = vld [vmem:[#allocation2 + $0x60] sm:$0xff] }
 0xe4a   : > { %v8266_v17 = vadd.f32 %v6401_v4, %v3795_v52  ;;  %v3798_v43 = vadd.f32 %v8262_v35, %v3797_v14 }
 0xe4b   : > { %v8278_v34 = vadd.f32 %v6404_v16, %v3806_v13  ;;  %v3881_v56 = vsel %vm1017_vm1, %v8269_v55, 0.0  ;;  %v6415_v13 = vld [vmem:[#allocation2 + $0x68] sm:$0xff] }
 0xe4c   : > { %v8272_v48 = vadd.f32 %v6403_v45, %v3798_v43  ;;  %v3875_v62 = vsel %vm1017_vm1, %v8266_v17, 0.0  ;;  %v6414_v43 = vld [vmem:[#allocation2 + $0x70] sm:$0xff] }
 0xe4d   : > { %3876 = vadd.xlane.f32.xlu0 %v3875_v62  ;;  %v3884_v23 = vsel %vm1017_vm1, %v8278_v34, 0.0 }
 0xe4e   : > { %v5782_v18 = vpop.f32.mrb[84].mxu1  ;;  %v3878_v20 = vsel %vm1017_vm1, %v8272_v48, 0.0 }
 0xe4f   : > { %v3810_v47 = vpop.f32.mrb[85].mxu1  ;;  %3879 = vadd.xlane.f32.xlu1 %v3878_v20  ;;  %v3819_v15 = vadd.f32 %v5782_v18, %v8262_v35  ;;  %v6416_v18 = vld [vmem:[#allocation2 + $0x78] sm:$0xff] }
 0xe50   : > { %v3811_v28 = vadd.f32 %v8262_v35, %v3810_v47  ;;  %v5783_v5 = vpop.f32.mrb[86].mxu1 }
 0xe51   : > { %v3813_v36 = vpop.f32.mrb[87].mxu1  ;;  %3882 = vadd.xlane.f32.xlu0 %v3881_v56  ;;  %v3822_v6 = vadd.f32 %v5783_v5, %v8262_v35  ;;  %v8296_v57 = vadd.f32 %v6408_v46, %v3819_v15 }
 0xe52   : > { %v3814_v8 = vadd.f32 %v8262_v35, %v3813_v36  ;;  %v8286_v58 = vadd.f32 %v6405_v44, %v3811_v28 }
 0xe53   : > { %v8292_v54 = vadd.f32 %v6407_v31, %v3822_v6  ;;  %v3893_v33 = vsel %vm1017_vm1, %v8296_v57, 0.0 }
 0xe54   : > { %v8288_v22 = vadd.f32 %v6406_v37, %v3814_v8  ;;  %v3887_v10 = vsel %vm1017_vm1, %v8286_v58, 0.0 }
 0xe55   : > { %3885 = vadd.xlane.f32.xlu0 %v3884_v23  ;;  %v3896_v63 = vsel %vm1017_vm1, %v8292_v54, 0.0 }
 0xe56   : > { %v5786_v2 = vpop.f32.mrb[88].mxu1  ;;  %v3890_v24 = vsel %vm1017_vm1, %v8288_v22, 0.0 }
 0xe57   : > { %v3826_v9 = vpop.f32.mrb[89].mxu1  ;;  %3891 = vadd.xlane.f32.xlu1 %v3890_v24  ;;  %v3835_v7 = vadd.f32 %v5786_v2, %v8262_v35 }
 0xe58   : > { %v3827_v42 = vadd.f32 %v8262_v35, %v3826_v9  ;;  %v5787_v1 = vpop.f32.mrb[90].mxu1 }
 0xe59   : > { %v3829_v40 = vpop.f32.mrb[91].mxu1  ;;  %3888 = vadd.xlane.f32.xlu0 %v3887_v10  ;;  %v3838_v11 = vadd.f32 %v5787_v1, %v8262_v35  ;;  %v8316_v21 = vadd.f32 %v6412_v25, %v3835_v7 }
 0xe5a   : > { %v3830_v30 = vadd.f32 %v8262_v35, %v3829_v40  ;;  %v8306_v12 = vadd.f32 %v6409_v50, %v3827_v42 }
 0xe5b   : > { %3897 = vadd.xlane.f32.xlu1 %v3896_v63  ;;  %v8312_v26 = vadd.f32 %v6411_v60, %v3838_v11  ;;  %v3905_v41 = vsel %vm1017_vm1, %v8316_v21, 0.0 }
 0xe5c   : > { %v8308_v27 = vadd.f32 %v6410_v61, %v3830_v30  ;;  %v3899_v3 = vsel %vm1017_vm1, %v8306_v12, 0.0 }
 0xe5d   : > { %3894 = vadd.xlane.f32.xlu0 %v3893_v33  ;;  %v3908_v49 = vsel %vm1017_vm1, %v8312_v26, 0.0 }
 0xe5e   : > { %v3902_v32 = vsel %vm1017_vm1, %v8308_v27, 0.0 }
 0xe5f   : > { %3903 = vadd.xlane.f32.xlu1 %v3902_v32 }
 0xe61   : > { %3900 = vadd.xlane.f32.xlu0 %v3899_v3 }
 0xe63   : > { %3909 = vadd.xlane.f32.xlu1 %v3908_v49 }
 0xe65   : > { %3906 = vadd.xlane.f32.xlu0 %v3905_v41 }
 0xe82   : > { %v5790_v39 = vpop.f32.mrb[92].mxu1 }
 0xe83   : > { %v3851_v51 = vadd.f32 %v5790_v39, %v8262_v35  ;;  %v3842_v29 = vpop.f32.mrb[93].mxu1 }
 0xe84   : > { %v3843_v19 = vadd.f32 %v8262_v35, %v3842_v29  ;;  %v5791_v59 = vpop.f32.mrb[94].mxu1 }
 0xe85   : > { %v3854_v38 = vadd.f32 %v5791_v59, %v8262_v35  ;;  %v3845_v52 = vpop.f32.mrb[95].mxu1  ;;  %v8330_v53 = vadd.f32 %v6414_v43, %v3851_v51 }
 0xe86   : > { %v8327_v14 = vadd.f32 %v6413_v0, %v3843_v19  ;;  %v3846_v4 = vadd.f32 %v8262_v35, %v3845_v52 }
 0xe87   : > { %v8336_v20 = vadd.f32 %v6416_v18, %v3854_v38  ;;  %v3917_v35 = vsel %vm1017_vm1, %v8330_v53, 0.0 }
 0xe88   : > { %v8332_v45 = vadd.f32 %v6415_v13, %v3846_v4  ;;  %v3911_v62 = vsel %vm1017_vm1, %v8327_v14, 0.0 }
 0xe89   : > { %3912 = vadd.xlane.f32.xlu0 %v3911_v62  ;;  %v3920_v16 = vsel %vm1017_vm1, %v8336_v20, 0.0 }
 0xe8a   : > { %v3914_v47 = vsel %vm1017_vm1, %v8332_v45, 0.0 }
 0xe8b   : > { %3915 = vadd.xlane.f32.xlu1 %v3914_v47 }
 0xe8d   : > { %3918 = vadd.xlane.f32.xlu0 %v3917_v35 }
 0xe8f   : > { %3921 = vadd.xlane.f32.xlu1 %v3920_v16 }
 0xeda   : > { %v3877_v28 = vpop.xlane.xlu0 %3876 }
 0xedb   : > { %v3923_v5 = vmul.f32 0.03125, %v3877_v28 }
 0xedc   : > { %v3880_v56 = vpop.xlane.xlu1 %3879 }
 0xedd   : > { %v8345_v36 = vsub.f32 %v8266_v17, %v3923_v5  ;;  %v3924_v6 = vmul.f32 0.03125, %v3880_v56 }
 0xede   : > { %v3883_v8 = vpop.xlane.xlu0 %3882 }
 0xedf   : > { %v8348_v15 = vsub.f32 %v8272_v48, %v3924_v6  ;;  %v3925_v44 = vmul.f32 0.03125, %v3883_v8  ;;  %v3955_v37 = vmul.f32 %v8345_v36, %v8345_v36 }
 0xee1   : > { %v8353_v23 = vsub.f32 %v8269_v55, %v3925_v44  ;;  %v3971_v31 = vsel %vm1017_vm1, %v3955_v37, 0.0  ;;  %v3956_v2 = vmul.f32 %v8348_v15, %v8348_v15 }
 0xee2   : > { %3972 = vadd.xlane.f32.xlu0 %v3971_v31  ;;  %v3886_v24 = vpop.xlane.xlu0 %3885 }
 0xee3   : > { %v3926_v9 = vmul.f32 0.03125, %v3886_v24  ;;  %v3974_v46 = vsel %vm1017_vm1, %v3956_v2, 0.0  ;;  %v3957_v42 = vmul.f32 %v8353_v23, %v8353_v23 }
 0xee4   : > { %3975 = vadd.xlane.f32.xlu1 %v3974_v46  ;;  %v3892_v1 = vpop.xlane.xlu1 %3891 }
 0xee5   : > { %v8362_v10 = vsub.f32 %v8278_v34, %v3926_v9  ;;  %v3928_v40 = vmul.f32 0.03125, %v3892_v1  ;;  %v3977_v11 = vsel %vm1017_vm1, %v3957_v42, 0.0  ;;  %v6042_v42 = vld [vmem:[%s6702_s2] sm:$0xff]   ;;  %v6043_v1 = vld [vmem:[%s6702_s2 + $0x8] sm:$0xff]  }
 0xee6   : > { %3978 = vadd.xlane.f32.xlu0 %v3977_v11  ;;  %v3889_v30 = vpop.xlane.xlu0 %3888  ;;  %5792 = vmatprep.subr.bf16.mxu0 %v6042_v42 }
 0xee7   : > { %v8366_v63 = vsub.f32 %v8288_v22, %v3928_v40  ;;  %v3927_v7 = vmul.f32 0.03125, %v3889_v30  ;;  %v3958_v50 = vmul.f32 %v8362_v10, %v8362_v10  ;;  %5793 = vmatpush3.bf16.msra.mxu0 %v6042_v42 }
 0xee8   : > { %v3898_v61 = vpop.xlane.xlu1 %3897  ;;  %5794 = vmatprep.subr.bf16.mxu0 %v6043_v1 }
 0xee9   : > { %v8371_v33 = vsub.f32 %v8286_v58, %v3927_v7  ;;  %v3930_v60 = vmul.f32 0.03125, %v3898_v61  ;;  %v3980_v32 = vsel %vm1017_vm1, %v3958_v50, 0.0  ;;  %v3960_v25 = vmul.f32 %v8366_v63, %v8366_v63 }
 0xeea   : > { %3981 = vadd.xlane.f32.xlu1 %v3980_v32  ;;  %v3895_v3 = vpop.xlane.xlu0 %3894 }
 0xeeb   : > { %v8377_v49 = vsub.f32 %v8292_v54, %v3930_v60  ;;  %v3929_v41 = vmul.f32 0.03125, %v3895_v3  ;;  %v3959_v39 = vmul.f32 %v8371_v33, %v8371_v33  ;;  %v3986_v29 = vsel %vm1017_vm1, %v3960_v25, 0.0  ;;  %5795 = vmatpush3.bf16.msra.mxu0 %v6043_v1 }
 0xeec   : > { %v3904_v51 = vpop.xlane.xlu1 %3903 }
 0xeed   : > { %v8383_v19 = vsub.f32 %v8296_v57, %v3929_v41  ;;  %v3932_v59 = vmul.f32 0.03125, %v3904_v51  ;;  %v3983_v38 = vsel %vm1017_vm1, %v3959_v39, 0.0  ;;  %v3962_v52 = vmul.f32 %v8377_v49, %v8377_v49 }
 0xeee   : > { %3987 = vadd.xlane.f32.xlu1 %v3986_v29  ;;  %3984 = vadd.xlane.f32.xlu0 %v3983_v38  ;;  %v3901_v0 = vpop.xlane.xlu0 %3900 }
 0xeef   : > { %v8389_v4 = vsub.f32 %v8308_v27, %v3932_v59  ;;  %v3931_v43 = vmul.f32 0.03125, %v3901_v0  ;;  %v3961_v13 = vmul.f32 %v8383_v19, %v8383_v19  ;;  %v3992_v18 = vsel %vm1017_vm1, %v3962_v52, 0.0 }
 0xef0   : > { %v3910_v62 = vpop.xlane.xlu1 %3909 }
 0xef1   : > { %v8395_v47 = vsub.f32 %v8306_v12, %v3931_v43  ;;  %v3934_v35 = vmul.f32 0.03125, %v3910_v62  ;;  %v3989_v16 = vsel %vm1017_vm1, %v3961_v13, 0.0  ;;  %v3964_v28 = vmul.f32 %v8389_v4, %v8389_v4 }
 0xef2   : > { %3993 = vadd.xlane.f32.xlu1 %v3992_v18  ;;  %3990 = vadd.xlane.f32.xlu0 %v3989_v16  ;;  %v3907_v5 = vpop.xlane.xlu0 %3906 }
 0xef3   : > { %v8401_v56 = vsub.f32 %v8312_v26, %v3934_v35  ;;  %v3933_v6 = vmul.f32 0.03125, %v3907_v5  ;;  %v3963_v8 = vmul.f32 %v8395_v47, %v8395_v47  ;;  %v3998_v37 = vsel %vm1017_vm1, %v3964_v28, 0.0 }
 0xef5   : > { %v8406_v44 = vsub.f32 %v8316_v21, %v3933_v6  ;;  %v3995_v31 = vsel %vm1017_vm1, %v3963_v8, 0.0  ;;  %v3966_v2 = vmul.f32 %v8401_v56, %v8401_v56 }
 0xef6   : > { %3999 = vadd.xlane.f32.xlu1 %v3998_v37  ;;  %3996 = vadd.xlane.f32.xlu0 %v3995_v31 }
 0xef7   : > { %v3965_v24 = vmul.f32 %v8406_v44, %v8406_v44  ;;  %v4004_v9 = vsel %vm1017_vm1, %v3966_v2, 0.0 }
 0xef9   : > { %v4001_v46 = vsel %vm1017_vm1, %v3965_v24, 0.0 }
 0xefa   : > { %4005 = vadd.xlane.f32.xlu1 %v4004_v9  ;;  %4002 = vadd.xlane.f32.xlu0 %v4001_v46 }
 0xf16   : > { %v3913_v40 = vpop.xlane.xlu0 %3912 }
 0xf17   : > { %v3935_v11 = vmul.f32 0.03125, %v3913_v40 }
 0xf18   : > { %v3916_v30 = vpop.xlane.xlu1 %3915 }
 0xf19   : > { %v8419_v7 = vsub.f32 %v8327_v14, %v3935_v11  ;;  %v3936_v50 = vmul.f32 0.03125, %v3916_v30  ;;  %v8447_v11 = vld [vmem:[%s9079_s26] ss:$0 sm:$0xff] }
 0xf1a   : > { %v3919_v61 = vpop.xlane.xlu0 %3918 }
 0xf1b   : > { %v8422_v60 = vsub.f32 %v8332_v45, %v3936_v50  ;;  %v3937_v32 = vmul.f32 0.03125, %v3919_v61  ;;  %v3967_v25 = vmul.f32 %v8419_v7, %v8419_v7 }
 0xf1c   : > { %v3922_v3 = vpop.xlane.xlu1 %3921 }
 0xf1d   : > { %v8427_v41 = vsub.f32 %v8330_v53, %v3937_v32  ;;  %v3938_v39 = vmul.f32 0.03125, %v3922_v3  ;;  %v4007_v51 = vsel %vm1017_vm1, %v3967_v25, 0.0  ;;  %v3968_v29 = vmul.f32 %v8422_v60, %v8422_v60 }
 0xf1e   : > { %4008 = vadd.xlane.f32.xlu0 %v4007_v51 }
 0xf1f   : > { %v8433_v59 = vsub.f32 %v8336_v20, %v3938_v39  ;;  %v4010_v38 = vsel %vm1017_vm1, %v3968_v29, 0.0  ;;  %v3969_v52 = vmul.f32 %v8427_v41, %v8427_v41 }
 0xf20   : > { %4011 = vadd.xlane.f32.xlu1 %v4010_v38 }
 0xf21   : > { %v4013_v0 = vsel %vm1017_vm1, %v3969_v52, 0.0  ;;  %v3970_v43 = vmul.f32 %v8433_v59, %v8433_v59 }
 0xf22   : > { %4014 = vadd.xlane.f32.xlu0 %v4013_v0  ;;  %v8457_v0 = vld [vmem:[%s9080_s21] ss:$0 sm:$0xff] }
 0xf23   : > { %v4016_v13 = vsel %vm1017_vm1, %v3970_v43, 0.0 }
 0xf24   : > { %4017 = vadd.xlane.f32.xlu1 %v4016_v13 }
 0xf6f   : > { %v3973_v62 = vpop.xlane.xlu0 %3972 }
 0xf70   : > { %v4019_v18 = vmul.f32 0.03125, %v3973_v62 }
 0xf71   : > { %v3976_v35 = vpop.xlane.xlu1 %3975 }
 0xf72   : > { %v4035_v16 = vadd.f32 1e-06, %v4019_v18  ;;  %v4020_v28 = vmul.f32 0.03125, %v3976_v35 }
 0xf73   : > { %v3979_v5 = vpop.xlane.xlu0 %3978 }
 0xf74   : > { %6336 = vrsqrt.f32 %v4035_v16  ;;  %v4036_v6 = vadd.f32 1e-06, %v4020_v28  ;;  %v4021_v8 = vmul.f32 0.03125, %v3979_v5 }
 0xf76   : > { %6338 = vrsqrt.f32 %v4036_v6  ;;  %v4037_v37 = vadd.f32 1e-06, %v4021_v8 }
 0xf77   : > { %v3982_v31 = vpop.xlane.xlu1 %3981 }
 0xf78   : > { %6340 = vrsqrt.f32 %v4037_v37  ;;  %v4022_v2 = vmul.f32 0.03125, %v3982_v31 }
 0xf7a   : > { %v4038_v24 = vadd.f32 1e-06, %v4022_v2 }
 0xf7b   : > { %v3988_v9 = vpop.xlane.xlu1 %3987  ;;  %v3985_v46 = vpop.xlane.xlu0 %3984 }
 0xf7c   : > { %6342 = vrsqrt.f32 %v4038_v24  ;;  %v4024_v42 = vmul.f32 0.03125, %v3988_v9  ;;  %v4023_v1 = vmul.f32 0.03125, %v3985_v46 }
 0xf7e   : > { %v6337_v40 = vpop.eup %6336  ;;  %v4040_v30 = vadd.f32 1e-06, %v4024_v42  ;;  %v4039_v50 = vadd.f32 1e-06, %v4023_v1 }
 0xf7f   : > { %v4067_v61 = vmul.f32 %v6337_v40, %v8345_v36  ;;  %v3994_v32 = vpop.xlane.xlu1 %3993  ;;  %v3991_v25 = vpop.xlane.xlu0 %3990 }
 0xf80   : > { %v6339_v3 = vpop.eup %6338  ;;  %6344 = vrsqrt.f32 %v4040_v30  ;;  %v4026_v39 = vmul.f32 0.03125, %v3994_v32  ;;  %v4025_v51 = vmul.f32 0.03125, %v3991_v25 }
 0xf81   : > { %v4068_v29 = vmul.f32 %v6339_v3, %v8348_v15  ;;  %6346 = vrsqrt.f32 %v4039_v50  ;;  %v4089_v38 = vmul.f32 %v8447_v11, %v4067_v61 }
 0xf82   : > { %v6341_v52 = vpop.eup %6340  ;;  %v4042_v43 = vadd.f32 1e-06, %v4026_v39  ;;  %v4041_v36 = vadd.f32 1e-06, %v4025_v51 }
 0xf83   : > { %v4069_v13 = vmul.f32 %v6341_v52, %v8353_v23  ;;  %v4000_v62 = vpop.xlane.xlu1 %3999  ;;  %v3997_v18 = vpop.xlane.xlu0 %3996  ;;  %v4090_v35 = vmul.f32 %v8447_v11, %v4068_v29  ;;  %v4111_v28 = vadd.f32 %v8457_v0, %v4089_v38 }
 0xf84   : > { %6348 = vrsqrt.f32 %v4042_v43  ;;  %v4028_v15 = vmul.f32 0.03125, %v4000_v62  ;;  %v4027_v16 = vmul.f32 0.03125, %v3997_v18 }
 0xf85   : > { %6350 = vrsqrt.f32 %v4041_v36  ;;  %v4112_v5 = vadd.f32 %v8457_v0, %v4090_v35  ;;  %v4091_v31 = vmul.f32 %v8447_v11, %v4069_v13 }
 0xf86   : > { %v6343_v6 = vpop.eup %6342  ;;  %v4044_v8 = vadd.f32 1e-06, %v4028_v15  ;;  %v4043_v37 = vadd.f32 1e-06, %v4027_v16 }
 0xf87   : > { %v4070_v2 = vmul.f32 %v6343_v6, %v8362_v10  ;;  %v4006_v23 = vpop.xlane.xlu1 %4005  ;;  %v4003_v24 = vpop.xlane.xlu0 %4002  ;;  %v4127_v9 = vpack.c.bf16 %v4112_v5, %v4111_v28  ;;  %v4113_v32 = vadd.f32 %v8457_v0, %v4091_v31 }
 0xf88   : > { %6352 = vrsqrt.f32 %v4044_v8  ;;  %v4030_v46 = vmul.f32 0.03125, %v4006_v23  ;;  %v4029_v42 = vmul.f32 0.03125, %v4003_v24 }
 0xf89   : > { %v4092_v1 = vmul.f32 %v8447_v11, %v4070_v2  ;;  %6354 = vrsqrt.f32 %v4043_v37  ;;  %5796 = vmatprep.mubr.msk.bf16.mxu0 %vm1017_vm1, %v4127_v9 }
 0xf8a   : > { %v6345_v40 = vpop.eup %6344  ;;  %v4046_v30 = vadd.f32 1e-06, %v4030_v46  ;;  %v4045_v50 = vadd.f32 1e-06, %v4029_v42 }
 0xf8b   : > { %v6347_v61 = vpop.eup %6346  ;;  %v4114_v25 = vadd.f32 %v8457_v0, %v4092_v1  ;;  %v4072_v10 = vmul.f32 %v6345_v40, %v8366_v63 }
 0xf8c   : > { %v4071_v3 = vmul.f32 %v6347_v61, %v8371_v33  ;;  %6356 = vrsqrt.f32 %v4046_v30 }
 0xf8d   : > { %6358 = vrsqrt.f32 %v4045_v50  ;;  %v4128_v39 = vpack.c.bf16 %v4114_v25, %v4113_v32  ;;  %v4094_v51 = vmul.f32 %v8447_v11, %v4072_v10 }
 0xf8e   : > { %v6349_v29 = vpop.eup %6348  ;;  %v4093_v38 = vmul.f32 %v8447_v11, %v4071_v3 }
 0xf8f   : > { %v6351_v52 = vpop.eup %6350  ;;  %v4074_v43 = vmul.f32 %v6349_v29, %v8377_v49  ;;  %5797 = vmatmul.mubr.msk.bf16.vlgmr.msra.gmra.mrb[96].mxu0 %vm1017_vm1, %v4128_v39  ;;  %v4116_v36 = vadd.f32 %v8457_v0, %v4094_v51 }
 0xf90   : > { %v4073_v13 = vmul.f32 %v6351_v52, %v8383_v19  ;;  %v4115_v63 = vadd.f32 %v8457_v0, %v4093_v38 }
 0xf91   : > { %v4096_v33 = vmul.f32 %v8447_v11, %v4074_v43 }
 0xf92   : > { %v6353_v62 = vpop.eup %6352  ;;  %v4129_v18 = vpack.c.bf16 %v4116_v36, %v4115_v63  ;;  %v4095_v35 = vmul.f32 %v8447_v11, %v4073_v13 }
 0xf93   : > { %v6355_v15 = vpop.eup %6354  ;;  %v4076_v16 = vmul.f32 %v6353_v62, %v8389_v4  ;;  %v4118_v28 = vadd.f32 %v8457_v0, %v4096_v33 }
 0xf94   : > { %v4075_v49 = vmul.f32 %v6355_v15, %v8395_v47  ;;  %5800 = vmatprep.mubr.msk.bf16.mxu0 %vm1017_vm1, %v4129_v18  ;;  %v4117_v5 = vadd.f32 %v8457_v0, %v4095_v35 }
 0xf95   : > { %v4098_v19 = vmul.f32 %v8447_v11, %v4076_v16 }
 0xf96   : > { %v6357_v6 = vpop.eup %6356  ;;  %v4130_v8 = vpack.c.bf16 %v4118_v28, %v4117_v5  ;;  %v4097_v37 = vmul.f32 %v8447_v11, %v4075_v49 }
 0xf97   : > { %v6359_v31 = vpop.eup %6358  ;;  %v4078_v2 = vmul.f32 %v6357_v6, %v8401_v56  ;;  %v4120_v23 = vadd.f32 %v8457_v0, %v4098_v19  ;;  %v6045_v19 = vld [vmem:[%s6716_s13 + $0x8] sm:$0xff]   ;;  %v6046_v6 = vld [vmem:[%s6716_s13 + $0x10] sm:$0xff]  }
 0xf98   : > { %v4077_v4 = vmul.f32 %v6359_v31, %v8406_v44  ;;  %5801 = vmatmul.mubr.msk.bf16.gmra.mrb[100].mxu0 %vm1017_vm1, %v4130_v8  ;;  %v4119_v47 = vadd.f32 %v8457_v0, %v4097_v37 }
 0xf99   : > { %v4100_v24 = vmul.f32 %v8447_v11, %v4078_v2 }
 0xf9a   : > { %v4131_v9 = vpack.c.bf16 %v4120_v23, %v4119_v47  ;;  %v4099_v46 = vmul.f32 %v8447_v11, %v4077_v4 }
 0xf9b   : > { %v4122_v42 = vadd.f32 %v8457_v0, %v4100_v24 }
 0xf9c   : > { %5804 = vmatprep.mubr.msk.bf16.mxu0 %vm1017_vm1, %v4131_v9  ;;  %v4121_v1 = vadd.f32 %v8457_v0, %v4099_v46 }
 0xf9e   : > { %v4132_v56 = vpack.c.bf16 %v4122_v42, %v4121_v1 }
 0xfa0   : > { %5805 = vmatmul.mubr.msk.bf16.gmra.mrb[104].mxu0 %vm1017_vm1, %v4132_v56 }
 0xfab   : > { %v4009_v40 = vpop.xlane.xlu0 %4008 }
 0xfac   : > { %v4031_v44 = vmul.f32 0.03125, %v4009_v40 }
 0xfad   : > { %v4012_v30 = vpop.xlane.xlu1 %4011 }
 0xfae   : > { %v4047_v50 = vadd.f32 1e-06, %v4031_v44  ;;  %v4032_v61 = vmul.f32 0.03125, %v4012_v30 }
 0xfaf   : > { %v4015_v32 = vpop.xlane.xlu0 %4014 }
 0xfb0   : > { %6360 = vrsqrt.f32 %v4047_v50  ;;  %v4048_v25 = vadd.f32 1e-06, %v4032_v61  ;;  %v4033_v10 = vmul.f32 0.03125, %v4015_v32 }
 0xfb1   : > { %v4018_v3 = vpop.xlane.xlu1 %4017 }
 0xfb2   : > { %6362 = vrsqrt.f32 %v4048_v25  ;;  %v4049_v39 = vadd.f32 1e-06, %v4033_v10  ;;  %v4034_v51 = vmul.f32 0.03125, %v4018_v3 }
 0xfb4   : > { %6364 = vrsqrt.f32 %v4049_v39  ;;  %v4050_v29 = vadd.f32 1e-06, %v4034_v51 }
 0xfb6   : > { %6366 = vrsqrt.f32 %v4050_v29 }
 0xfba   : > { %v6361_v38 = vpop.eup %6360 }
 0xfbb   : > { %v4079_v52 = vmul.f32 %v6361_v38, %v8419_v7 }
 0xfbc   : > { %v6363_v43 = vpop.eup %6362 }
 0xfbd   : > { %v4080_v36 = vmul.f32 %v6363_v43, %v8422_v60  ;;  %v4101_v13 = vmul.f32 %v8447_v11, %v4079_v52 }
 0xfbe   : > { %v6365_v63 = vpop.eup %6364 }
 0xfbf   : > { %v4081_v33 = vmul.f32 %v6365_v63, %v8427_v41  ;;  %v4102_v62 = vmul.f32 %v8447_v11, %v4080_v36  ;;  %v4123_v15 = vadd.f32 %v8457_v0, %v4101_v13 }
 0xfc0   : > { %v6367_v18 = vpop.eup %6366 }
 0xfc1   : > { %v4082_v35 = vmul.f32 %v6367_v18, %v8433_v59  ;;  %v4124_v7 = vadd.f32 %v8457_v0, %v4102_v62  ;;  %v4103_v16 = vmul.f32 %v8447_v11, %v4081_v33  ;;  %v6044_v59 = vld [vmem:[%s6716_s13] sm:$0xff]  }
 0xfc2   : > { %5812 = vmatprep.subr.bf16.mxu1 %v6044_v59 }
 0xfc3   : > { %v4133_v60 = vpack.c.bf16 %v4124_v7, %v4123_v15  ;;  %v4104_v28 = vmul.f32 %v8447_v11, %v4082_v35  ;;  %v4125_v49 = vadd.f32 %v8457_v0, %v4103_v16  ;;  %5813 = vmatpush3.bf16.msra.mxu1 %v6044_v59  ;;  %v6047_v11 = vld [vmem:[%s6716_s13 + $0x18] sm:$0xff]  }
 0xfc4   : > { %5814 = vmatprep.subr.bf16.mxu1 %v6045_v19 }
 0xfc5   : > { %5808 = vmatprep.mubr.msk.bf16.mxu0 %vm1017_vm1, %v4133_v60  ;;  %v4126_v41 = vadd.f32 %v8457_v0, %v4104_v28  ;;  %v8521_v0 = vld [vmem:[%s915_s25] ss:$0 sm:$0xff] }
 0xfc7   : > { %v4134_v5 = vpack.c.bf16 %v4126_v41, %v4125_v49  ;;  %5815 = vmatpush3.bf16.msra.mxu1 %v6045_v19 }
 0xfc8   : > { %5816 = vmatprep.subr.bf16.mxu1 %v6046_v6 }
 0xfc9   : > { %5809 = vmatmul.mubr.msk.bf16.gmra.mrb[108].mxu0 %vm1017_vm1, %v4134_v5 }
 0xfcb   : > { %5817 = vmatpush3.bf16.msra.mxu1 %v6046_v6 }
 0xfcc   : > { %5818 = vmatprep.subr.bf16.mxu1 %v6047_v11 }
 0xfcf   : > { %5819 = vmatpush3.bf16.msra.mxu1 %v6047_v11 }
0x1062   : > { %v5798_v8 = vpop.f32.mrb[96].mxu0 }
0x1063   : > { %v4225_v37 = vadd.f32 %v5798_v8, %v8521_v0  ;;  %v4216_v31 = vpop.f32.mrb[97].mxu0 }
0x1064   : > { %v4217_v2 = vadd.f32 %v8521_v0, %v4216_v31  ;;  %v5799_v23 = vpop.f32.mrb[98].mxu0 }
0x1065   : > { %v4297_v4 = vmul.f32 0.044715, %v4225_v37  ;;  %v8526_v47 = vadd.f32 %v5799_v23, %v8521_v0  ;;  %v4219_v24 = vpop.f32.mrb[99].mxu0  ;;  %v4281_v8 = vmul.f32 0.5, %v4225_v37 }
0x1066   : > { %v4295_v9 = vmul.f32 0.044715, %v4217_v2  ;;  %v8529_v46 = vadd.f32 %v8521_v0, %v4219_v24 }
0x1067   : > { %v4313_v42 = vmul.f32 %v4297_v4, %v4225_v37  ;;  %v4298_v1 = vmul.f32 0.044715, %v8526_v47 }
0x1068   : > { %v4311_v56 = vmul.f32 %v4295_v9, %v4217_v2  ;;  %v4296_v40 = vmul.f32 0.044715, %v8529_v46 }
0x1069   : > { %v4329_v44 = vmul.f32 %v4313_v42, %v4225_v37  ;;  %v4314_v30 = vmul.f32 %v4298_v1, %v8526_v47 }
0x106a   : > { %v4327_v50 = vmul.f32 %v4311_v56, %v4217_v2  ;;  %v4312_v61 = vmul.f32 %v4296_v40, %v8529_v46  ;;  %v4279_v40 = vmul.f32 0.5, %v4217_v2 }
0x106b   : > { %v4345_v32 = vadd.f32 %v4329_v44, %v4225_v37  ;;  %v4330_v25 = vmul.f32 %v4314_v30, %v8526_v47  ;;  %v5802_v10 = vpop.f32.mrb[100].mxu0 }
0x106c   : > { %v4343_v3 = vadd.f32 %v4327_v50, %v4217_v2  ;;  %v4328_v39 = vmul.f32 %v4312_v61, %v8529_v46  ;;  %v8538_v51 = vadd.f32 %v5802_v10, %v8521_v0  ;;  %v4232_v29 = vpop.f32.mrb[101].mxu0 }
0x106d   : > { %v4361_v38 = vmul.f32 0.7978846, %v4345_v32  ;;  %v4346_v52 = vadd.f32 %v4330_v25, %v8526_v47  ;;  %v8542_v43 = vadd.f32 %v8521_v0, %v4232_v29  ;;  %v5803_v36 = vpop.f32.mrb[102].mxu0 }
0x106e   : > { %v4359_v13 = vmul.f32 0.7978846, %v4343_v3  ;;  %v4344_v63 = vadd.f32 %v4328_v39, %v8529_v46  ;;  %v4301_v33 = vmul.f32 0.044715, %v8538_v51  ;;  %v8547_v62 = vadd.f32 %v5803_v36, %v8521_v0  ;;  %v4235_v18 = vpop.f32.mrb[103].mxu0 }
0x106f   : > { %6368 = vtanh.f32 %v4361_v38  ;;  %v4362_v35 = vmul.f32 0.7978846, %v4346_v52  ;;  %v4299_v15 = vmul.f32 0.044715, %v8542_v43  ;;  %v8551_v7 = vadd.f32 %v8521_v0, %v4235_v18 }
0x1070   : > { %6370 = vtanh.f32 %v4359_v13  ;;  %v4360_v16 = vmul.f32 0.7978846, %v4344_v63  ;;  %v4317_v60 = vmul.f32 %v4301_v33, %v8538_v51  ;;  %v4302_v28 = vmul.f32 0.044715, %v8547_v62 }
0x1071   : > { %6372 = vtanh.f32 %v4362_v35  ;;  %v4315_v49 = vmul.f32 %v4299_v15, %v8542_v43  ;;  %v4300_v41 = vmul.f32 0.044715, %v8551_v7 }
0x1072   : > { %6374 = vtanh.f32 %v4360_v16  ;;  %v4333_v5 = vmul.f32 %v4317_v60, %v8538_v51  ;;  %v4318_v59 = vmul.f32 %v4302_v28, %v8547_v62 }
0x1073   : > { %v4331_v19 = vmul.f32 %v4315_v49, %v8542_v43  ;;  %v4316_v6 = vmul.f32 %v4300_v41, %v8551_v7  ;;  %v5806_v11 = vpop.f32.mrb[104].mxu0  ;;  %v4282_v41 = vmul.f32 0.5, %v8526_v47 }
0x1074   : > { %v4349_v31 = vadd.f32 %v4333_v5, %v8538_v51  ;;  %v4334_v23 = vmul.f32 %v4318_v59, %v8547_v62  ;;  %v8564_v4 = vadd.f32 %v5806_v11, %v8521_v0  ;;  %v4248_v24 = vpop.f32.mrb[105].mxu0 }
0x1075   : > { %v4347_v9 = vadd.f32 %v4331_v19, %v8542_v43  ;;  %v4332_v42 = vmul.f32 %v4316_v6, %v8551_v7  ;;  %v8569_v1 = vadd.f32 %v8521_v0, %v4248_v24  ;;  %v5807_v56 = vpop.f32.mrb[106].mxu0 }
0x1076   : > { %v4365_v44 = vmul.f32 0.7978846, %v4349_v31  ;;  %v4350_v37 = vadd.f32 %v4334_v23, %v8547_v62  ;;  %v4305_v30 = vmul.f32 0.044715, %v8564_v4  ;;  %v8574_v50 = vadd.f32 %v5807_v56, %v8521_v0  ;;  %v4251_v61 = vpop.f32.mrb[107].mxu0 }
0x1077   : > { %v4363_v32 = vmul.f32 0.7978846, %v4347_v9  ;;  %v4348_v25 = vadd.f32 %v4332_v42, %v8551_v7  ;;  %v4303_v10 = vmul.f32 0.044715, %v8569_v1  ;;  %v8579_v3 = vadd.f32 %v8521_v0, %v4251_v61 }
0x1078   : > { %6376 = vtanh.f32 %v4365_v44  ;;  %v4366_v39 = vmul.f32 0.7978846, %v4350_v37  ;;  %v4321_v2 = vmul.f32 %v4305_v30, %v8564_v4  ;;  %v4306_v29 = vmul.f32 0.044715, %v8574_v50 }
0x1079   : > { %v6369_v38 = vpop.eup %6368  ;;  %6378 = vtanh.f32 %v4363_v32  ;;  %v4364_v52 = vmul.f32 0.7978846, %v4348_v25  ;;  %v4319_v36 = vmul.f32 %v4303_v10, %v8569_v1  ;;  %v4304_v13 = vmul.f32 0.044715, %v8579_v3 }
0x107a   : > { %v6371_v63 = vpop.eup %6370  ;;  %v4393_v33 = vadd.f32 1.0, %v6369_v38  ;;  %6380 = vtanh.f32 %v4366_v39  ;;  %v4337_v18 = vmul.f32 %v4321_v2, %v8564_v4  ;;  %v4322_v35 = vmul.f32 %v4306_v29, %v8574_v50 }
0x107b   : > { %v6373_v15 = vpop.eup %6372  ;;  %6382 = vtanh.f32 %v4364_v52  ;;  %v4335_v16 = vmul.f32 %v4319_v36, %v8569_v1  ;;  %v4320_v60 = vmul.f32 %v4304_v13, %v8579_v3  ;;  %v4391_v28 = vadd.f32 1.0, %v6371_v63 }
0x107c   : > { %v6375_v49 = vpop.eup %6374  ;;  %v4394_v5 = vadd.f32 1.0, %v6373_v15  ;;  %v4353_v59 = vadd.f32 %v4337_v18, %v8564_v4  ;;  %v4338_v19 = vmul.f32 %v4322_v35, %v8574_v50  ;;  %v4280_v31 = vmul.f32 0.5, %v8529_v46 }
0x107d   : > { %v4351_v6 = vadd.f32 %v4335_v16, %v8569_v1  ;;  %v4336_v11 = vmul.f32 %v4320_v60, %v8579_v3  ;;  %v4392_v23 = vadd.f32 1.0, %v6375_v49  ;;  %v4409_v24 = vmul.f32 %v4393_v33, %v4281_v8 }
0x107e   : > { %v4410_v9 = vmul.f32 %v4394_v5, %v4282_v41  ;;  %v4369_v42 = vmul.f32 0.7978846, %v4353_v59  ;;  %v4354_v56 = vadd.f32 %v4338_v19, %v8574_v50  ;;  %v4407_v37 = vmul.f32 %v4391_v28, %v4279_v40 }
0x107f   : > { %v4367_v44 = vmul.f32 0.7978846, %v4351_v6  ;;  %v4352_v47 = vadd.f32 %v4336_v11, %v8579_v3  ;;  %v4408_v30 = vmul.f32 %v4392_v23, %v4280_v31  ;;  %v4285_v38 = vmul.f32 0.5, %v8538_v51 }
0x1080   : > { %v4424_v61 = vpack.c.bf16 %v4410_v9, %v4409_v24  ;;  %6384 = vtanh.f32 %v4369_v42  ;;  %v4370_v32 = vmul.f32 0.7978846, %v4354_v56  ;;  %v4286_v52 = vmul.f32 0.5, %v8547_v62 }
0x1081   : > { %6386 = vtanh.f32 %v4367_v44  ;;  %v4368_v25 = vmul.f32 0.7978846, %v4352_v47  ;;  %v4423_v10 = vpack.c.bf16 %v4408_v30, %v4407_v37  ;;  %v4283_v13 = vmul.f32 0.5, %v8542_v43 }
0x1082   : > { %v6377_v39 = vpop.eup %6376  ;;  %6388 = vtanh.f32 %v4370_v32  ;;  %v4284_v63 = vmul.f32 0.5, %v8551_v7  ;;  %v4289_v43 = vmul.f32 0.5, %v8564_v4  ;;  %v4290_v7 = vmul.f32 0.5, %v8574_v50 }
0x1083   : > { %v6379_v46 = vpop.eup %6378  ;;  %6390 = vtanh.f32 %v4368_v25  ;;  %5820 = vmatprep.mubr.msk.bf16.mxu1 %vm4470_vm5, %v4423_v10  ;;  %v4397_v8 = vadd.f32 1.0, %v6377_v39  ;;  %v4287_v6 = vmul.f32 0.5, %v8569_v1  ;;  %v4288_v11 = vmul.f32 0.5, %v8579_v3 }
0x1084   : > { %v6381_v2 = vpop.eup %6380  ;;  %5821 = vmatmul.mubr.msk.bf16.vlgmr.msra.gmra.mrb[96].mxu1 %vm4470_vm5, %v4424_v61  ;;  %v4395_v29 = vadd.f32 1.0, %v6379_v46 }
0x1085   : > { %v6383_v40 = vpop.eup %6382  ;;  %v4398_v36 = vadd.f32 1.0, %v6381_v2  ;;  %v4413_v18 = vmul.f32 %v4397_v8, %v4285_v38 }
0x1086   : > { %v4396_v33 = vadd.f32 1.0, %v6383_v40  ;;  %v4411_v15 = vmul.f32 %v4395_v29, %v4283_v13 }
0x1087   : > { %v4414_v35 = vmul.f32 %v4398_v36, %v4286_v52 }
0x1088   : > { %v4412_v16 = vmul.f32 %v4396_v33, %v4284_v63 }
0x1089   : > { %v4426_v60 = vpack.c.bf16 %v4414_v35, %v4413_v18 }
0x108a   : > { %v6385_v28 = vpop.eup %6384  ;;  %v4425_v49 = vpack.c.bf16 %v4412_v16, %v4411_v15 }
0x108b   : > { %v6387_v41 = vpop.eup %6386  ;;  %v4401_v5 = vadd.f32 1.0, %v6385_v28 }
0x108c   : > { %v6389_v59 = vpop.eup %6388  ;;  %5824 = vmatprep.mubr.msk.bf16.mxu1 %vm4470_vm5, %v4425_v49  ;;  %v4399_v51 = vadd.f32 1.0, %v6387_v41 }
0x108d   : > { %v6391_v62 = vpop.eup %6390  ;;  %5825 = vmatmul.mubr.msk.bf16.gmra.mrb[100].mxu1 %vm4470_vm5, %v4426_v60  ;;  %v4402_v19 = vadd.f32 1.0, %v6389_v59  ;;  %v4417_v23 = vmul.f32 %v4401_v5, %v4289_v43 }
0x108e   : > { %v4400_v31 = vadd.f32 1.0, %v6391_v62  ;;  %v4415_v9 = vmul.f32 %v4399_v51, %v4287_v6 }
0x108f   : > { %v4418_v24 = vmul.f32 %v4402_v19, %v4290_v7 }
0x1090   : > { %v4416_v42 = vmul.f32 %v4400_v31, %v4288_v11 }
0x1091   : > { %v4428_v56 = vpack.c.bf16 %v4418_v24, %v4417_v23 }
0x1092   : > { %v4427_v44 = vpack.c.bf16 %v4416_v42, %v4415_v9 }
0x1094   : > { %5828 = vmatprep.mubr.msk.bf16.mxu1 %vm4470_vm5, %v4427_v44 }
0x1095   : > { %5829 = vmatmul.mubr.msk.bf16.gmra.mrb[104].mxu1 %vm4470_vm5, %v4428_v56  ;;  %v5240_v56 = vld [vmem:[%s923_s12] ss:$0 sm:$0xff]  ;;  %s9082_s12 = sld [smem:[#allocation3_spill]] }
0x109b   : > { %p5253_p8 = scmp.ne.s32.totalorder %s9082_s12, 1 }
0x109c   : > { %v5810_v47 = vpop.f32.mrb[108].mxu0  ;;  %s9083_s20 = sld [smem:[#allocation46_spill]] (!%p5253_p8)  ;;  %s9084_s22 = sld [smem:[#allocation47_spill]] (!%p5253_p8) }
0x109d   : > { %v4273_v4 = vadd.f32 %v5810_v47, %v8521_v0  ;;  %v4264_v50 = vpop.f32.mrb[109].mxu0 }
0x109e   : > { %v4265_v37 = vadd.f32 %v8521_v0, %v4264_v50  ;;  %v5811_v1 = vpop.f32.mrb[110].mxu0 }
0x109f   : > { %v4309_v30 = vmul.f32 0.044715, %v4273_v4  ;;  %v4276_v3 = vadd.f32 %v5811_v1, %v8521_v0  ;;  %v4267_v61 = vpop.f32.mrb[111].mxu0  ;;  %v4293_v51 = vmul.f32 0.5, %v4273_v4 }
0x10a0   : > { %v4307_v32 = vmul.f32 0.044715, %v4265_v37  ;;  %v4268_v25 = vadd.f32 %v8521_v0, %v4267_v61  ;;  %v4291_v7 = vmul.f32 0.5, %v4265_v37 }
0x10a1   : > { %v4325_v10 = vmul.f32 %v4309_v30, %v4273_v4  ;;  %v4310_v39 = vmul.f32 0.044715, %v4276_v3  ;;  %v4294_v62 = vmul.f32 0.5, %v4276_v3 }
0x10a2   : > { %v4323_v46 = vmul.f32 %v4307_v32, %v4265_v37  ;;  %v4308_v8 = vmul.f32 0.044715, %v4268_v25  ;;  %v4292_v19 = vmul.f32 0.5, %v4268_v25 }
0x10a3   : > { %v4341_v2 = vmul.f32 %v4325_v10, %v4273_v4  ;;  %v4326_v29 = vmul.f32 %v4310_v39, %v4276_v3 }
0x10a4   : > { %v4339_v40 = vmul.f32 %v4323_v46, %v4265_v37  ;;  %v4324_v38 = vmul.f32 %v4308_v8, %v4268_v25 }
0x10a5   : > { %v4357_v52 = vadd.f32 %v4341_v2, %v4273_v4  ;;  %v4342_v36 = vmul.f32 %v4326_v29, %v4276_v3 }
0x10a6   : > { %v4355_v13 = vadd.f32 %v4339_v40, %v4265_v37  ;;  %v4340_v63 = vmul.f32 %v4324_v38, %v4268_v25 }
0x10a7   : > { %v4373_v33 = vmul.f32 0.7978846, %v4357_v52  ;;  %v4358_v18 = vadd.f32 %v4342_v36, %v4276_v3 }
0x10a8   : > { %v4371_v35 = vmul.f32 0.7978846, %v4355_v13  ;;  %v4356_v15 = vadd.f32 %v4340_v63, %v4268_v25 }
0x10a9   : > { %6392 = vtanh.f32 %v4373_v33  ;;  %v4374_v16 = vmul.f32 0.7978846, %v4358_v18 }
0x10aa   : > { %6394 = vtanh.f32 %v4371_v35  ;;  %v4372_v0 = vmul.f32 0.7978846, %v4356_v15 }
0x10ab   : > { %6396 = vtanh.f32 %v4374_v16 }
0x10ac   : > { %6398 = vtanh.f32 %v4372_v0 }
0x10b3   : > { %v6393_v60 = vpop.eup %6392 }
0x10b4   : > { %v6395_v28 = vpop.eup %6394  ;;  %v4405_v49 = vadd.f32 1.0, %v6393_v60 }
0x10b5   : > { %v6397_v41 = vpop.eup %6396  ;;  %v4403_v5 = vadd.f32 1.0, %v6395_v28 }
0x10b6   : > { %v6399_v59 = vpop.eup %6398  ;;  %v4406_v43 = vadd.f32 1.0, %v6397_v41  ;;  %v4421_v11 = vmul.f32 %v4405_v49, %v4293_v51 }
0x10b7   : > { %v4404_v6 = vadd.f32 1.0, %v6399_v59  ;;  %v4419_v23 = vmul.f32 %v4403_v5, %v4291_v7 }
0x10b8   : > { %v4422_v31 = vmul.f32 %v4406_v43, %v4294_v62 }
0x10b9   : > { %v4420_v24 = vmul.f32 %v4404_v6, %v4292_v19 }
0x10ba   : > { %v4430_v9 = vpack.c.bf16 %v4422_v31, %v4421_v11 }
0x10bb   : > { %v4429_v42 = vpack.c.bf16 %v4420_v24, %v4419_v23 }
0x10bd   : > { %5832 = vmatprep.mubr.msk.bf16.mxu1 %vm4470_vm5, %v4429_v42 }
0x10be   : > { %5833 = vmatmul.mubr.msk.bf16.gmra.mrb[108].mxu1 %vm4470_vm5, %v4430_v9 }
0x1157   : > { %v5822_v44 = vpop.f32.mrb[96].mxu1 }
0x1158   : > { %v4538_v47 = vadd.f32 %v5822_v44, %v5240_v56  ;;  %v4529_v4 = vpop.f32.mrb[97].mxu1 }
0x1159   : > { %v4530_v50 = vadd.f32 %v5240_v56, %v4529_v4  ;;  %v5823_v37 = vpop.f32.mrb[98].mxu1 }
0x115a   : > { %v8623_v1 = vadd.f32 %v4538_v47, %v8269_v55  ;;  %v4541_v30 = vadd.f32 %v5823_v37, %v5240_v56  ;;  %v4532_v3 = vpop.f32.mrb[99].mxu1 }
0x115b   : > { %v8626_v61 = vadd.f32 %v4530_v50, %v8266_v17  ;;  %v4533_v32 = vadd.f32 %v5240_v56, %v4532_v3 }
0x115c   : > { %4610 = vst.msk [vmem:[#allocation2 + $0x10] sm:$0xff] %vm1017_vm1, %v8623_v1  ;;  %v8631_v25 = vadd.f32 %v4541_v30, %v8278_v34 }
0x115d   : > { %4608 = vst.msk [vmem:[#allocation2] sm:$0xff] %vm1017_vm1, %v8626_v61  ;;  %v8636_v10 = vadd.f32 %v4533_v32, %v8272_v48 }
0x115e   : > { %4611 = vst.msk [vmem:[#allocation2 + $0x18] sm:$0xff] %vm1017_vm1, %v8631_v25 }
0x115f   : > { %4609 = vst.msk [vmem:[#allocation2 + $0x8] sm:$0xff] %vm1017_vm1, %v8636_v10 }
0x1160   : > { %v5826_v17 = vpop.f32.mrb[100].mxu1 }
0x1161   : > { %v4554_v55 = vadd.f32 %v5826_v17, %v5240_v56  ;;  %v4545_v39 = vpop.f32.mrb[101].mxu1 }
0x1162   : > { %v4546_v46 = vadd.f32 %v5240_v56, %v4545_v39  ;;  %v5827_v8 = vpop.f32.mrb[102].mxu1 }
0x1163   : > { %v8643_v34 = vadd.f32 %v4554_v55, %v8296_v57  ;;  %v4557_v2 = vadd.f32 %v5827_v8, %v5240_v56  ;;  %v4548_v29 = vpop.f32.mrb[103].mxu1 }
0x1164   : > { %v8646_v40 = vadd.f32 %v4546_v46, %v8286_v58  ;;  %v4549_v48 = vadd.f32 %v5240_v56, %v4548_v29 }
0x1165   : > { %4614 = vst.msk [vmem:[#allocation2 + $0x30] sm:$0xff] %vm1017_vm1, %v8643_v34  ;;  %v8651_v38 = vadd.f32 %v4557_v2, %v8292_v54  ;;  %v4648_v7 = vsel (!%p5253_p8), %vm1017_vm1, %v8643_v34, 0.0 }
0x1166   : > { %4612 = vst.msk [vmem:[#allocation2 + $0x20] sm:$0xff] %vm1017_vm1, %v8646_v40  ;;  %v8656_v52 = vadd.f32 %v4549_v48, %v8288_v22  ;;  %v4642_v62 = vsel (!%p5253_p8), %vm1017_vm1, %v8646_v40, 0.0 }
0x1167   : > { %4615 = vst.msk [vmem:[#allocation2 + $0x38] sm:$0xff] %vm1017_vm1, %v8651_v38  ;;  %v4651_v19 = vsel (!%p5253_p8), %vm1017_vm1, %v8651_v38, 0.0 }
0x1168   : > { %4613 = vst.msk [vmem:[#allocation2 + $0x28] sm:$0xff] %vm1017_vm1, %v8656_v52  ;;  %v5830_v58 = vpop.f32.mrb[104].mxu1  ;;  %v4645_v43 = vsel (!%p5253_p8), %vm1017_vm1, %v8656_v52, 0.0 }
0x1169   : > { %v4570_v57 = vadd.f32 %v5830_v58, %v5240_v56  ;;  %v4561_v36 = vpop.f32.mrb[105].mxu1 }
0x116a   : > { %v4562_v13 = vadd.f32 %v5240_v56, %v4561_v36  ;;  %v5831_v63 = vpop.f32.mrb[106].mxu1 }
0x116b   : > { %v8663_v54 = vadd.f32 %v4570_v57, %v8316_v21  ;;  %v4573_v33 = vadd.f32 %v5831_v63, %v5240_v56  ;;  %v4564_v18 = vpop.f32.mrb[107].mxu1 }
0x116c   : > { %v8666_v35 = vadd.f32 %v4562_v13, %v8306_v12  ;;  %v4565_v22 = vadd.f32 %v5240_v56, %v4564_v18 }
0x116d   : > { %4618 = vst.msk [vmem:[#allocation2 + $0x50] sm:$0xff] %vm1017_vm1, %v8663_v54  ;;  %v8671_v15 = vadd.f32 %v4573_v33, %v8312_v26  ;;  %v4660_v31 = vsel (!%p5253_p8), %vm1017_vm1, %v8663_v54, 0.0 }
0x116e   : > { %4616 = vst.msk [vmem:[#allocation2 + $0x40] sm:$0xff] %vm1017_vm1, %v8666_v35  ;;  %v8676_v16 = vadd.f32 %v4565_v22, %v8308_v27  ;;  %v4654_v6 = vsel (!%p5253_p8), %vm1017_vm1, %v8666_v35, 0.0 }
0x116f   : > { %4619 = vst.msk [vmem:[#allocation2 + $0x58] sm:$0xff] %vm1017_vm1, %v8671_v15  ;;  %v4663_v23 = vsel (!%p5253_p8), %vm1017_vm1, %v8671_v15, 0.0 }
0x1170   : > { %4617 = vst.msk [vmem:[#allocation2 + $0x48] sm:$0xff] %vm1017_vm1, %v8676_v16  ;;  %v4657_v11 = vsel (!%p5253_p8), %vm1017_vm1, %v8676_v16, 0.0 }
0x1191   : > { %v5834_v12 = vpop.f32.mrb[108].mxu1 }
0x1192   : > { %v4586_v21 = vadd.f32 %v5834_v12, %v5240_v56  ;;  %v4577_v0 = vpop.f32.mrb[109].mxu1 }
0x1193   : > { %v4578_v60 = vadd.f32 %v5240_v56, %v4577_v0  ;;  %v5835_v28 = vpop.f32.mrb[110].mxu1  ;;  %4627 = sbr.rel (%p5253_p8) target bundleno = 4847 (0x12ef), region = 112 }
0x1194   : > { %v8683_v26 = vadd.f32 %v4586_v21, %v8330_v53  ;;  %v4589_v49 = vadd.f32 %v5835_v28, %v5240_v56  ;;  %v4580_v41 = vpop.f32.mrb[111].mxu1  ;;  %v4636_v53 = vsel (!%p5253_p8), %vm1017_vm1, %v8623_v1, 0.0 }
0x1195   : > { %v8686_v5 = vadd.f32 %v4578_v60, %v8327_v14  ;;  %v4581_v27 = vadd.f32 %v5240_v56, %v4580_v41  ;;  %v4630_v14 = vsel (!%p5253_p8), %vm1017_vm1, %v8626_v61, 0.0  ;;  %4637 = vadd.xlane.f32.xlu1 (!%p5253_p8), %v4636_v53 }
0x1196   : > { %4622 = vst.msk [vmem:[#allocation2 + $0x70] sm:$0xff] %vm1017_vm1, %v8683_v26  ;;  %v8691_v59 = vadd.f32 %v4589_v49, %v8336_v20  ;;  %4631 = vadd.xlane.f32.xlu0 (!%p5253_p8), %v4630_v14  ;;  %v4639_v20 = vsel (!%p5253_p8), %vm1017_vm1, %v8631_v25, 0.0  ;;  %v4672_v42 = vsel (!%p5253_p8), %vm1017_vm1, %v8683_v26, 0.0 }
0x1197   : > { %4620 = vst.msk [vmem:[#allocation2 + $0x60] sm:$0xff] %vm1017_vm1, %v8686_v5  ;;  %v8696_v51 = vadd.f32 %v4581_v27, %v8332_v45  ;;  %v4633_v45 = vsel (!%p5253_p8), %vm1017_vm1, %v8636_v10, 0.0  ;;  %v4666_v24 = vsel (!%p5253_p8), %vm1017_vm1, %v8686_v5, 0.0 }
0x1198   : > { %4623 = vst.msk [vmem:[#allocation2 + $0x78] sm:$0xff] %vm1017_vm1, %v8691_v59  ;;  %v4675_v56 = vsel (!%p5253_p8), %vm1017_vm1, %v8691_v59, 0.0 }
0x1199   : > { %4621 = vst.msk [vmem:[#allocation2 + $0x68] sm:$0xff] %vm1017_vm1, %v8696_v51  ;;  %4640 = vadd.xlane.f32.xlu1 (!%p5253_p8), %v4639_v20  ;;  %v4669_v9 = vsel (!%p5253_p8), %vm1017_vm1, %v8696_v51, 0.0 }
0x119a   : > { %4634 = vadd.xlane.f32.xlu0 %v4633_v45 }
0x119d   : > { %4646 = vadd.xlane.f32.xlu1 %v4645_v43 }
0x119e   : > { %4643 = vadd.xlane.f32.xlu0 %v4642_v62 }
0x11a1   : > { %4652 = vadd.xlane.f32.xlu1 %v4651_v19 }
0x11a2   : > { %4649 = vadd.xlane.f32.xlu0 %v4648_v7 }
0x11a5   : > { %4658 = vadd.xlane.f32.xlu1 %v4657_v11 }
0x11a6   : > { %4655 = vadd.xlane.f32.xlu0 %v4654_v6 }
0x11a9   : > { %4664 = vadd.xlane.f32.xlu1 %v4663_v23 }
0x11aa   : > { %4661 = vadd.xlane.f32.xlu0 %v4660_v31 }
0x11ad   : > { %4670 = vadd.xlane.f32.xlu1 %v4669_v9 }
0x11ae   : > { %4667 = vadd.xlane.f32.xlu0 %v4666_v24 }
0x11b1   : > { %4676 = vadd.xlane.f32.xlu1 %v4675_v56 }
0x11b2   : > { %4673 = vadd.xlane.f32.xlu0 %v4672_v42 }
0x1222   : > { %v4638_v47 = vpop.xlane.xlu1 %4637 }
0x1223   : > { %v4632_v44 = vpop.xlane.xlu0 %4631  ;;  %v4680_v50 = vmul.f32 0.03125, %v4638_v47 }
0x1224   : > { %v4678_v4 = vmul.f32 0.03125, %v4632_v44 }
0x1225   : > { %v8739_v30 = vsub.f32 %v8623_v1, %v4680_v50 }
0x1226   : > { %v8736_v37 = vsub.f32 %v8626_v61, %v4678_v4  ;;  %v4641_v32 = vpop.xlane.xlu1 %4640 }
0x1227   : > { %v4635_v3 = vpop.xlane.xlu0 %4634  ;;  %v4681_v55 = vmul.f32 0.03125, %v4641_v32  ;;  %v4712_v46 = vmul.f32 %v8739_v30, %v8739_v30 }
0x1228   : > { %v4679_v17 = vmul.f32 0.03125, %v4635_v3  ;;  %v4710_v39 = vmul.f32 %v8736_v37, %v8736_v37 }
0x1229   : > { %v8749_v2 = vsub.f32 %v8631_v25, %v4681_v55  ;;  %v4732_v48 = vsel %vm1017_vm1, %v4712_v46, 0.0 }
0x122a   : > { %v8746_v8 = vsub.f32 %v8636_v10, %v4679_v17  ;;  %v4726_v61 = vsel %vm1017_vm1, %v4710_v39, 0.0  ;;  %v4647_v29 = vpop.xlane.xlu1 %4646 }
0x122b   : > { %4727 = vadd.xlane.f32.xlu0 %v4726_v61  ;;  %v4644_v1 = vpop.xlane.xlu0 %4643  ;;  %v4683_v57 = vmul.f32 0.03125, %v4647_v29  ;;  %v4713_v13 = vmul.f32 %v8749_v2, %v8749_v2 }
0x122c   : > { %v4682_v58 = vmul.f32 0.03125, %v4644_v1  ;;  %v4711_v36 = vmul.f32 %v8746_v8, %v8746_v8 }
0x122d   : > { %v8761_v25 = vsub.f32 %v8656_v52, %v4683_v57  ;;  %v4735_v22 = vsel %vm1017_vm1, %v4713_v13, 0.0 }
0x122e   : > { %v8758_v10 = vsub.f32 %v8646_v40, %v4682_v58  ;;  %v4729_v63 = vsel %vm1017_vm1, %v4711_v36, 0.0  ;;  %v4653_v18 = vpop.xlane.xlu1 %4652 }
0x122f   : > { %4733 = vadd.xlane.f32.xlu0 %v4732_v48  ;;  %4730 = vadd.xlane.f32.xlu1 %v4729_v63  ;;  %v4650_v33 = vpop.xlane.xlu0 %4649  ;;  %v4685_v21 = vmul.f32 0.03125, %v4653_v18  ;;  %v4715_v40 = vmul.f32 %v8761_v25, %v8761_v25 }
0x1230   : > { %v4684_v12 = vmul.f32 0.03125, %v4650_v33  ;;  %v4714_v0 = vmul.f32 %v8758_v10, %v8758_v10 }
0x1231   : > { %v8773_v52 = vsub.f32 %v8651_v38, %v4685_v21  ;;  %v4741_v27 = vsel %vm1017_vm1, %v4715_v40, 0.0 }
0x1232   : > { %v8770_v60 = vsub.f32 %v8643_v34, %v4684_v12  ;;  %v4738_v28 = vsel %vm1017_vm1, %v4714_v0, 0.0  ;;  %v4659_v41 = vpop.xlane.xlu1 %4658 }
0x1233   : > { %4736 = vadd.xlane.f32.xlu1 %v4735_v22  ;;  %4739 = vadd.xlane.f32.xlu0 %v4738_v28  ;;  %v4656_v49 = vpop.xlane.xlu0 %4655  ;;  %v4687_v53 = vmul.f32 0.03125, %v4659_v41  ;;  %v4717_v34 = vmul.f32 %v8773_v52, %v8773_v52 }
0x1234   : > { %v4686_v14 = vmul.f32 0.03125, %v4656_v49  ;;  %v4716_v45 = vmul.f32 %v8770_v60, %v8770_v60 }
0x1235   : > { %v8785_v38 = vsub.f32 %v8676_v16, %v4687_v53  ;;  %v4747_v19 = vsel %vm1017_vm1, %v4717_v34, 0.0 }
0x1236   : > { %v8782_v20 = vsub.f32 %v8666_v35, %v4686_v14  ;;  %v4744_v62 = vsel %vm1017_vm1, %v4716_v45, 0.0  ;;  %v4665_v7 = vpop.xlane.xlu1 %4664 }
0x1237   : > { %4742 = vadd.xlane.f32.xlu1 %v4741_v27  ;;  %4745 = vadd.xlane.f32.xlu0 %v4744_v62  ;;  %v4662_v43 = vpop.xlane.xlu0 %4661  ;;  %v4689_v11 = vmul.f32 0.03125, %v4665_v7  ;;  %v4719_v35 = vmul.f32 %v8785_v38, %v8785_v38  ;;  %v8834_v7 = vld [vmem:[%s9083_s20] ss:$0 sm:$0xff] }
0x1238   : > { %v4688_v6 = vmul.f32 0.03125, %v4662_v43  ;;  %v4718_v31 = vmul.f32 %v8782_v20, %v8782_v20 }
0x1239   : > { %v8797_v16 = vsub.f32 %v8671_v15, %v4689_v11  ;;  %v4753_v56 = vsel %vm1017_vm1, %v4719_v35, 0.0 }
0x123a   : > { %v8794_v23 = vsub.f32 %v8663_v54, %v4688_v6  ;;  %v4750_v24 = vsel %vm1017_vm1, %v4718_v31, 0.0  ;;  %v4671_v42 = vpop.xlane.xlu1 %4670 }
0x123b   : > { %4748 = vadd.xlane.f32.xlu1 %v4747_v19  ;;  %4751 = vadd.xlane.f32.xlu0 %v4750_v24  ;;  %v4668_v9 = vpop.xlane.xlu0 %4667  ;;  %v4691_v47 = vmul.f32 0.03125, %v4671_v42  ;;  %v4721_v54 = vmul.f32 %v8797_v16, %v8797_v16  ;;  %v8840_v24 = vld [vmem:[%s9084_s22] ss:$0 sm:$0xff] }
0x123c   : > { %v4690_v44 = vmul.f32 0.03125, %v4668_v9  ;;  %v4720_v4 = vmul.f32 %v8794_v23, %v8794_v23 }
0x123d   : > { %v8809_v15 = vsub.f32 %v8696_v51, %v4691_v47  ;;  %v4759_v55 = vsel %vm1017_vm1, %v4721_v54, 0.0 }
0x123e   : > { %v8806_v50 = vsub.f32 %v8686_v5, %v4690_v44  ;;  %v4756_v3 = vsel %vm1017_vm1, %v4720_v4, 0.0  ;;  %v4677_v17 = vpop.xlane.xlu1 %4676 }
0x123f   : > { %4754 = vadd.xlane.f32.xlu1 %v4753_v56  ;;  %4757 = vadd.xlane.f32.xlu0 %v4756_v3  ;;  %v4674_v32 = vpop.xlane.xlu0 %4673  ;;  %v4693_v46 = vmul.f32 0.03125, %v4677_v17  ;;  %v4723_v5 = vmul.f32 %v8809_v15, %v8809_v15 }
0x1240   : > { %v4692_v39 = vmul.f32 0.03125, %v4674_v32  ;;  %v4722_v61 = vmul.f32 %v8806_v50, %v8806_v50 }
0x1241   : > { %v8821_v51 = vsub.f32 %v8691_v59, %v4693_v46  ;;  %v4765_v48 = vsel %vm1017_vm1, %v4723_v5, 0.0 }
0x1242   : > { %v8818_v1 = vsub.f32 %v8683_v26, %v4692_v39  ;;  %v4762_v29 = vsel %vm1017_vm1, %v4722_v61, 0.0 }
0x1243   : > { %4760 = vadd.xlane.f32.xlu1 %v4759_v55  ;;  %4763 = vadd.xlane.f32.xlu0 %v4762_v29  ;;  %v4725_v57 = vmul.f32 %v8821_v51, %v8821_v51 }
0x1244   : > { %v4724_v58 = vmul.f32 %v8818_v1, %v8818_v1 }
0x1245   : > { %v4771_v26 = vsel %vm1017_vm1, %v4725_v57, 0.0 }
0x1246   : > { %v4768_v36 = vsel %vm1017_vm1, %v4724_v58, 0.0 }
0x1247   : > { %4766 = vadd.xlane.f32.xlu1 %v4765_v48  ;;  %4769 = vadd.xlane.f32.xlu0 %v4768_v36 }
0x124b   : > { %4772 = vadd.xlane.f32.xlu1 %v4771_v26 }
0x12b8   : > { %v4728_v59 = vpop.xlane.xlu0 %4727 }
0x12b9   : > { %v4774_v13 = vmul.f32 0.03125, %v4728_v59 }
0x12bb   : > { %v4790_v63 = vadd.f32 1e-06, %v4774_v13 }
0x12bc   : > { %v4731_v33 = vpop.xlane.xlu1 %4730  ;;  %v4734_v18 = vpop.xlane.xlu0 %4733 }
0x12bd   : > { %6417 = vrsqrt.f32 %v4790_v63  ;;  %v4775_v22 = vmul.f32 0.03125, %v4731_v33  ;;  %v4776_v12 = vmul.f32 0.03125, %v4734_v18 }
0x12bf   : > { %v4791_v21 = vadd.f32 1e-06, %v4775_v22  ;;  %v4792_v0 = vadd.f32 1e-06, %v4776_v12 }
0x12c0   : > { %v4737_v40 = vpop.xlane.xlu1 %4736  ;;  %v4740_v28 = vpop.xlane.xlu0 %4739 }
0x12c1   : > { %6419 = vrsqrt.f32 %v4791_v21  ;;  %v4777_v49 = vmul.f32 0.03125, %v4737_v40  ;;  %v4778_v41 = vmul.f32 0.03125, %v4740_v28 }
0x12c2   : > { %6421 = vrsqrt.f32 %v4792_v0 }
0x12c3   : > { %v4793_v27 = vadd.f32 1e-06, %v4777_v49  ;;  %v4794_v14 = vadd.f32 1e-06, %v4778_v41 }
0x12c4   : > { %v4743_v53 = vpop.xlane.xlu1 %4742  ;;  %v4746_v45 = vpop.xlane.xlu0 %4745 }
0x12c5   : > { %6423 = vrsqrt.f32 %v4793_v27  ;;  %v4779_v34 = vmul.f32 0.03125, %v4743_v53  ;;  %v4780_v62 = vmul.f32 0.03125, %v4746_v45 }
0x12c6   : > { %6425 = vrsqrt.f32 %v4794_v14 }
0x12c7   : > { %v6418_v43 = vpop.eup %6417  ;;  %v4795_v19 = vadd.f32 1e-06, %v4779_v34  ;;  %v4796_v6 = vadd.f32 1e-06, %v4780_v62 }
0x12c8   : > { %v4822_v11 = vmul.f32 %v6418_v43, %v8736_v37  ;;  %v4749_v31 = vpop.xlane.xlu1 %4748  ;;  %v4752_v35 = vpop.xlane.xlu0 %4751 }
0x12c9   : > { %6427 = vrsqrt.f32 %v4795_v19  ;;  %v4781_v9 = vmul.f32 0.03125, %v4749_v31  ;;  %v4782_v42 = vmul.f32 0.03125, %v4752_v35 }
0x12ca   : > { %v4844_v56 = vmul.f32 %v8834_v7, %v4822_v11  ;;  %6429 = vrsqrt.f32 %v4796_v6 }
0x12cb   : > { %v6420_v44 = vpop.eup %6419  ;;  %v4797_v47 = vadd.f32 1e-06, %v4781_v9  ;;  %v4798_v4 = vadd.f32 1e-06, %v4782_v42 }
0x12cc   : > { %v6422_v54 = vpop.eup %6421  ;;  %v4866_v37 = vadd.f32 %v8840_v24, %v4844_v56  ;;  %v4823_v3 = vmul.f32 %v6420_v44, %v8746_v8  ;;  %v4755_v32 = vpop.xlane.xlu1 %4754 }
0x12cd   : > { %v4758_v17 = vpop.xlane.xlu0 %4757  ;;  %v4824_v55 = vmul.f32 %v6422_v54, %v8739_v30  ;;  %6431 = vrsqrt.f32 %v4797_v47  ;;  %v4783_v39 = vmul.f32 0.03125, %v4755_v32 }
0x12ce   : > { %v4784_v46 = vmul.f32 0.03125, %v4758_v17  ;;  %4882 = vst.msk [vmem:[%s6721_s9] sm:$0xff] %vm1017_vm1, %v4866_v37  ;;  %v4845_v61 = vmul.f32 %v8834_v7, %v4823_v3  ;;  %6433 = vrsqrt.f32 %v4798_v4 }
0x12cf   : > { %v6424_v5 = vpop.eup %6423  ;;  %v4846_v29 = vmul.f32 %v8834_v7, %v4824_v55  ;;  %v4799_v48 = vadd.f32 1e-06, %v4783_v39 }
0x12d0   : > { %v4800_v58 = vadd.f32 1e-06, %v4784_v46  ;;  %v6426_v8 = vpop.eup %6425  ;;  %v4867_v57 = vadd.f32 %v8840_v24, %v4845_v61  ;;  %v4825_v30 = vmul.f32 %v6424_v5, %v8749_v2  ;;  %v4761_v36 = vpop.xlane.xlu1 %4760 }
0x12d1   : > { %v4764_v26 = vpop.xlane.xlu0 %4763  ;;  %v4868_v59 = vadd.f32 %v8840_v24, %v4846_v29  ;;  %v4826_v13 = vmul.f32 %v6426_v8, %v8758_v10  ;;  %6435 = vrsqrt.f32 %v4799_v48  ;;  %v4785_v63 = vmul.f32 0.03125, %v4761_v36 }
0x12d2   : > { %4883 = vst.msk [vmem:[%s6721_s9 + $0x8] sm:$0xff] %vm1017_vm1, %v4867_v57  ;;  %v4847_v33 = vmul.f32 %v8834_v7, %v4825_v30  ;;  %6437 = vrsqrt.f32 %v4800_v58  ;;  %v4786_v18 = vmul.f32 0.03125, %v4764_v26 }
0x12d3   : > { %v6428_v22 = vpop.eup %6427  ;;  %4884 = vst.msk [vmem:[%s6721_s9 + $0x10] sm:$0xff] %vm1017_vm1, %v4868_v59  ;;  %v4848_v2 = vmul.f32 %v8834_v7, %v4826_v13  ;;  %v4801_v12 = vadd.f32 1e-06, %v4785_v63 }
0x12d4   : > { %v6430_v21 = vpop.eup %6429  ;;  %v4869_v0 = vadd.f32 %v8840_v24, %v4847_v33  ;;  %v4827_v10 = vmul.f32 %v6428_v22, %v8761_v25  ;;  %v4802_v40 = vadd.f32 1e-06, %v4786_v18  ;;  %v4767_v28 = vpop.xlane.xlu1 %4766 }
0x12d5   : > { %v4770_v49 = vpop.xlane.xlu0 %4769  ;;  %v4870_v41 = vadd.f32 %v8840_v24, %v4848_v2  ;;  %v4828_v27 = vmul.f32 %v6430_v21, %v8770_v60  ;;  %6439 = vrsqrt.f32 %v4801_v12  ;;  %v4787_v14 = vmul.f32 0.03125, %v4767_v28 }
0x12d6   : > { %4885 = vst.msk [vmem:[%s6721_s9 + $0x18] sm:$0xff] %vm1017_vm1, %v4869_v0  ;;  %v4849_v53 = vmul.f32 %v8834_v7, %v4827_v10  ;;  %6441 = vrsqrt.f32 %v4802_v40  ;;  %v4788_v45 = vmul.f32 0.03125, %v4770_v49 }
0x12d7   : > { %v6432_v34 = vpop.eup %6431  ;;  %4886 = vst.msk [vmem:[%s6721_s9 + $0x20] sm:$0xff] %vm1017_vm1, %v4870_v41  ;;  %v4850_v25 = vmul.f32 %v8834_v7, %v4828_v27  ;;  %v4803_v62 = vadd.f32 1e-06, %v4787_v14 }
0x12d8   : > { %v6434_v43 = vpop.eup %6433  ;;  %v4871_v19 = vadd.f32 %v8840_v24, %v4849_v53  ;;  %v4829_v60 = vmul.f32 %v6432_v34, %v8773_v52  ;;  %v4804_v6 = vadd.f32 1e-06, %v4788_v45  ;;  %v4773_v11 = vpop.xlane.xlu1 %4772 }
0x12d9   : > { %v4872_v31 = vadd.f32 %v8840_v24, %v4850_v25  ;;  %v4830_v35 = vmul.f32 %v6434_v43, %v8782_v20  ;;  %6443 = vrsqrt.f32 %v4803_v62  ;;  %v4789_v9 = vmul.f32 0.03125, %v4773_v11 }
0x12da   : > { %4887 = vst.msk [vmem:[%s6721_s9 + $0x28] sm:$0xff] %vm1017_vm1, %v4871_v19  ;;  %v4851_v42 = vmul.f32 %v8834_v7, %v4829_v60  ;;  %6445 = vrsqrt.f32 %v4804_v6 }
0x12db   : > { %v6436_v56 = vpop.eup %6435  ;;  %4888 = vst.msk [vmem:[%s6721_s9 + $0x30] sm:$0xff] %vm1017_vm1, %v4872_v31  ;;  %v4852_v52 = vmul.f32 %v8834_v7, %v4830_v35  ;;  %v4805_v44 = vadd.f32 1e-06, %v4789_v9 }
0x12dc   : > { %v6438_v47 = vpop.eup %6437  ;;  %v4873_v4 = vadd.f32 %v8840_v24, %v4851_v42  ;;  %v4831_v20 = vmul.f32 %v6436_v56, %v8785_v38 }
0x12dd   : > { %v4874_v54 = vadd.f32 %v8840_v24, %v4852_v52  ;;  %v4832_v37 = vmul.f32 %v6438_v47, %v8794_v23  ;;  %6447 = vrsqrt.f32 %v4805_v44 }
0x12de   : > { %4889 = vst.msk [vmem:[%s6721_s9 + $0x38] sm:$0xff] %vm1017_vm1, %v4873_v4  ;;  %v4853_v3 = vmul.f32 %v8834_v7, %v4831_v20 }
0x12df   : > { %v6440_v32 = vpop.eup %6439  ;;  %4890 = vst.msk [vmem:[%s6721_s9 + $0x40] sm:$0xff] %vm1017_vm1, %v4874_v54  ;;  %v4854_v17 = vmul.f32 %v8834_v7, %v4832_v37 }
0x12e0   : > { %v6442_v55 = vpop.eup %6441  ;;  %v4875_v39 = vadd.f32 %v8840_v24, %v4853_v3  ;;  %v4833_v38 = vmul.f32 %v6440_v32, %v8797_v16 }
0x12e1   : > { %v4876_v46 = vadd.f32 %v8840_v24, %v4854_v17  ;;  %v4834_v23 = vmul.f32 %v6442_v55, %v8806_v50 }
0x12e2   : > { %4891 = vst.msk [vmem:[%s6721_s9 + $0x48] sm:$0xff] %vm1017_vm1, %v4875_v39  ;;  %v4855_v61 = vmul.f32 %v8834_v7, %v4833_v38 }
0x12e3   : > { %v6444_v5 = vpop.eup %6443  ;;  %4892 = vst.msk [vmem:[%s6721_s9 + $0x50] sm:$0xff] %vm1017_vm1, %v4876_v46  ;;  %v4856_v29 = vmul.f32 %v8834_v7, %v4834_v23 }
0x12e4   : > { %v6446_v48 = vpop.eup %6445  ;;  %v4877_v58 = vadd.f32 %v8840_v24, %v4855_v61  ;;  %v4835_v16 = vmul.f32 %v6444_v5, %v8809_v15 }
0x12e5   : > { %v4878_v8 = vadd.f32 %v8840_v24, %v4856_v29  ;;  %v4836_v50 = vmul.f32 %v6446_v48, %v8818_v1 }
0x12e6   : > { %4893 = vst.msk [vmem:[%s6721_s9 + $0x58] sm:$0xff] %vm1017_vm1, %v4877_v58  ;;  %v4857_v57 = vmul.f32 %v8834_v7, %v4835_v16 }
0x12e7   : > { %v6448_v30 = vpop.eup %6447  ;;  %4894 = vst.msk [vmem:[%s6721_s9 + $0x60] sm:$0xff] %vm1017_vm1, %v4878_v8  ;;  %v4858_v36 = vmul.f32 %v8834_v7, %v4836_v50 }
0x12e8   : > { %v4879_v26 = vadd.f32 %v8840_v24, %v4857_v57  ;;  %v4837_v59 = vmul.f32 %v6448_v30, %v8821_v51 }
0x12e9   : > { %v4880_v13 = vadd.f32 %v8840_v24, %v4858_v36 }
0x12ea   : > { %4895 = vst.msk [vmem:[%s6721_s9 + $0x68] sm:$0xff] %vm1017_vm1, %v4879_v26  ;;  %v4859_v15 = vmul.f32 %v8834_v7, %v4837_v59 }
0x12eb   : > { %4896 = vst.msk [vmem:[%s6721_s9 + $0x70] sm:$0xff] %vm1017_vm1, %v4880_v13 }
0x12ec   : > { %v4881_v1 = vadd.f32 %v8840_v24, %v4859_v15 }
0x12ee   : > { %4897 = vst.msk [vmem:[%s6721_s9 + $0x78] sm:$0xff] %vm1017_vm1, %v4881_v1 }
0x12ef PF: > { %s9085_s28 = sld [smem:[#allocation6_spill]]  ;;  %s9086_s2 = sld [smem:[#allocation4_spill]] }
0x12f0   : > { %s9087_s25 = sld [smem:[#allocation5_spill]]  ;;  %s9088_s26 = sld [smem:[#allocation7_spill]] }
0x12f1   : > { %s9089_s27 = sld [smem:[#allocation8_spill]] }
0x12f5   : > { %s31_s3 = sadd.s32 1, %s9085_s28  }
0x12f6   : > { %p28_p9 = scmp.ge.s32.totalorder %s31_s3, 6  }
0x12f8   :  { %30 = sbr.rel (!%p28_p9) target bundleno = 17 (0x11), region = 190 }

</bundles_post_ra>
